<compile_context>
chip_gen: v6e
topology: v6e:2x2x1
jax: 0.10.0
libtpu: 0.0.40
codegen_flags: <defaults>
</compile_context>

<pallas_src>
import functools

import jax
import jax.numpy as jnp
from jax import lax
from jax.experimental import pallas as pl
from jax.experimental.pallas import tpu as pltpu


# ----------------------------------------------------------------------------
# Shared LSTM pieces
# ----------------------------------------------------------------------------
def _lstm_cell(g, c):
    """PyTorch-ordered LSTM cell (gates i, f, g, o). g: (bt, 4H) f32, c: (bt, H) f32."""
    H = c.shape[-1]
    i_g = jax.nn.sigmoid(g[:, 0 * H:1 * H])
    f_g = jax.nn.sigmoid(g[:, 1 * H:2 * H])
    g_g = jnp.tanh(g[:, 2 * H:3 * H])
    o_g = jax.nn.sigmoid(g[:, 3 * H:4 * H])
    c_new = f_g * c + i_g * g_g
    return o_g * jnp.tanh(c_new), c_new


def _project_inputs(x_ref, wih_ref, b_ref, gx_ref):
    """Hoisted input projection gx = x @ Wih + b (bf16 MXU, f32 acc) -> bf16 scratch."""
    T, bt, in_dim = x_ref.shape
    G = gx_ref.shape[2]
    x2 = x_ref[...].reshape(T * bt, in_dim).astype(jnp.bfloat16)
    gx = jnp.dot(x2, wih_ref[...], preferred_element_type=jnp.float32) + b_ref[...]
    gx_ref[...] = gx.reshape(T, bt, G).astype(jnp.bfloat16)


def _lstm_recurrence(gx_ref, lens, whh_ref, *, hidden, num_dirs, unroll,
                     out_ref=None, macc=None, sacc=None):
    """Length-masked (pack_padded semantics) (bi)directional recurrence on one tile.

    gx_ref:  (T, bt, num_dirs*4H) bf16   precomputed x @ Wih + (b_ih + b_hh)
    lens:    (bt, 1) int32               valid lengths
    whh_ref: (num_dirs, H, 4H) bf16      per-direction recurrent weights
    out_ref: (T, bt, num_dirs*H) f32     per-time hidden output, zero at t >= len
    macc/sacc: per-direction (bt, H) f32 scratch refs: running max / sum over the
               VALID timesteps of relu(h_t) -- exactly what the fused head needs.
    """
    T, bt, _ = gx_ref.shape
    H = hidden
    whh = [whh_ref[d] for d in range(num_dirs)]          # hoist weight loads

    def step(i, carry):
        hs, cs = carry                                    # tuples of (bt, H) f32
        nh, nc = [], []
        for d in range(num_dirs):
            t_d = i if d == 0 else T - 1 - i
            gh = jnp.dot(hs[d].astype(jnp.bfloat16), whh[d],
                         preferred_element_type=jnp.float32)          # (bt, 4H)
            g = gx_ref[t_d][:, d * 4 * H:(d + 1) * 4 * H].astype(jnp.float32) + gh
            h_n, c_n = _lstm_cell(g, cs[d])
            valid = lens > t_d                                         # (bt, 1) bool
            if out_ref is not None:
                out_ref[t_d, :, d * H:(d + 1) * H] = jnp.where(valid, h_n, 0.0)
            if macc is not None:
                o = jnp.maximum(h_n, 0.0) * valid.astype(jnp.float32)  # masked relu
                macc[d][...] = jnp.maximum(macc[d][...], o)
                sacc[d][...] = sacc[d][...] + o
            nh.append(jnp.where(valid, h_n, hs[d]))
            nc.append(jnp.where(valid, c_n, cs[d]))
        return tuple(nh), tuple(nc)

    z = jnp.zeros((bt, H), jnp.float32)
    lax.fori_loop(0, T, step, ((z,) * num_dirs, (z,) * num_dirs), unroll=unroll)


# ----------------------------------------------------------------------------
# Intermediate bi-LSTM layer kernel (only used when num_layers > 1)
# ----------------------------------------------------------------------------
def _bilstm_seq_kernel(*refs, hidden, num_dirs, unroll, in_proj):
    if in_proj:
        x_ref, len_ref, wih_ref, b_ref, whh_ref, out_ref, gx_ref = refs
        _project_inputs(x_ref, wih_ref, b_ref, gx_ref)
    else:
        gx_ref, len_ref, whh_ref, out_ref = refs
    _lstm_recurrence(gx_ref, len_ref[...], whh_ref, hidden=hidden,
                     num_dirs=num_dirs, unroll=unroll, out_ref=out_ref)


def _bilstm_seq_call(lens, whh, *, gx=None, x=None, wih=None, b=None,
                     hidden, num_dirs, bt, vmem_limit, unroll):
    in_proj = gx is None
    src = x if in_proj else gx
    T, B = src.shape[0], src.shape[1]
    G = num_dirs * 4 * hidden
    h_out = num_dirs * hidden
    kernel = functools.partial(_bilstm_seq_kernel, hidden=hidden, num_dirs=num_dirs,
                               unroll=unroll, in_proj=in_proj)
    if in_proj:
        in_dim = x.shape[2]
        args = (x, lens, wih, b, whh)
        in_specs = [
            pl.BlockSpec((T, bt, in_dim), lambda i: (0, i, 0)),
            pl.BlockSpec((bt, 1), lambda i: (i, 0)),
            pl.BlockSpec((in_dim, G), lambda i: (0, 0)),
            pl.BlockSpec((1, G), lambda i: (0, 0)),
            pl.BlockSpec((num_dirs, hidden, 4 * hidden), lambda i: (0, 0, 0)),
        ]
        scratch = [pltpu.VMEM((T, bt, G), jnp.bfloat16)]
    else:
        args = (gx, lens, whh)
        in_specs = [
            pl.BlockSpec((T, bt, G), lambda i: (0, i, 0)),
            pl.BlockSpec((bt, 1), lambda i: (i, 0)),
            pl.BlockSpec((num_dirs, hidden, 4 * hidden), lambda i: (0, 0, 0)),
        ]
        scratch = []
    return pl.pallas_call(
        kernel,
        out_shape=jax.ShapeDtypeStruct((T, B, h_out), jnp.float32),
        grid_spec=pltpu.PrefetchScalarGridSpec(
            num_scalar_prefetch=0,
            grid=(B // bt,),
            in_specs=in_specs,
            out_specs=pl.BlockSpec((T, bt, h_out), lambda i: (0, i, 0)),
            scratch_shapes=scratch),
        compiler_params=pltpu.CompilerParams(
            dimension_semantics=("parallel",),
            vmem_limit_bytes=vmem_limit),
    )(*args)


# ----------------------------------------------------------------------------
# Last bi-LSTM layer fused with the head:
#   ReLU -> ECA (masked mean + banded channel conv + sigmoid gate) -> residual ->
#   global max pool over time -> ReLU -> MLP
# ----------------------------------------------------------------------------
def _bilstm_head_kernel(*refs, hidden, num_dirs, unroll, in_proj):
    if in_proj:
        (x_ref, embed_ref, len_ref, wih_ref, b_ref, whh_ref, eca_ref,
         w1_ref, b1_ref, w2_ref, b2_ref, w3_ref, b3_ref, out_ref,
         gx_ref, *stats) = refs
        _project_inputs(x_ref, wih_ref, b_ref, gx_ref)
    else:
        (gx_ref, embed_ref, len_ref, whh_ref, eca_ref,
         w1_ref, b1_ref, w2_ref, b2_ref, w3_ref, b3_ref, out_ref, *stats) = refs

    T, bt, E = embed_ref.shape
    H = hidden
    c_pad = eca_ref.shape[0]
    lens = len_ref[...]                                   # (bt, 1) int32
    macc, sacc = stats[:num_dirs], stats[num_dirs:]
    for s in stats:                                       # scratch persists across blocks
        s[...] = jnp.zeros_like(s)

    # Recurrence accumulates max_t / sum_t of length-masked relu(h_t) per direction;
    # the per-time LSTM output is never materialized (no (T, bt, 2H) buffer).
    _lstm_recurrence(gx_ref, lens, whh_ref, hidden=H, num_dirs=num_dirs,
                     unroll=unroll, macc=macc, sacc=sacc)

    # --- embedding branch of the head ---------------------------------------
    feat_e = jnp.maximum(embed_ref[...], 0.0)             # (T, bt, E) relu(embed)
    tmask = (lax.broadcasted_iota(jnp.int32, (T, bt, 1), 0)
             < lens[None, :, :]).astype(jnp.float32)
    inv_len = 1.0 / jnp.maximum(lens.astype(jnp.float32), 1.0)   # exact (parity)
    mean_e = jnp.sum(feat_e * tmask, axis=0) * inv_len    # (bt, E) masked mean
    # Padded token positions were forced to id 0 (zero embedding row), so the max
    # over all T equals the max over the valid region (all features are >= 0).
    max_e = jnp.max(feat_e, axis=0)                       # (bt, E)

    # --- channel concat at the (bt, C) level, padded to lane-dense c_pad ----
    C = E + num_dirs * H
    zpad = [jnp.zeros((bt, c_pad - C), jnp.float32)] if c_pad > C else []
    y = jnp.concatenate([mean_e] + [sacc[d][...] * inv_len for d in range(num_dirs)]
                        + zpad, axis=1)                   # (bt, c_pad) ECA input
    m = jnp.concatenate([max_e] + [macc[d][...] for d in range(num_dirs)]
                        + zpad, axis=1)                   # (bt, c_pad) max-over-time

    # ECA: Conv1d(1,1,k,pad,bias=False) over channels as a banded matmul + sigmoid.
    gate = jax.nn.sigmoid(jnp.dot(y, eca_ref[...], preferred_element_type=jnp.float32))
    # out + ECA(out) = feat * (1 + gate); gate is time-independent and positive, so
    # the global max pool over time commutes with the scaling.
    h = jnp.maximum(m * (1.0 + gate), 0.0)

    # --- MLP head (bf16 operands, f32 accumulation) --------------------------
    h1 = jnp.maximum(jnp.dot(h.astype(jnp.bfloat16), w1_ref[...],
                             preferred_element_type=jnp.float32) + b1_ref[...], 0.0)
    h2 = jnp.maximum(jnp.dot(h1.astype(jnp.bfloat16), w2_ref[...],
                             preferred_element_type=jnp.float32) + b2_ref[...], 0.0)
    out_ref[...] = (jnp.dot(h2.astype(jnp.bfloat16), w3_ref[...],
                            preferred_element_type=jnp.float32) + b3_ref[...])


def _bilstm_head_call(embed, lens, whh, eca, w1, b1, w2, b2, w3, b3, *,
                      gx=None, x=None, wih=None, b=None,
                      hidden, num_dirs, bt, vmem_limit, unroll):
    T, B, E = embed.shape
    G = num_dirs * 4 * hidden
    c_pad = eca.shape[0]
    in_proj = gx is None
    kernel = functools.partial(_bilstm_head_kernel, hidden=hidden, num_dirs=num_dirs,
                               unroll=unroll, in_proj=in_proj)
    head_args = (eca, w1, b1, w2, b2, w3, b3)
    head_specs = [
        pl.BlockSpec((c_pad, c_pad), lambda i: (0, 0)),
        pl.BlockSpec((c_pad, 128), lambda i: (0, 0)),
        pl.BlockSpec((1, 128), lambda i: (0, 0)),
        pl.BlockSpec((128, 32), lambda i: (0, 0)),
        pl.BlockSpec((1, 32), lambda i: (0, 0)),
        pl.BlockSpec((32, 2), lambda i: (0, 0)),
        pl.BlockSpec((1, 2), lambda i: (0, 0)),
    ]
    stat_scratch = [pltpu.VMEM((bt, hidden), jnp.float32) for _ in range(2 * num_dirs)]
    if in_proj:
        in_dim = x.shape[2]
        args = (x, embed, lens, wih, b, whh) + head_args
        in_specs = [
            pl.BlockSpec((T, bt, in_dim), lambda i: (0, i, 0)),
            pl.BlockSpec((T, bt, E), lambda i: (0, i, 0)),
            pl.BlockSpec((bt, 1), lambda i: (i, 0)),
            pl.BlockSpec((in_dim, G), lambda i: (0, 0)),
            pl.BlockSpec((1, G), lambda i: (0, 0)),
            pl.BlockSpec((num_dirs, hidden, 4 * hidden), lambda i: (0, 0, 0)),
        ] + head_specs
        scratch = [pltpu.VMEM((T, bt, G), jnp.bfloat16)] + stat_scratch
    else:
        args = (gx, embed, lens, whh) + head_args
        in_specs = [
            pl.BlockSpec((T, bt, G), lambda i: (0, i, 0)),
            pl.BlockSpec((T, bt, E), lambda i: (0, i, 0)),
            pl.BlockSpec((bt, 1), lambda i: (i, 0)),
            pl.BlockSpec((num_dirs, hidden, 4 * hidden), lambda i: (0, 0, 0)),
        ] + head_specs
        scratch = stat_scratch
    return pl.pallas_call(
        kernel,
        out_shape=jax.ShapeDtypeStruct((B, 2), jnp.float32),
        grid_spec=pltpu.PrefetchScalarGridSpec(
            num_scalar_prefetch=0,
            grid=(B // bt,),
            in_specs=in_specs,
            out_specs=pl.BlockSpec((bt, 2), lambda i: (i, 0)),
            scratch_shapes=scratch),
        compiler_params=pltpu.CompilerParams(
            dimension_semantics=("parallel",),
            vmem_limit_bytes=vmem_limit),
    )(*args)


# ----------------------------------------------------------------------------
# Generation-aware tiling plan (VMEM byte budget, MXU rows, v7x dual-TC)
# ----------------------------------------------------------------------------
def _plan_tiling(B0, T, emb_dim, gate_dim):
    try:
        kind = jax.devices()[0].device_kind.lower()
    except Exception:
        kind = ""
    try:
        vmem_cap = int(pltpu.get_tpu_info().vmem_capacity_bytes)
    except Exception:
        vmem_cap = (64 if "v7" in kind else 128) * 1024 * 1024
    vmem_cap = max(vmem_cap, 32 << 20)
    is_v5e = ("v5 lite" in kind) or ("v5e" in kind)
    two_cores = "v7" in kind
    mxu_rows = 128 if is_v5e else 256          # rows that fill the MXU in the recurrence

    def block_bytes(bt):
        gx = 2 * T * bt * gate_dim * 2         # double-buffered bf16 gx input block
        emb = 2 * T * bt * emb_dim * 4         # double-buffered f32 embed block
        seq = 2 * T * bt * gate_dim            # stacked-layer out / bf16 gx scratch slack
        return gx + emb + seq + (2 << 20)      # weights, stats, headroom

    Bp = max(8, -(-B0 // 8) * 8)
    budget = int(vmem_cap * 0.45)
    bt = min(Bp, mxu_rows)
    while bt > 8 and block_bytes(bt) > budget:
        bt = max(8, (bt // 2) // 8 * 8)
    if two_cores and Bp >= 16 and Bp // bt < 2:
        bt = max(8, (Bp // 2) // 8 * 8)        # >= 2 grid blocks -> both TensorCores run
    Bp = -(-Bp // bt) * bt
    vmem_limit = int(min(vmem_cap * 9 // 10, max(2 * block_bytes(bt), 32 << 20)))
    return Bp, bt, vmem_limit


# ----------------------------------------------------------------------------
# Full forward (glue: padding, embedding / projected-embedding gather, stacking)
# ----------------------------------------------------------------------------
def rcnn_forward(tokens, lengths, params, *, num_layers, bi_num, hidden_dim):
    B0, T = tokens.shape
    emb_tbl = params["embedding"]
    E = emb_tbl.shape[1]
    H = hidden_dim
    G = bi_num * 4 * H

    Bp, bt, vmem_limit = _plan_tiling(B0, T, E, G)
    unroll = min(T, 4 if bt >= 128 else 8)     # bounded unroll (vreg / code-size)

    tok_p = jnp.zeros((Bp, T), jnp.int32).at[:B0].set(tokens.astype(jnp.int32))
    len_p = jnp.ones((Bp, 1), jnp.int32).at[:B0, 0].set(lengths.astype(jnp.int32))
    # pack_padded semantics + padding_idx=0: force positions at t >= length (and the
    # padded batch rows) to the pad token so relu(embed) is exactly 0 there; this is
    # what lets the head's global max pool run over all T.
    tok_p = jnp.where(jnp.arange(T, dtype=jnp.int32)[None, :] < len_p, tok_p, 0)

    tok_t = tok_p.T                                            # (T, Bp) time-major ids
    embed = jnp.take(emb_tbl, tok_t, axis=0)                   # (T, Bp, E) f32

    # Layer-0 input projection folded into the embedding table (Embedding->Linear
    # commutes with the gather); the gathered gx0 is the kernel's pipelined bf16
    # input -- no in-kernel layer-0 projection matmul, no gx scratch.
    wih0, b0 = params["lstm"][0]["wih"], params["lstm"][0]["b"]
    emb_proj = (jnp.dot(emb_tbl, wih0) + b0).astype(jnp.bfloat16)   # (vocab, G)
    gx0 = jnp.take(emb_proj, tok_t, axis=0)                    # (T, Bp, G) bf16

    def whh_bf16(layer):
        return params["lstm"][layer]["whh"].astype(jnp.bfloat16)

    hw = (params["eca_mat"],
          params["w1"].astype(jnp.bfloat16), params["b1"],
          params["w2"].astype(jnp.bfloat16), params["b2"],
          params["w3"].astype(jnp.bfloat16), params["b3"])
    common = dict(hidden=H, num_dirs=bi_num, bt=bt, vmem_limit=vmem_limit,
                  unroll=unroll)

    if num_layers == 1:
        out = _bilstm_head_call(embed, len_p, whh_bf16(0), *hw, gx=gx0, **common)
    else:
        # Stacked LSTM: intermediate layers materialize their (T, B, bi*H) output;
        # the last layer is fused with the head.
        x = _bilstm_seq_call(len_p, whh_bf16(0), gx=gx0, **common)
        for layer in range(1, num_layers - 1):
            x = _bilstm_seq_call(len_p, whh_bf16(layer), x=x,
                                 wih=params["lstm"][layer]["wih"].astype(jnp.bfloat16),
                                 b=params["lstm"][layer]["b"], **common)
        last = num_layers - 1
        out = _bilstm_head_call(embed, len_p, whh_bf16(last), *hw, x=x,
                                wih=params["lstm"][last]["wih"].astype(jnp.bfloat16),
                                b=params["lstm"][last]["b"], **common)
    return out[:B0]                            # drop padded batch rows


# ----------------------------------------------------------------------------
# Deterministic parameter init (shapes follow RCNN.__init__), fused per layer
# ----------------------------------------------------------------------------
def init_params(key, *, vocab_size, embedding_num, hidden_dim, num_layers, bi_num,
                k_size=5):
    keys = iter(jax.random.split(key, 64))
    E, H = embedding_num, hidden_dim
    C = bi_num * H + E
    C_pad = -(-C // 128) * 128                               # lane-dense head channels

    emb = jax.random.normal(next(keys), (vocab_size, E), jnp.float32) * 0.1
    emb = emb.at[0].set(0.0)                                 # padding_idx=0

    lstm = []
    for layer in range(num_layers):
        in_dim = E if layer == 0 else bi_num * H
        wihs, whhs, bs = [], [], []
        for _ in range(bi_num):
            wihs.append(jax.random.normal(next(keys), (in_dim, 4 * H), jnp.float32) * 0.1)
            whhs.append(jax.random.normal(next(keys), (H, 4 * H), jnp.float32) * 0.1)
            bs.append(jax.random.normal(next(keys), (1, 4 * H), jnp.float32) * 0.1)
        lstm.append(dict(
            wih=jnp.concatenate(wihs, axis=1),               # (In, bi*4H)  [fwd | bwd]
            whh=jnp.stack(whhs, axis=0),                     # (bi, H, 4H)  per direction
            b=jnp.concatenate(bs, axis=1),                   # (1, bi*4H)   b_ih + b_hh
        ))

    # ECA Conv1d(1,1,k,pad=(k-1)//2,bias=False) over channels as a banded (C_pad,
    # C_pad) matmul; rows/cols >= C are zero (padded channels carry zeros).
    eca_w = jax.random.normal(next(keys), (k_size,), jnp.float32) * 0.3
    pad = (k_size - 1) // 2
    idx = jnp.arange(C_pad)
    diff = idx[:, None] - idx[None, :] + pad                 # row=input chan, col=output
    inband = ((diff >= 0) & (diff < k_size)
              & (idx[:, None] < C) & (idx[None, :] < C))
    eca_mat = jnp.where(inband, eca_w[jnp.clip(diff, 0, k_size - 1)], 0.0)

    w1 = jax.random.normal(next(keys), (C_pad, 128), jnp.float32) * 0.1
    w1 = w1.at[C:].set(0.0)                                  # padded channels contribute 0
    b1 = jax.random.normal(next(keys), (1, 128), jnp.float32) * 0.01
    w2 = jax.random.normal(next(keys), (128, 32), jnp.float32) * 0.1
    b2 = jax.random.normal(next(keys), (1, 32), jnp.float32) * 0.01
    w3 = jax.random.normal(next(keys), (32, 2), jnp.float32) * 0.1
    b3 = jax.random.normal(next(keys), (1, 2), jnp.float32) * 0.01

    return dict(embedding=emb, lstm=lstm, eca_mat=eca_mat.astype(jnp.float32),
                w1=w1, b1=b1, w2=w2, b2=b2, w3=w3, b3=b3)


if __name__ == "__main__":
    # Small shapes consistent with the module
    B, T = 2, 8
    vocab_size, embedding_num, hidden_dim = 50, 32, 32
    num_layers, biFlag = 1, True
    bi_num = 2 if biFlag else 1

    key = jax.random.PRNGKey(0)
    tok_key, param_key = jax.random.split(key)

    lengths = jnp.array([8, 5], dtype=jnp.int32)             # sorted (pack_padded_sequence)
    tokens = jax.random.randint(tok_key, (B, T), 1, vocab_size, dtype=jnp.int32)
    pad_mask = jnp.arange(T)[None, :] < lengths[:, None]
    tokens = jnp.where(pad_mask, tokens, 0).astype(jnp.int32)  # pad token id = 0

    params = init_params(param_key, vocab_size=vocab_size, embedding_num=embedding_num,
                         hidden_dim=hidden_dim, num_layers=num_layers, bi_num=bi_num)

    out = rcnn_forward(tokens, lengths, params,
                       num_layers=num_layers, bi_num=bi_num, hidden_dim=hidden_dim)
    out = jax.block_until_ready(out)
    assert out.shape == (B, 2) and out.dtype == jnp.float32
    print("KERNEL_OK")
</pallas_src>

<mosaic_0001>
module attributes {stable_mosaic.version = 11 : i64} {
  func.func @_bilstm_head_kernel(%arg0: i32, %arg1: memref<8x8x256xbf16, #tpu.memory_space<vmem>>, %arg2: memref<8x8x32xf32, #tpu.memory_space<vmem>>, %arg3: memref<8x1xi32, #tpu.memory_space<vmem>>, %arg4: memref<2x32x128xbf16, #tpu.memory_space<vmem>>, %arg5: memref<128x128xf32, #tpu.memory_space<vmem>>, %arg6: memref<128x128xbf16, #tpu.memory_space<vmem>>, %arg7: memref<1x128xf32, #tpu.memory_space<vmem>>, %arg8: memref<128x32xbf16, #tpu.memory_space<vmem>>, %arg9: memref<1x32xf32, #tpu.memory_space<vmem>>, %arg10: memref<32x2xbf16, #tpu.memory_space<vmem>>, %arg11: memref<1x2xf32, #tpu.memory_space<vmem>>, %arg12: memref<8x2xf32, #tpu.memory_space<vmem>>, %arg13: memref<8x32xf32, #tpu.memory_space<vmem>>, %arg14: memref<8x32xf32, #tpu.memory_space<vmem>>, %arg15: memref<8x32xf32, #tpu.memory_space<vmem>>, %arg16: memref<8x32xf32, #tpu.memory_space<vmem>>) attributes {dimension_semantics = [#tpu.dimension_semantics<parallel>], iteration_bounds = array<i64: 1>, scalar_prefetch = 0 : i64, scratch_operands = 4 : i64, tpu.core_type = #tpu.core_type<tc>, window_params = [{transform_indices = @transform_0, window_bounds = array<i64: 8, 8, 256>}, {transform_indices = @transform_1, window_bounds = array<i64: 8, 8, 32>}, {transform_indices = @transform_2, window_bounds = array<i64: 8, 1>}, {pipeline_mode = #tpu.pipeline_mode<synchronous>, transform_indices = @transform_3, window_bounds = array<i64: 2, 32, 128>}, {pipeline_mode = #tpu.pipeline_mode<synchronous>, transform_indices = @transform_4, window_bounds = array<i64: 128, 128>}, {pipeline_mode = #tpu.pipeline_mode<synchronous>, transform_indices = @transform_5, window_bounds = array<i64: 128, 128>}, {pipeline_mode = #tpu.pipeline_mode<synchronous>, transform_indices = @transform_6, window_bounds = array<i64: 1, 128>}, {pipeline_mode = #tpu.pipeline_mode<synchronous>, transform_indices = @transform_7, window_bounds = array<i64: 128, 32>}, {pipeline_mode = #tpu.pipeline_mode<synchronous>, transform_indices = @transform_8, window_bounds = array<i64: 1, 32>}, {pipeline_mode = #tpu.pipeline_mode<synchronous>, transform_indices = @transform_9, window_bounds = array<i64: 32, 2>}, {pipeline_mode = #tpu.pipeline_mode<synchronous>, transform_indices = @transform_10, window_bounds = array<i64: 1, 2>}, {transform_indices = @transform_11, window_bounds = array<i64: 8, 2>}]} {
    %c0 = arith.constant 0 : index
    %c0_0 = arith.constant 0 : index
    %0 = vector.load %arg3[%c0, %c0_0] : memref<8x1xi32, #tpu.memory_space<vmem>>, vector<8x1xi32>
    %cst = arith.constant 0.000000e+00 : f32
    %1 = vector.broadcast %cst : f32 to vector<8x32xf32>
    %c0_1 = arith.constant 0 : index
    %c0_2 = arith.constant 0 : index
    %2 = vector.load %arg13[%c0_1, %c0_2] : memref<8x32xf32, #tpu.memory_space<vmem>>, vector<8x32xf32>
    tpu.vector_store %arg13[%c0_1, %c0_2], %1 {strides = array<i32>} : memref<8x32xf32, #tpu.memory_space<vmem>>, vector<8x32xf32>,
    %cst_3 = arith.constant 0.000000e+00 : f32
    %3 = vector.broadcast %cst_3 : f32 to vector<8x32xf32>
    %c0_4 = arith.constant 0 : index
    %c0_5 = arith.constant 0 : index
    %4 = vector.load %arg14[%c0_4, %c0_5] : memref<8x32xf32, #tpu.memory_space<vmem>>, vector<8x32xf32>
    tpu.vector_store %arg14[%c0_4, %c0_5], %3 {strides = array<i32>} : memref<8x32xf32, #tpu.memory_space<vmem>>, vector<8x32xf32>,
    %cst_6 = arith.constant 0.000000e+00 : f32
    %5 = vector.broadcast %cst_6 : f32 to vector<8x32xf32>
    %c0_7 = arith.constant 0 : index
    %c0_8 = arith.constant 0 : index
    %6 = vector.load %arg15[%c0_7, %c0_8] : memref<8x32xf32, #tpu.memory_space<vmem>>, vector<8x32xf32>
    tpu.vector_store %arg15[%c0_7, %c0_8], %5 {strides = array<i32>} : memref<8x32xf32, #tpu.memory_space<vmem>>, vector<8x32xf32>,
    %cst_9 = arith.constant 0.000000e+00 : f32
    %7 = vector.broadcast %cst_9 : f32 to vector<8x32xf32>
    %c0_10 = arith.constant 0 : index
    %c0_11 = arith.constant 0 : index
    %8 = vector.load %arg16[%c0_10, %c0_11] : memref<8x32xf32, #tpu.memory_space<vmem>>, vector<8x32xf32>
    tpu.vector_store %arg16[%c0_10, %c0_11], %7 {strides = array<i32>} : memref<8x32xf32, #tpu.memory_space<vmem>>, vector<8x32xf32>,
    %c0_12 = arith.constant 0 : index
    %c0_13 = arith.constant 0 : index
    %c0_14 = arith.constant 0 : index
    %9 = vector.load %arg4[%c0_12, %c0_13, %c0_14] : memref<2x32x128xbf16, #tpu.memory_space<vmem>>, vector<1x32x128xbf16>
    %10 = vector.shape_cast %9 : vector<1x32x128xbf16> to vector<32x128xbf16>
    %c1 = arith.constant 1 : index
    %c0_15 = arith.constant 0 : index
    %c0_16 = arith.constant 0 : index
    %11 = vector.load %arg4[%c1, %c0_15, %c0_16] : memref<2x32x128xbf16, #tpu.memory_space<vmem>>, vector<1x32x128xbf16>
    %12 = vector.shape_cast %11 : vector<1x32x128xbf16> to vector<32x128xbf16>
    %cst_17 = arith.constant 0.000000e+00 : f32
    %13 = vector.broadcast %cst_17 : f32 to vector<8x32xf32>
    %c0_i32 = arith.constant 0 : i32
    %14 = arith.truncf %13 : vector<8x32xf32> to vector<8x32xbf16>
    %cst_18 = arith.constant dense<0.000000e+00> : vector<8x128xf32>
    %15 = tpu.matmul %14, %10, %cst_18 {dimension_numbers = #tpu.dot_dimension_numbers<[1], [0], [0], [1], [0, 0, 1, 1], [], []>} : vector<8x32xbf16>, vector<32x128xbf16>, vector<8x128xf32> -> vector<8x128xf32>
    %16 = arith.index_cast %c0_i32 : i32 to index
    %c0_19 = arith.constant 0 : index
    %c0_20 = arith.constant 0 : index
    %17 = vector.load %arg1[%16, %c0_19, %c0_20] : memref<8x8x256xbf16, #tpu.memory_space<vmem>>, vector<1x8x256xbf16>
    %18 = vector.shape_cast %17 : vector<1x8x256xbf16> to vector<8x256xbf16>
    %19 = vector.extract_strided_slice %18 {offsets = [0, 0], sizes = [8, 128], strides = [1, 1]} : vector<8x256xbf16> to vector<8x128xbf16>
    %20 = arith.extf %19 : vector<8x128xbf16> to vector<8x128xf32>
    %21 = arith.addf %20, %15 : vector<8x128xf32>
    %22 = vector.extract_strided_slice %21 {offsets = [0, 0], sizes = [8, 32], strides = [1, 1]} : vector<8x128xf32> to vector<8x32xf32>
    %23 = arith.negf %22 : vector<8x32xf32>
    %24 = math.exp %23 : vector<8x32xf32>
    %cst_21 = arith.constant 1.000000e+00 : f32
    %25 = vector.broadcast %cst_21 : f32 to vector<8x32xf32>
    %26 = arith.addf %25, %24 : vector<8x32xf32>
    %27 = arith.divf %25, %26 : vector<8x32xf32>
    %28 = vector.extract_strided_slice %21 {offsets = [0, 32], sizes = [8, 32], strides = [1, 1]} : vector<8x128xf32> to vector<8x32xf32>
    %29 = arith.negf %28 : vector<8x32xf32>
    %30 = math.exp %29 : vector<8x32xf32>
    %cst_22 = arith.constant 1.000000e+00 : f32
    %31 = vector.broadcast %cst_22 : f32 to vector<8x32xf32>
    %32 = arith.addf %31, %30 : vector<8x32xf32>
    %33 = arith.divf %31, %32 : vector<8x32xf32>
    %34 = vector.extract_strided_slice %21 {offsets = [0, 64], sizes = [8, 32], strides = [1, 1]} : vector<8x128xf32> to vector<8x32xf32>
    %35 = math.tanh %34 : vector<8x32xf32>
    %36 = vector.extract_strided_slice %21 {offsets = [0, 96], sizes = [8, 32], strides = [1, 1]} : vector<8x128xf32> to vector<8x32xf32>
    %37 = arith.negf %36 : vector<8x32xf32>
    %38 = math.exp %37 : vector<8x32xf32>
    %cst_23 = arith.constant 1.000000e+00 : f32
    %39 = vector.broadcast %cst_23 : f32 to vector<8x32xf32>
    %40 = arith.addf %39, %38 : vector<8x32xf32>
    %41 = arith.divf %39, %40 : vector<8x32xf32>
    %42 = arith.mulf %33, %13 : vector<8x32xf32>
    %43 = arith.mulf %27, %35 : vector<8x32xf32>
    %44 = arith.addf %42, %43 : vector<8x32xf32>
    %45 = math.tanh %44 : vector<8x32xf32>
    %46 = arith.mulf %41, %45 : vector<8x32xf32>
    %47 = vector.broadcast %c0_i32 : i32 to vector<8x1xi32>
    %48 = arith.cmpi sgt, %0, %47 : vector<8x1xi32>
    %cst_24 = arith.constant 0.000000e+00 : f32
    %49 = vector.broadcast %cst_24 : f32 to vector<8x32xf32>
    %50 = arith.maximumf %46, %49 : vector<8x32xf32>
    %51 = arith.extui %48 : vector<8x1xi1> to vector<8x1xi32>
    %52 = arith.sitofp %51 : vector<8x1xi32> to vector<8x1xf32>
    %53 = vector.broadcast %52 : vector<8x1xf32> to vector<8x32xf32>
    %54 = arith.mulf %50, %53 : vector<8x32xf32>
    %c0_25 = arith.constant 0 : index
    %c0_26 = arith.constant 0 : index
    %55 = vector.load %arg13[%c0_25, %c0_26] : memref<8x32xf32, #tpu.memory_space<vmem>>, vector<8x32xf32>
    %56 = arith.maximumf %55, %54 : vector<8x32xf32>
    %c0_27 = arith.constant 0 : index
    %c0_28 = arith.constant 0 : index
    %57 = vector.load %arg13[%c0_27, %c0_28] : memref<8x32xf32, #tpu.memory_space<vmem>>, vector<8x32xf32>
    tpu.vector_store %arg13[%c0_27, %c0_28], %56 {strides = array<i32>} : memref<8x32xf32, #tpu.memory_space<vmem>>, vector<8x32xf32>,
    %c0_29 = arith.constant 0 : index
    %c0_30 = arith.constant 0 : index
    %58 = vector.load %arg15[%c0_29, %c0_30] : memref<8x32xf32, #tpu.memory_space<vmem>>, vector<8x32xf32>
    %59 = arith.addf %58, %54 : vector<8x32xf32>
    %c0_31 = arith.constant 0 : index
    %c0_32 = arith.constant 0 : index
    %60 = vector.load %arg15[%c0_31, %c0_32] : memref<8x32xf32, #tpu.memory_space<vmem>>, vector<8x32xf32>
    tpu.vector_store %arg15[%c0_31, %c0_32], %59 {strides = array<i32>} : memref<8x32xf32, #tpu.memory_space<vmem>>, vector<8x32xf32>,
    %61 = vector.shape_cast %48 : vector<8x1xi1> to vector<8x1xi1>
    %62 = vector.broadcast %61 : vector<8x1xi1> to vector<8x32xi1>
    %63 = arith.select %62, %46, %13 : vector<8x32xi1>, vector<8x32xf32>
    %64 = vector.shape_cast %48 : vector<8x1xi1> to vector<8x1xi1>
    %65 = vector.broadcast %64 : vector<8x1xi1> to vector<8x32xi1>
    %66 = arith.select %65, %44, %13 : vector<8x32xi1>, vector<8x32xf32>
    %c7_i32 = arith.constant 7 : i32
    %67 = arith.subi %c7_i32, %c0_i32 : i32
    %68 = arith.truncf %13 : vector<8x32xf32> to vector<8x32xbf16>
    %cst_33 = arith.constant dense<0.000000e+00> : vector<8x128xf32>
    %69 = tpu.matmul %68, %12, %cst_33 {dimension_numbers = #tpu.dot_dimension_numbers<[1], [0], [0], [1], [0, 0, 1, 1], [], []>} : vector<8x32xbf16>, vector<32x128xbf16>, vector<8x128xf32> -> vector<8x128xf32>
    %70 = arith.index_cast %67 : i32 to index
    %c0_34 = arith.constant 0 : index
    %c0_35 = arith.constant 0 : index
    %71 = vector.load %arg1[%70, %c0_34, %c0_35] : memref<8x8x256xbf16, #tpu.memory_space<vmem>>, vector<1x8x256xbf16>
    %72 = vector.shape_cast %71 : vector<1x8x256xbf16> to vector<8x256xbf16>
    %73 = vector.extract_strided_slice %72 {offsets = [0, 128], sizes = [8, 128], strides = [1, 1]} : vector<8x256xbf16> to vector<8x128xbf16>
    %74 = arith.extf %73 : vector<8x128xbf16> to vector<8x128xf32>
    %75 = arith.addf %74, %69 : vector<8x128xf32>
    %76 = vector.extract_strided_slice %75 {offsets = [0, 0], sizes = [8, 32], strides = [1, 1]} : vector<8x128xf32> to vector<8x32xf32>
    %77 = arith.negf %76 : vector<8x32xf32>
    %78 = math.exp %77 : vector<8x32xf32>
    %cst_36 = arith.constant 1.000000e+00 : f32
    %79 = vector.broadcast %cst_36 : f32 to vector<8x32xf32>
    %80 = arith.addf %79, %78 : vector<8x32xf32>
    %81 = arith.divf %79, %80 : vector<8x32xf32>
    %82 = vector.extract_strided_slice %75 {offsets = [0, 32], sizes = [8, 32], strides = [1, 1]} : vector<8x128xf32> to vector<8x32xf32>
    %83 = arith.negf %82 : vector<8x32xf32>
    %84 = math.exp %83 : vector<8x32xf32>
    %cst_37 = arith.constant 1.000000e+00 : f32
    %85 = vector.broadcast %cst_37 : f32 to vector<8x32xf32>
    %86 = arith.addf %85, %84 : vector<8x32xf32>
    %87 = arith.divf %85, %86 : vector<8x32xf32>
    %88 = vector.extract_strided_slice %75 {offsets = [0, 64], sizes = [8, 32], strides = [1, 1]} : vector<8x128xf32> to vector<8x32xf32>
    %89 = math.tanh %88 : vector<8x32xf32>
    %90 = vector.extract_strided_slice %75 {offsets = [0, 96], sizes = [8, 32], strides = [1, 1]} : vector<8x128xf32> to vector<8x32xf32>
    %91 = arith.negf %90 : vector<8x32xf32>
    %92 = math.exp %91 : vector<8x32xf32>
    %cst_38 = arith.constant 1.000000e+00 : f32
    %93 = vector.broadcast %cst_38 : f32 to vector<8x32xf32>
    %94 = arith.addf %93, %92 : vector<8x32xf32>
    %95 = arith.divf %93, %94 : vector<8x32xf32>
    %96 = arith.mulf %87, %13 : vector<8x32xf32>
    %97 = arith.mulf %81, %89 : vector<8x32xf32>
    %98 = arith.addf %96, %97 : vector<8x32xf32>
    %99 = math.tanh %98 : vector<8x32xf32>
    %100 = arith.mulf %95, %99 : vector<8x32xf32>
    %101 = vector.broadcast %67 : i32 to vector<8x1xi32>
    %102 = arith.cmpi sgt, %0, %101 : vector<8x1xi32>
    %cst_39 = arith.constant 0.000000e+00 : f32
    %103 = vector.broadcast %cst_39 : f32 to vector<8x32xf32>
    %104 = arith.maximumf %100, %103 : vector<8x32xf32>
    %105 = arith.extui %102 : vector<8x1xi1> to vector<8x1xi32>
    %106 = arith.sitofp %105 : vector<8x1xi32> to vector<8x1xf32>
    %107 = vector.broadcast %106 : vector<8x1xf32> to vector<8x32xf32>
    %108 = arith.mulf %104, %107 : vector<8x32xf32>
    %c0_40 = arith.constant 0 : index
    %c0_41 = arith.constant 0 : index
    %109 = vector.load %arg14[%c0_40, %c0_41] : memref<8x32xf32, #tpu.memory_space<vmem>>, vector<8x32xf32>
    %110 = arith.maximumf %109, %108 : vector<8x32xf32>
    %c0_42 = arith.constant 0 : index
    %c0_43 = arith.constant 0 : index
    %111 = vector.load %arg14[%c0_42, %c0_43] : memref<8x32xf32, #tpu.memory_space<vmem>>, vector<8x32xf32>
    tpu.vector_store %arg14[%c0_42, %c0_43], %110 {strides = array<i32>} : memref<8x32xf32, #tpu.memory_space<vmem>>, vector<8x32xf32>,
    %c0_44 = arith.constant 0 : index
    %c0_45 = arith.constant 0 : index
    %112 = vector.load %arg16[%c0_44, %c0_45] : memref<8x32xf32, #tpu.memory_space<vmem>>, vector<8x32xf32>
    %113 = arith.addf %112, %108 : vector<8x32xf32>
    %c0_46 = arith.constant 0 : index
    %c0_47 = arith.constant 0 : index
    %114 = vector.load %arg16[%c0_46, %c0_47] : memref<8x32xf32, #tpu.memory_space<vmem>>, vector<8x32xf32>
    tpu.vector_store %arg16[%c0_46, %c0_47], %113 {strides = array<i32>} : memref<8x32xf32, #tpu.memory_space<vmem>>, vector<8x32xf32>,
    %115 = vector.shape_cast %102 : vector<8x1xi1> to vector<8x1xi1>
    %116 = vector.broadcast %115 : vector<8x1xi1> to vector<8x32xi1>
    %117 = arith.select %116, %100, %13 : vector<8x32xi1>, vector<8x32xf32>
    %118 = vector.shape_cast %102 : vector<8x1xi1> to vector<8x1xi1>
    %119 = vector.broadcast %118 : vector<8x1xi1> to vector<8x32xi1>
    %120 = arith.select %119, %98, %13 : vector<8x32xi1>, vector<8x32xf32>
    %c1_i32 = arith.constant 1 : i32
    %121 = arith.truncf %63 : vector<8x32xf32> to vector<8x32xbf16>
    %cst_48 = arith.constant dense<0.000000e+00> : vector<8x128xf32>
    %122 = tpu.matmul %121, %10, %cst_48 {dimension_numbers = #tpu.dot_dimension_numbers<[1], [0], [0], [1], [0, 0, 1, 1], [], []>} : vector<8x32xbf16>, vector<32x128xbf16>, vector<8x128xf32> -> vector<8x128xf32>
    %123 = arith.index_cast %c1_i32 : i32 to index
    %c0_49 = arith.constant 0 : index
    %c0_50 = arith.constant 0 : index
    %124 = vector.load %arg1[%123, %c0_49, %c0_50] : memref<8x8x256xbf16, #tpu.memory_space<vmem>>, vector<1x8x256xbf16>
    %125 = vector.shape_cast %124 : vector<1x8x256xbf16> to vector<8x256xbf16>
    %126 = vector.extract_strided_slice %125 {offsets = [0, 0], sizes = [8, 128], strides = [1, 1]} : vector<8x256xbf16> to vector<8x128xbf16>
    %127 = arith.extf %126 : vector<8x128xbf16> to vector<8x128xf32>
    %128 = arith.addf %127, %122 : vector<8x128xf32>
    %129 = vector.extract_strided_slice %128 {offsets = [0, 0], sizes = [8, 32], strides = [1, 1]} : vector<8x128xf32> to vector<8x32xf32>
    %130 = arith.negf %129 : vector<8x32xf32>
    %131 = math.exp %130 : vector<8x32xf32>
    %cst_51 = arith.constant 1.000000e+00 : f32
    %132 = vector.broadcast %cst_51 : f32 to vector<8x32xf32>
    %133 = arith.addf %132, %131 : vector<8x32xf32>
    %134 = arith.divf %132, %133 : vector<8x32xf32>
    %135 = vector.extract_strided_slice %128 {offsets = [0, 32], sizes = [8, 32], strides = [1, 1]} : vector<8x128xf32> to vector<8x32xf32>
    %136 = arith.negf %135 : vector<8x32xf32>
    %137 = math.exp %136 : vector<8x32xf32>
    %cst_52 = arith.constant 1.000000e+00 : f32
    %138 = vector.broadcast %cst_52 : f32 to vector<8x32xf32>
    %139 = arith.addf %138, %137 : vector<8x32xf32>
    %140 = arith.divf %138, %139 : vector<8x32xf32>
    %141 = vector.extract_strided_slice %128 {offsets = [0, 64], sizes = [8, 32], strides = [1, 1]} : vector<8x128xf32> to vector<8x32xf32>
    %142 = math.tanh %141 : vector<8x32xf32>
    %143 = vector.extract_strided_slice %128 {offsets = [0, 96], sizes = [8, 32], strides = [1, 1]} : vector<8x128xf32> to vector<8x32xf32>
    %144 = arith.negf %143 : vector<8x32xf32>
    %145 = math.exp %144 : vector<8x32xf32>
    %cst_53 = arith.constant 1.000000e+00 : f32
    %146 = vector.broadcast %cst_53 : f32 to vector<8x32xf32>
    %147 = arith.addf %146, %145 : vector<8x32xf32>
    %148 = arith.divf %146, %147 : vector<8x32xf32>
    %149 = arith.mulf %140, %66 : vector<8x32xf32>
    %150 = arith.mulf %134, %142 : vector<8x32xf32>
    %151 = arith.addf %149, %150 : vector<8x32xf32>
    %152 = math.tanh %151 : vector<8x32xf32>
    %153 = arith.mulf %148, %152 : vector<8x32xf32>
    %154 = vector.broadcast %c1_i32 : i32 to vector<8x1xi32>
    %155 = arith.cmpi sgt, %0, %154 : vector<8x1xi32>
    %cst_54 = arith.constant 0.000000e+00 : f32
    %156 = vector.broadcast %cst_54 : f32 to vector<8x32xf32>
    %157 = arith.maximumf %153, %156 : vector<8x32xf32>
    %158 = arith.extui %155 : vector<8x1xi1> to vector<8x1xi32>
    %159 = arith.sitofp %158 : vector<8x1xi32> to vector<8x1xf32>
    %160 = vector.broadcast %159 : vector<8x1xf32> to vector<8x32xf32>
    %161 = arith.mulf %157, %160 : vector<8x32xf32>
    %c0_55 = arith.constant 0 : index
    %c0_56 = arith.constant 0 : index
    %162 = vector.load %arg13[%c0_55, %c0_56] : memref<8x32xf32, #tpu.memory_space<vmem>>, vector<8x32xf32>
    %163 = arith.maximumf %162, %161 : vector<8x32xf32>
    %c0_57 = arith.constant 0 : index
    %c0_58 = arith.constant 0 : index
    %164 = vector.load %arg13[%c0_57, %c0_58] : memref<8x32xf32, #tpu.memory_space<vmem>>, vector<8x32xf32>
    tpu.vector_store %arg13[%c0_57, %c0_58], %163 {strides = array<i32>} : memref<8x32xf32, #tpu.memory_space<vmem>>, vector<8x32xf32>,
    %c0_59 = arith.constant 0 : index
    %c0_60 = arith.constant 0 : index
    %165 = vector.load %arg15[%c0_59, %c0_60] : memref<8x32xf32, #tpu.memory_space<vmem>>, vector<8x32xf32>
    %166 = arith.addf %165, %161 : vector<8x32xf32>
    %c0_61 = arith.constant 0 : index
    %c0_62 = arith.constant 0 : index
    %167 = vector.load %arg15[%c0_61, %c0_62] : memref<8x32xf32, #tpu.memory_space<vmem>>, vector<8x32xf32>
    tpu.vector_store %arg15[%c0_61, %c0_62], %166 {strides = array<i32>} : memref<8x32xf32, #tpu.memory_space<vmem>>, vector<8x32xf32>,
    %168 = vector.shape_cast %155 : vector<8x1xi1> to vector<8x1xi1>
    %169 = vector.broadcast %168 : vector<8x1xi1> to vector<8x32xi1>
    %170 = arith.select %169, %153, %63 : vector<8x32xi1>, vector<8x32xf32>
    %171 = vector.shape_cast %155 : vector<8x1xi1> to vector<8x1xi1>
    %172 = vector.broadcast %171 : vector<8x1xi1> to vector<8x32xi1>
    %173 = arith.select %172, %151, %66 : vector<8x32xi1>, vector<8x32xf32>
    %c7_i32_63 = arith.constant 7 : i32
    %174 = arith.subi %c7_i32_63, %c1_i32 : i32
    %175 = arith.truncf %117 : vector<8x32xf32> to vector<8x32xbf16>
    %cst_64 = arith.constant dense<0.000000e+00> : vector<8x128xf32>
    %176 = tpu.matmul %175, %12, %cst_64 {dimension_numbers = #tpu.dot_dimension_numbers<[1], [0], [0], [1], [0, 0, 1, 1], [], []>} : vector<8x32xbf16>, vector<32x128xbf16>, vector<8x128xf32> -> vector<8x128xf32>
    %177 = arith.index_cast %174 : i32 to index
    %c0_65 = arith.constant 0 : index
    %c0_66 = arith.constant 0 : index
    %178 = vector.load %arg1[%177, %c0_65, %c0_66] : memref<8x8x256xbf16, #tpu.memory_space<vmem>>, vector<1x8x256xbf16>
    %179 = vector.shape_cast %178 : vector<1x8x256xbf16> to vector<8x256xbf16>
    %180 = vector.extract_strided_slice %179 {offsets = [0, 128], sizes = [8, 128], strides = [1, 1]} : vector<8x256xbf16> to vector<8x128xbf16>
    %181 = arith.extf %180 : vector<8x128xbf16> to vector<8x128xf32>
    %182 = arith.addf %181, %176 : vector<8x128xf32>
    %183 = vector.extract_strided_slice %182 {offsets = [0, 0], sizes = [8, 32], strides = [1, 1]} : vector<8x128xf32> to vector<8x32xf32>
    %184 = arith.negf %183 : vector<8x32xf32>
    %185 = math.exp %184 : vector<8x32xf32>
    %cst_67 = arith.constant 1.000000e+00 : f32
    %186 = vector.broadcast %cst_67 : f32 to vector<8x32xf32>
    %187 = arith.addf %186, %185 : vector<8x32xf32>
    %188 = arith.divf %186, %187 : vector<8x32xf32>
    %189 = vector.extract_strided_slice %182 {offsets = [0, 32], sizes = [8, 32], strides = [1, 1]} : vector<8x128xf32> to vector<8x32xf32>
    %190 = arith.negf %189 : vector<8x32xf32>
    %191 = math.exp %190 : vector<8x32xf32>
    %cst_68 = arith.constant 1.000000e+00 : f32
    %192 = vector.broadcast %cst_68 : f32 to vector<8x32xf32>
    %193 = arith.addf %192, %191 : vector<8x32xf32>
    %194 = arith.divf %192, %193 : vector<8x32xf32>
    %195 = vector.extract_strided_slice %182 {offsets = [0, 64], sizes = [8, 32], strides = [1, 1]} : vector<8x128xf32> to vector<8x32xf32>
    %196 = math.tanh %195 : vector<8x32xf32>
    %197 = vector.extract_strided_slice %182 {offsets = [0, 96], sizes = [8, 32], strides = [1, 1]} : vector<8x128xf32> to vector<8x32xf32>
    %198 = arith.negf %197 : vector<8x32xf32>
    %199 = math.exp %198 : vector<8x32xf32>
    %cst_69 = arith.constant 1.000000e+00 : f32
    %200 = vector.broadcast %cst_69 : f32 to vector<8x32xf32>
    %201 = arith.addf %200, %199 : vector<8x32xf32>
    %202 = arith.divf %200, %201 : vector<8x32xf32>
    %203 = arith.mulf %194, %120 : vector<8x32xf32>
    %204 = arith.mulf %188, %196 : vector<8x32xf32>
    %205 = arith.addf %203, %204 : vector<8x32xf32>
    %206 = math.tanh %205 : vector<8x32xf32>
    %207 = arith.mulf %202, %206 : vector<8x32xf32>
    %208 = vector.broadcast %174 : i32 to vector<8x1xi32>
    %209 = arith.cmpi sgt, %0, %208 : vector<8x1xi32>
    %cst_70 = arith.constant 0.000000e+00 : f32
    %210 = vector.broadcast %cst_70 : f32 to vector<8x32xf32>
    %211 = arith.maximumf %207, %210 : vector<8x32xf32>
    %212 = arith.extui %209 : vector<8x1xi1> to vector<8x1xi32>
    %213 = arith.sitofp %212 : vector<8x1xi32> to vector<8x1xf32>
    %214 = vector.broadcast %213 : vector<8x1xf32> to vector<8x32xf32>
    %215 = arith.mulf %211, %214 : vector<8x32xf32>
    %c0_71 = arith.constant 0 : index
    %c0_72 = arith.constant 0 : index
    %216 = vector.load %arg14[%c0_71, %c0_72] : memref<8x32xf32, #tpu.memory_space<vmem>>, vector<8x32xf32>
    %217 = arith.maximumf %216, %215 : vector<8x32xf32>
    %c0_73 = arith.constant 0 : index
    %c0_74 = arith.constant 0 : index
    %218 = vector.load %arg14[%c0_73, %c0_74] : memref<8x32xf32, #tpu.memory_space<vmem>>, vector<8x32xf32>
    tpu.vector_store %arg14[%c0_73, %c0_74], %217 {strides = array<i32>} : memref<8x32xf32, #tpu.memory_space<vmem>>, vector<8x32xf32>,
    %c0_75 = arith.constant 0 : index
    %c0_76 = arith.constant 0 : index
    %219 = vector.load %arg16[%c0_75, %c0_76] : memref<8x32xf32, #tpu.memory_space<vmem>>, vector<8x32xf32>
    %220 = arith.addf %219, %215 : vector<8x32xf32>
    %c0_77 = arith.constant 0 : index
    %c0_78 = arith.constant 0 : index
    %221 = vector.load %arg16[%c0_77, %c0_78] : memref<8x32xf32, #tpu.memory_space<vmem>>, vector<8x32xf32>
    tpu.vector_store %arg16[%c0_77, %c0_78], %220 {strides = array<i32>} : memref<8x32xf32, #tpu.memory_space<vmem>>, vector<8x32xf32>,
    %222 = vector.shape_cast %209 : vector<8x1xi1> to vector<8x1xi1>
    %223 = vector.broadcast %222 : vector<8x1xi1> to vector<8x32xi1>
    %224 = arith.select %223, %207, %117 : vector<8x32xi1>, vector<8x32xf32>
    %225 = vector.shape_cast %209 : vector<8x1xi1> to vector<8x1xi1>
    %226 = vector.broadcast %225 : vector<8x1xi1> to vector<8x32xi1>
    %227 = arith.select %226, %205, %120 : vector<8x32xi1>, vector<8x32xf32>
    %c2_i32 = arith.constant 2 : i32
    %228 = arith.truncf %170 : vector<8x32xf32> to vector<8x32xbf16>
    %cst_79 = arith.constant dense<0.000000e+00> : vector<8x128xf32>
    %229 = tpu.matmul %228, %10, %cst_79 {dimension_numbers = #tpu.dot_dimension_numbers<[1], [0], [0], [1], [0, 0, 1, 1], [], []>} : vector<8x32xbf16>, vector<32x128xbf16>, vector<8x128xf32> -> vector<8x128xf32>
    %230 = arith.index_cast %c2_i32 : i32 to index
    %c0_80 = arith.constant 0 : index
    %c0_81 = arith.constant 0 : index
    %231 = vector.load %arg1[%230, %c0_80, %c0_81] : memref<8x8x256xbf16, #tpu.memory_space<vmem>>, vector<1x8x256xbf16>
    %232 = vector.shape_cast %231 : vector<1x8x256xbf16> to vector<8x256xbf16>
    %233 = vector.extract_strided_slice %232 {offsets = [0, 0], sizes = [8, 128], strides = [1, 1]} : vector<8x256xbf16> to vector<8x128xbf16>
    %234 = arith.extf %233 : vector<8x128xbf16> to vector<8x128xf32>
    %235 = arith.addf %234, %229 : vector<8x128xf32>
    %236 = vector.extract_strided_slice %235 {offsets = [0, 0], sizes = [8, 32], strides = [1, 1]} : vector<8x128xf32> to vector<8x32xf32>
    %237 = arith.negf %236 : vector<8x32xf32>
    %238 = math.exp %237 : vector<8x32xf32>
    %cst_82 = arith.constant 1.000000e+00 : f32
    %239 = vector.broadcast %cst_82 : f32 to vector<8x32xf32>
    %240 = arith.addf %239, %238 : vector<8x32xf32>
    %241 = arith.divf %239, %240 : vector<8x32xf32>
    %242 = vector.extract_strided_slice %235 {offsets = [0, 32], sizes = [8, 32], strides = [1, 1]} : vector<8x128xf32> to vector<8x32xf32>
    %243 = arith.negf %242 : vector<8x32xf32>
    %244 = math.exp %243 : vector<8x32xf32>
    %cst_83 = arith.constant 1.000000e+00 : f32
    %245 = vector.broadcast %cst_83 : f32 to vector<8x32xf32>
    %246 = arith.addf %245, %244 : vector<8x32xf32>
    %247 = arith.divf %245, %246 : vector<8x32xf32>
    %248 = vector.extract_strided_slice %235 {offsets = [0, 64], sizes = [8, 32], strides = [1, 1]} : vector<8x128xf32> to vector<8x32xf32>
    %249 = math.tanh %248 : vector<8x32xf32>
    %250 = vector.extract_strided_slice %235 {offsets = [0, 96], sizes = [8, 32], strides = [1, 1]} : vector<8x128xf32> to vector<8x32xf32>
    %251 = arith.negf %250 : vector<8x32xf32>
    %252 = math.exp %251 : vector<8x32xf32>
    %cst_84 = arith.constant 1.000000e+00 : f32
    %253 = vector.broadcast %cst_84 : f32 to vector<8x32xf32>
    %254 = arith.addf %253, %252 : vector<8x32xf32>
    %255 = arith.divf %253, %254 : vector<8x32xf32>
    %256 = arith.mulf %247, %173 : vector<8x32xf32>
    %257 = arith.mulf %241, %249 : vector<8x32xf32>
    %258 = arith.addf %256, %257 : vector<8x32xf32>
    %259 = math.tanh %258 : vector<8x32xf32>
    %260 = arith.mulf %255, %259 : vector<8x32xf32>
    %261 = vector.broadcast %c2_i32 : i32 to vector<8x1xi32>
    %262 = arith.cmpi sgt, %0, %261 : vector<8x1xi32>
    %cst_85 = arith.constant 0.000000e+00 : f32
    %263 = vector.broadcast %cst_85 : f32 to vector<8x32xf32>
    %264 = arith.maximumf %260, %263 : vector<8x32xf32>
    %265 = arith.extui %262 : vector<8x1xi1> to vector<8x1xi32>
    %266 = arith.sitofp %265 : vector<8x1xi32> to vector<8x1xf32>
    %267 = vector.broadcast %266 : vector<8x1xf32> to vector<8x32xf32>
    %268 = arith.mulf %264, %267 : vector<8x32xf32>
    %c0_86 = arith.constant 0 : index
    %c0_87 = arith.constant 0 : index
    %269 = vector.load %arg13[%c0_86, %c0_87] : memref<8x32xf32, #tpu.memory_space<vmem>>, vector<8x32xf32>
    %270 = arith.maximumf %269, %268 : vector<8x32xf32>
    %c0_88 = arith.constant 0 : index
    %c0_89 = arith.constant 0 : index
    %271 = vector.load %arg13[%c0_88, %c0_89] : memref<8x32xf32, #tpu.memory_space<vmem>>, vector<8x32xf32>
    tpu.vector_store %arg13[%c0_88, %c0_89], %270 {strides = array<i32>} : memref<8x32xf32, #tpu.memory_space<vmem>>, vector<8x32xf32>,
    %c0_90 = arith.constant 0 : index
    %c0_91 = arith.constant 0 : index
    %272 = vector.load %arg15[%c0_90, %c0_91] : memref<8x32xf32, #tpu.memory_space<vmem>>, vector<8x32xf32>
    %273 = arith.addf %272, %268 : vector<8x32xf32>
    %c0_92 = arith.constant 0 : index
    %c0_93 = arith.constant 0 : index
    %274 = vector.load %arg15[%c0_92, %c0_93] : memref<8x32xf32, #tpu.memory_space<vmem>>, vector<8x32xf32>
    tpu.vector_store %arg15[%c0_92, %c0_93], %273 {strides = array<i32>} : memref<8x32xf32, #tpu.memory_space<vmem>>, vector<8x32xf32>,
    %275 = vector.shape_cast %262 : vector<8x1xi1> to vector<8x1xi1>
    %276 = vector.broadcast %275 : vector<8x1xi1> to vector<8x32xi1>
    %277 = arith.select %276, %260, %170 : vector<8x32xi1>, vector<8x32xf32>
    %278 = vector.shape_cast %262 : vector<8x1xi1> to vector<8x1xi1>
    %279 = vector.broadcast %278 : vector<8x1xi1> to vector<8x32xi1>
    %280 = arith.select %279, %258, %173 : vector<8x32xi1>, vector<8x32xf32>
    %c7_i32_94 = arith.constant 7 : i32
    %281 = arith.subi %c7_i32_94, %c2_i32 : i32
    %282 = arith.truncf %224 : vector<8x32xf32> to vector<8x32xbf16>
    %cst_95 = arith.constant dense<0.000000e+00> : vector<8x128xf32>
    %283 = tpu.matmul %282, %12, %cst_95 {dimension_numbers = #tpu.dot_dimension_numbers<[1], [0], [0], [1], [0, 0, 1, 1], [], []>} : vector<8x32xbf16>, vector<32x128xbf16>, vector<8x128xf32> -> vector<8x128xf32>
    %284 = arith.index_cast %281 : i32 to index
    %c0_96 = arith.constant 0 : index
    %c0_97 = arith.constant 0 : index
    %285 = vector.load %arg1[%284, %c0_96, %c0_97] : memref<8x8x256xbf16, #tpu.memory_space<vmem>>, vector<1x8x256xbf16>
    %286 = vector.shape_cast %285 : vector<1x8x256xbf16> to vector<8x256xbf16>
    %287 = vector.extract_strided_slice %286 {offsets = [0, 128], sizes = [8, 128], strides = [1, 1]} : vector<8x256xbf16> to vector<8x128xbf16>
    %288 = arith.extf %287 : vector<8x128xbf16> to vector<8x128xf32>
    %289 = arith.addf %288, %283 : vector<8x128xf32>
    %290 = vector.extract_strided_slice %289 {offsets = [0, 0], sizes = [8, 32], strides = [1, 1]} : vector<8x128xf32> to vector<8x32xf32>
    %291 = arith.negf %290 : vector<8x32xf32>
    %292 = math.exp %291 : vector<8x32xf32>
    %cst_98 = arith.constant 1.000000e+00 : f32
    %293 = vector.broadcast %cst_98 : f32 to vector<8x32xf32>
    %294 = arith.addf %293, %292 : vector<8x32xf32>
    %295 = arith.divf %293, %294 : vector<8x32xf32>
    %296 = vector.extract_strided_slice %289 {offsets = [0, 32], sizes = [8, 32], strides = [1, 1]} : vector<8x128xf32> to vector<8x32xf32>
    %297 = arith.negf %296 : vector<8x32xf32>
    %298 = math.exp %297 : vector<8x32xf32>
    %cst_99 = arith.constant 1.000000e+00 : f32
    %299 = vector.broadcast %cst_99 : f32 to vector<8x32xf32>
    %300 = arith.addf %299, %298 : vector<8x32xf32>
    %301 = arith.divf %299, %300 : vector<8x32xf32>
    %302 = vector.extract_strided_slice %289 {offsets = [0, 64], sizes = [8, 32], strides = [1, 1]} : vector<8x128xf32> to vector<8x32xf32>
    %303 = math.tanh %302 : vector<8x32xf32>
    %304 = vector.extract_strided_slice %289 {offsets = [0, 96], sizes = [8, 32], strides = [1, 1]} : vector<8x128xf32> to vector<8x32xf32>
    %305 = arith.negf %304 : vector<8x32xf32>
    %306 = math.exp %305 : vector<8x32xf32>
    %cst_100 = arith.constant 1.000000e+00 : f32
    %307 = vector.broadcast %cst_100 : f32 to vector<8x32xf32>
    %308 = arith.addf %307, %306 : vector<8x32xf32>
    %309 = arith.divf %307, %308 : vector<8x32xf32>
    %310 = arith.mulf %301, %227 : vector<8x32xf32>
    %311 = arith.mulf %295, %303 : vector<8x32xf32>
    %312 = arith.addf %310, %311 : vector<8x32xf32>
    %313 = math.tanh %312 : vector<8x32xf32>
    %314 = arith.mulf %309, %313 : vector<8x32xf32>
    %315 = vector.broadcast %281 : i32 to vector<8x1xi32>
    %316 = arith.cmpi sgt, %0, %315 : vector<8x1xi32>
    %cst_101 = arith.constant 0.000000e+00 : f32
    %317 = vector.broadcast %cst_101 : f32 to vector<8x32xf32>
    %318 = arith.maximumf %314, %317 : vector<8x32xf32>
    %319 = arith.extui %316 : vector<8x1xi1> to vector<8x1xi32>
    %320 = arith.sitofp %319 : vector<8x1xi32> to vector<8x1xf32>
    %321 = vector.broadcast %320 : vector<8x1xf32> to vector<8x32xf32>
    %322 = arith.mulf %318, %321 : vector<8x32xf32>
    %c0_102 = arith.constant 0 : index
    %c0_103 = arith.constant 0 : index
    %323 = vector.load %arg14[%c0_102, %c0_103] : memref<8x32xf32, #tpu.memory_space<vmem>>, vector<8x32xf32>
    %324 = arith.maximumf %323, %322 : vector<8x32xf32>
    %c0_104 = arith.constant 0 : index
    %c0_105 = arith.constant 0 : index
    %325 = vector.load %arg14[%c0_104, %c0_105] : memref<8x32xf32, #tpu.memory_space<vmem>>, vector<8x32xf32>
    tpu.vector_store %arg14[%c0_104, %c0_105], %324 {strides = array<i32>} : memref<8x32xf32, #tpu.memory_space<vmem>>, vector<8x32xf32>,
    %c0_106 = arith.constant 0 : index
    %c0_107 = arith.constant 0 : index
    %326 = vector.load %arg16[%c0_106, %c0_107] : memref<8x32xf32, #tpu.memory_space<vmem>>, vector<8x32xf32>
    %327 = arith.addf %326, %322 : vector<8x32xf32>
    %c0_108 = arith.constant 0 : index
    %c0_109 = arith.constant 0 : index
    %328 = vector.load %arg16[%c0_108, %c0_109] : memref<8x32xf32, #tpu.memory_space<vmem>>, vector<8x32xf32>
    tpu.vector_store %arg16[%c0_108, %c0_109], %327 {strides = array<i32>} : memref<8x32xf32, #tpu.memory_space<vmem>>, vector<8x32xf32>,
    %329 = vector.shape_cast %316 : vector<8x1xi1> to vector<8x1xi1>
    %330 = vector.broadcast %329 : vector<8x1xi1> to vector<8x32xi1>
    %331 = arith.select %330, %314, %224 : vector<8x32xi1>, vector<8x32xf32>
    %332 = vector.shape_cast %316 : vector<8x1xi1> to vector<8x1xi1>
    %333 = vector.broadcast %332 : vector<8x1xi1> to vector<8x32xi1>
    %334 = arith.select %333, %312, %227 : vector<8x32xi1>, vector<8x32xf32>
    %c3_i32 = arith.constant 3 : i32
    %335 = arith.truncf %277 : vector<8x32xf32> to vector<8x32xbf16>
    %cst_110 = arith.constant dense<0.000000e+00> : vector<8x128xf32>
    %336 = tpu.matmul %335, %10, %cst_110 {dimension_numbers = #tpu.dot_dimension_numbers<[1], [0], [0], [1], [0, 0, 1, 1], [], []>} : vector<8x32xbf16>, vector<32x128xbf16>, vector<8x128xf32> -> vector<8x128xf32>
    %337 = arith.index_cast %c3_i32 : i32 to index
    %c0_111 = arith.constant 0 : index
    %c0_112 = arith.constant 0 : index
    %338 = vector.load %arg1[%337, %c0_111, %c0_112] : memref<8x8x256xbf16, #tpu.memory_space<vmem>>, vector<1x8x256xbf16>
    %339 = vector.shape_cast %338 : vector<1x8x256xbf16> to vector<8x256xbf16>
    %340 = vector.extract_strided_slice %339 {offsets = [0, 0], sizes = [8, 128], strides = [1, 1]} : vector<8x256xbf16> to vector<8x128xbf16>
    %341 = arith.extf %340 : vector<8x128xbf16> to vector<8x128xf32>
    %342 = arith.addf %341, %336 : vector<8x128xf32>
    %343 = vector.extract_strided_slice %342 {offsets = [0, 0], sizes = [8, 32], strides = [1, 1]} : vector<8x128xf32> to vector<8x32xf32>
    %344 = arith.negf %343 : vector<8x32xf32>
    %345 = math.exp %344 : vector<8x32xf32>
    %cst_113 = arith.constant 1.000000e+00 : f32
    %346 = vector.broadcast %cst_113 : f32 to vector<8x32xf32>
    %347 = arith.addf %346, %345 : vector<8x32xf32>
    %348 = arith.divf %346, %347 : vector<8x32xf32>
    %349 = vector.extract_strided_slice %342 {offsets = [0, 32], sizes = [8, 32], strides = [1, 1]} : vector<8x128xf32> to vector<8x32xf32>
    %350 = arith.negf %349 : vector<8x32xf32>
    %351 = math.exp %350 : vector<8x32xf32>
    %cst_114 = arith.constant 1.000000e+00 : f32
    %352 = vector.broadcast %cst_114 : f32 to vector<8x32xf32>
    %353 = arith.addf %352, %351 : vector<8x32xf32>
    %354 = arith.divf %352, %353 : vector<8x32xf32>
    %355 = vector.extract_strided_slice %342 {offsets = [0, 64], sizes = [8, 32], strides = [1, 1]} : vector<8x128xf32> to vector<8x32xf32>
    %356 = math.tanh %355 : vector<8x32xf32>
    %357 = vector.extract_strided_slice %342 {offsets = [0, 96], sizes = [8, 32], strides = [1, 1]} : vector<8x128xf32> to vector<8x32xf32>
    %358 = arith.negf %357 : vector<8x32xf32>
    %359 = math.exp %358 : vector<8x32xf32>
    %cst_115 = arith.constant 1.000000e+00 : f32
    %360 = vector.broadcast %cst_115 : f32 to vector<8x32xf32>
    %361 = arith.addf %360, %359 : vector<8x32xf32>
    %362 = arith.divf %360, %361 : vector<8x32xf32>
    %363 = arith.mulf %354, %280 : vector<8x32xf32>
    %364 = arith.mulf %348, %356 : vector<8x32xf32>
    %365 = arith.addf %363, %364 : vector<8x32xf32>
    %366 = math.tanh %365 : vector<8x32xf32>
    %367 = arith.mulf %362, %366 : vector<8x32xf32>
    %368 = vector.broadcast %c3_i32 : i32 to vector<8x1xi32>
    %369 = arith.cmpi sgt, %0, %368 : vector<8x1xi32>
    %cst_116 = arith.constant 0.000000e+00 : f32
    %370 = vector.broadcast %cst_116 : f32 to vector<8x32xf32>
    %371 = arith.maximumf %367, %370 : vector<8x32xf32>
    %372 = arith.extui %369 : vector<8x1xi1> to vector<8x1xi32>
    %373 = arith.sitofp %372 : vector<8x1xi32> to vector<8x1xf32>
    %374 = vector.broadcast %373 : vector<8x1xf32> to vector<8x32xf32>
    %375 = arith.mulf %371, %374 : vector<8x32xf32>
    %c0_117 = arith.constant 0 : index
    %c0_118 = arith.constant 0 : index
    %376 = vector.load %arg13[%c0_117, %c0_118] : memref<8x32xf32, #tpu.memory_space<vmem>>, vector<8x32xf32>
    %377 = arith.maximumf %376, %375 : vector<8x32xf32>
    %c0_119 = arith.constant 0 : index
    %c0_120 = arith.constant 0 : index
    %378 = vector.load %arg13[%c0_119, %c0_120] : memref<8x32xf32, #tpu.memory_space<vmem>>, vector<8x32xf32>
    tpu.vector_store %arg13[%c0_119, %c0_120], %377 {strides = array<i32>} : memref<8x32xf32, #tpu.memory_space<vmem>>, vector<8x32xf32>,
    %c0_121 = arith.constant 0 : index
    %c0_122 = arith.constant 0 : index
    %379 = vector.load %arg15[%c0_121, %c0_122] : memref<8x32xf32, #tpu.memory_space<vmem>>, vector<8x32xf32>
    %380 = arith.addf %379, %375 : vector<8x32xf32>
    %c0_123 = arith.constant 0 : index
    %c0_124 = arith.constant 0 : index
    %381 = vector.load %arg15[%c0_123, %c0_124] : memref<8x32xf32, #tpu.memory_space<vmem>>, vector<8x32xf32>
    tpu.vector_store %arg15[%c0_123, %c0_124], %380 {strides = array<i32>} : memref<8x32xf32, #tpu.memory_space<vmem>>, vector<8x32xf32>,
    %382 = vector.shape_cast %369 : vector<8x1xi1> to vector<8x1xi1>
    %383 = vector.broadcast %382 : vector<8x1xi1> to vector<8x32xi1>
    %384 = arith.select %383, %367, %277 : vector<8x32xi1>, vector<8x32xf32>
    %385 = vector.shape_cast %369 : vector<8x1xi1> to vector<8x1xi1>
    %386 = vector.broadcast %385 : vector<8x1xi1> to vector<8x32xi1>
    %387 = arith.select %386, %365, %280 : vector<8x32xi1>, vector<8x32xf32>
    %c7_i32_125 = arith.constant 7 : i32
    %388 = arith.subi %c7_i32_125, %c3_i32 : i32
    %389 = arith.truncf %331 : vector<8x32xf32> to vector<8x32xbf16>
    %cst_126 = arith.constant dense<0.000000e+00> : vector<8x128xf32>
    %390 = tpu.matmul %389, %12, %cst_126 {dimension_numbers = #tpu.dot_dimension_numbers<[1], [0], [0], [1], [0, 0, 1, 1], [], []>} : vector<8x32xbf16>, vector<32x128xbf16>, vector<8x128xf32> -> vector<8x128xf32>
    %391 = arith.index_cast %388 : i32 to index
    %c0_127 = arith.constant 0 : index
    %c0_128 = arith.constant 0 : index
    %392 = vector.load %arg1[%391, %c0_127, %c0_128] : memref<8x8x256xbf16, #tpu.memory_space<vmem>>, vector<1x8x256xbf16>
    %393 = vector.shape_cast %392 : vector<1x8x256xbf16> to vector<8x256xbf16>
    %394 = vector.extract_strided_slice %393 {offsets = [0, 128], sizes = [8, 128], strides = [1, 1]} : vector<8x256xbf16> to vector<8x128xbf16>
    %395 = arith.extf %394 : vector<8x128xbf16> to vector<8x128xf32>
    %396 = arith.addf %395, %390 : vector<8x128xf32>
    %397 = vector.extract_strided_slice %396 {offsets = [0, 0], sizes = [8, 32], strides = [1, 1]} : vector<8x128xf32> to vector<8x32xf32>
    %398 = arith.negf %397 : vector<8x32xf32>
    %399 = math.exp %398 : vector<8x32xf32>
    %cst_129 = arith.constant 1.000000e+00 : f32
    %400 = vector.broadcast %cst_129 : f32 to vector<8x32xf32>
    %401 = arith.addf %400, %399 : vector<8x32xf32>
    %402 = arith.divf %400, %401 : vector<8x32xf32>
    %403 = vector.extract_strided_slice %396 {offsets = [0, 32], sizes = [8, 32], strides = [1, 1]} : vector<8x128xf32> to vector<8x32xf32>
    %404 = arith.negf %403 : vector<8x32xf32>
    %405 = math.exp %404 : vector<8x32xf32>
    %cst_130 = arith.constant 1.000000e+00 : f32
    %406 = vector.broadcast %cst_130 : f32 to vector<8x32xf32>
    %407 = arith.addf %406, %405 : vector<8x32xf32>
    %408 = arith.divf %406, %407 : vector<8x32xf32>
    %409 = vector.extract_strided_slice %396 {offsets = [0, 64], sizes = [8, 32], strides = [1, 1]} : vector<8x128xf32> to vector<8x32xf32>
    %410 = math.tanh %409 : vector<8x32xf32>
    %411 = vector.extract_strided_slice %396 {offsets = [0, 96], sizes = [8, 32], strides = [1, 1]} : vector<8x128xf32> to vector<8x32xf32>
    %412 = arith.negf %411 : vector<8x32xf32>
    %413 = math.exp %412 : vector<8x32xf32>
    %cst_131 = arith.constant 1.000000e+00 : f32
    %414 = vector.broadcast %cst_131 : f32 to vector<8x32xf32>
    %415 = arith.addf %414, %413 : vector<8x32xf32>
    %416 = arith.divf %414, %415 : vector<8x32xf32>
    %417 = arith.mulf %408, %334 : vector<8x32xf32>
    %418 = arith.mulf %402, %410 : vector<8x32xf32>
    %419 = arith.addf %417, %418 : vector<8x32xf32>
    %420 = math.tanh %419 : vector<8x32xf32>
    %421 = arith.mulf %416, %420 : vector<8x32xf32>
    %422 = vector.broadcast %388 : i32 to vector<8x1xi32>
    %423 = arith.cmpi sgt, %0, %422 : vector<8x1xi32>
    %cst_132 = arith.constant 0.000000e+00 : f32
    %424 = vector.broadcast %cst_132 : f32 to vector<8x32xf32>
    %425 = arith.maximumf %421, %424 : vector<8x32xf32>
    %426 = arith.extui %423 : vector<8x1xi1> to vector<8x1xi32>
    %427 = arith.sitofp %426 : vector<8x1xi32> to vector<8x1xf32>
    %428 = vector.broadcast %427 : vector<8x1xf32> to vector<8x32xf32>
    %429 = arith.mulf %425, %428 : vector<8x32xf32>
    %c0_133 = arith.constant 0 : index
    %c0_134 = arith.constant 0 : index
    %430 = vector.load %arg14[%c0_133, %c0_134] : memref<8x32xf32, #tpu.memory_space<vmem>>, vector<8x32xf32>
    %431 = arith.maximumf %430, %429 : vector<8x32xf32>
    %c0_135 = arith.constant 0 : index
    %c0_136 = arith.constant 0 : index
    %432 = vector.load %arg14[%c0_135, %c0_136] : memref<8x32xf32, #tpu.memory_space<vmem>>, vector<8x32xf32>
    tpu.vector_store %arg14[%c0_135, %c0_136], %431 {strides = array<i32>} : memref<8x32xf32, #tpu.memory_space<vmem>>, vector<8x32xf32>,
    %c0_137 = arith.constant 0 : index
    %c0_138 = arith.constant 0 : index
    %433 = vector.load %arg16[%c0_137, %c0_138] : memref<8x32xf32, #tpu.memory_space<vmem>>, vector<8x32xf32>
    %434 = arith.addf %433, %429 : vector<8x32xf32>
    %c0_139 = arith.constant 0 : index
    %c0_140 = arith.constant 0 : index
    %435 = vector.load %arg16[%c0_139, %c0_140] : memref<8x32xf32, #tpu.memory_space<vmem>>, vector<8x32xf32>
    tpu.vector_store %arg16[%c0_139, %c0_140], %434 {strides = array<i32>} : memref<8x32xf32, #tpu.memory_space<vmem>>, vector<8x32xf32>,
    %436 = vector.shape_cast %423 : vector<8x1xi1> to vector<8x1xi1>
    %437 = vector.broadcast %436 : vector<8x1xi1> to vector<8x32xi1>
    %438 = arith.select %437, %421, %331 : vector<8x32xi1>, vector<8x32xf32>
    %439 = vector.shape_cast %423 : vector<8x1xi1> to vector<8x1xi1>
    %440 = vector.broadcast %439 : vector<8x1xi1> to vector<8x32xi1>
    %441 = arith.select %440, %419, %334 : vector<8x32xi1>, vector<8x32xf32>
    %c4_i32 = arith.constant 4 : i32
    %442 = arith.truncf %384 : vector<8x32xf32> to vector<8x32xbf16>
    %cst_141 = arith.constant dense<0.000000e+00> : vector<8x128xf32>
    %443 = tpu.matmul %442, %10, %cst_141 {dimension_numbers = #tpu.dot_dimension_numbers<[1], [0], [0], [1], [0, 0, 1, 1], [], []>} : vector<8x32xbf16>, vector<32x128xbf16>, vector<8x128xf32> -> vector<8x128xf32>
    %444 = arith.index_cast %c4_i32 : i32 to index
    %c0_142 = arith.constant 0 : index
    %c0_143 = arith.constant 0 : index
    %445 = vector.load %arg1[%444, %c0_142, %c0_143] : memref<8x8x256xbf16, #tpu.memory_space<vmem>>, vector<1x8x256xbf16>
    %446 = vector.shape_cast %445 : vector<1x8x256xbf16> to vector<8x256xbf16>
    %447 = vector.extract_strided_slice %446 {offsets = [0, 0], sizes = [8, 128], strides = [1, 1]} : vector<8x256xbf16> to vector<8x128xbf16>
    %448 = arith.extf %447 : vector<8x128xbf16> to vector<8x128xf32>
    %449 = arith.addf %448, %443 : vector<8x128xf32>
    %450 = vector.extract_strided_slice %449 {offsets = [0, 0], sizes = [8, 32], strides = [1, 1]} : vector<8x128xf32> to vector<8x32xf32>
    %451 = arith.negf %450 : vector<8x32xf32>
    %452 = math.exp %451 : vector<8x32xf32>
    %cst_144 = arith.constant 1.000000e+00 : f32
    %453 = vector.broadcast %cst_144 : f32 to vector<8x32xf32>
    %454 = arith.addf %453, %452 : vector<8x32xf32>
    %455 = arith.divf %453, %454 : vector<8x32xf32>
    %456 = vector.extract_strided_slice %449 {offsets = [0, 32], sizes = [8, 32], strides = [1, 1]} : vector<8x128xf32> to vector<8x32xf32>
    %457 = arith.negf %456 : vector<8x32xf32>
    %458 = math.exp %457 : vector<8x32xf32>
    %cst_145 = arith.constant 1.000000e+00 : f32
    %459 = vector.broadcast %cst_145 : f32 to vector<8x32xf32>
    %460 = arith.addf %459, %458 : vector<8x32xf32>
    %461 = arith.divf %459, %460 : vector<8x32xf32>
    %462 = vector.extract_strided_slice %449 {offsets = [0, 64], sizes = [8, 32], strides = [1, 1]} : vector<8x128xf32> to vector<8x32xf32>
    %463 = math.tanh %462 : vector<8x32xf32>
    %464 = vector.extract_strided_slice %449 {offsets = [0, 96], sizes = [8, 32], strides = [1, 1]} : vector<8x128xf32> to vector<8x32xf32>
    %465 = arith.negf %464 : vector<8x32xf32>
    %466 = math.exp %465 : vector<8x32xf32>
    %cst_146 = arith.constant 1.000000e+00 : f32
    %467 = vector.broadcast %cst_146 : f32 to vector<8x32xf32>
    %468 = arith.addf %467, %466 : vector<8x32xf32>
    %469 = arith.divf %467, %468 : vector<8x32xf32>
    %470 = arith.mulf %461, %387 : vector<8x32xf32>
    %471 = arith.mulf %455, %463 : vector<8x32xf32>
    %472 = arith.addf %470, %471 : vector<8x32xf32>
    %473 = math.tanh %472 : vector<8x32xf32>
    %474 = arith.mulf %469, %473 : vector<8x32xf32>
    %475 = vector.broadcast %c4_i32 : i32 to vector<8x1xi32>
    %476 = arith.cmpi sgt, %0, %475 : vector<8x1xi32>
    %cst_147 = arith.constant 0.000000e+00 : f32
    %477 = vector.broadcast %cst_147 : f32 to vector<8x32xf32>
    %478 = arith.maximumf %474, %477 : vector<8x32xf32>
    %479 = arith.extui %476 : vector<8x1xi1> to vector<8x1xi32>
    %480 = arith.sitofp %479 : vector<8x1xi32> to vector<8x1xf32>
    %481 = vector.broadcast %480 : vector<8x1xf32> to vector<8x32xf32>
    %482 = arith.mulf %478, %481 : vector<8x32xf32>
    %c0_148 = arith.constant 0 : index
    %c0_149 = arith.constant 0 : index
    %483 = vector.load %arg13[%c0_148, %c0_149] : memref<8x32xf32, #tpu.memory_space<vmem>>, vector<8x32xf32>
    %484 = arith.maximumf %483, %482 : vector<8x32xf32>
    %c0_150 = arith.constant 0 : index
    %c0_151 = arith.constant 0 : index
    %485 = vector.load %arg13[%c0_150, %c0_151] : memref<8x32xf32, #tpu.memory_space<vmem>>, vector<8x32xf32>
    tpu.vector_store %arg13[%c0_150, %c0_151], %484 {strides = array<i32>} : memref<8x32xf32, #tpu.memory_space<vmem>>, vector<8x32xf32>,
    %c0_152 = arith.constant 0 : index
    %c0_153 = arith.constant 0 : index
    %486 = vector.load %arg15[%c0_152, %c0_153] : memref<8x32xf32, #tpu.memory_space<vmem>>, vector<8x32xf32>
    %487 = arith.addf %486, %482 : vector<8x32xf32>
    %c0_154 = arith.constant 0 : index
    %c0_155 = arith.constant 0 : index
    %488 = vector.load %arg15[%c0_154, %c0_155] : memref<8x32xf32, #tpu.memory_space<vmem>>, vector<8x32xf32>
    tpu.vector_store %arg15[%c0_154, %c0_155], %487 {strides = array<i32>} : memref<8x32xf32, #tpu.memory_space<vmem>>, vector<8x32xf32>,
    %489 = vector.shape_cast %476 : vector<8x1xi1> to vector<8x1xi1>
    %490 = vector.broadcast %489 : vector<8x1xi1> to vector<8x32xi1>
    %491 = arith.select %490, %474, %384 : vector<8x32xi1>, vector<8x32xf32>
    %492 = vector.shape_cast %476 : vector<8x1xi1> to vector<8x1xi1>
    %493 = vector.broadcast %492 : vector<8x1xi1> to vector<8x32xi1>
    %494 = arith.select %493, %472, %387 : vector<8x32xi1>, vector<8x32xf32>
    %c7_i32_156 = arith.constant 7 : i32
    %495 = arith.subi %c7_i32_156, %c4_i32 : i32
    %496 = arith.truncf %438 : vector<8x32xf32> to vector<8x32xbf16>
    %cst_157 = arith.constant dense<0.000000e+00> : vector<8x128xf32>
    %497 = tpu.matmul %496, %12, %cst_157 {dimension_numbers = #tpu.dot_dimension_numbers<[1], [0], [0], [1], [0, 0, 1, 1], [], []>} : vector<8x32xbf16>, vector<32x128xbf16>, vector<8x128xf32> -> vector<8x128xf32>
    %498 = arith.index_cast %495 : i32 to index
    %c0_158 = arith.constant 0 : index
    %c0_159 = arith.constant 0 : index
    %499 = vector.load %arg1[%498, %c0_158, %c0_159] : memref<8x8x256xbf16, #tpu.memory_space<vmem>>, vector<1x8x256xbf16>
    %500 = vector.shape_cast %499 : vector<1x8x256xbf16> to vector<8x256xbf16>
    %501 = vector.extract_strided_slice %500 {offsets = [0, 128], sizes = [8, 128], strides = [1, 1]} : vector<8x256xbf16> to vector<8x128xbf16>
    %502 = arith.extf %501 : vector<8x128xbf16> to vector<8x128xf32>
    %503 = arith.addf %502, %497 : vector<8x128xf32>
    %504 = vector.extract_strided_slice %503 {offsets = [0, 0], sizes = [8, 32], strides = [1, 1]} : vector<8x128xf32> to vector<8x32xf32>
    %505 = arith.negf %504 : vector<8x32xf32>
    %506 = math.exp %505 : vector<8x32xf32>
    %cst_160 = arith.constant 1.000000e+00 : f32
    %507 = vector.broadcast %cst_160 : f32 to vector<8x32xf32>
    %508 = arith.addf %507, %506 : vector<8x32xf32>
    %509 = arith.divf %507, %508 : vector<8x32xf32>
    %510 = vector.extract_strided_slice %503 {offsets = [0, 32], sizes = [8, 32], strides = [1, 1]} : vector<8x128xf32> to vector<8x32xf32>
    %511 = arith.negf %510 : vector<8x32xf32>
    %512 = math.exp %511 : vector<8x32xf32>
    %cst_161 = arith.constant 1.000000e+00 : f32
    %513 = vector.broadcast %cst_161 : f32 to vector<8x32xf32>
    %514 = arith.addf %513, %512 : vector<8x32xf32>
    %515 = arith.divf %513, %514 : vector<8x32xf32>
    %516 = vector.extract_strided_slice %503 {offsets = [0, 64], sizes = [8, 32], strides = [1, 1]} : vector<8x128xf32> to vector<8x32xf32>
    %517 = math.tanh %516 : vector<8x32xf32>
    %518 = vector.extract_strided_slice %503 {offsets = [0, 96], sizes = [8, 32], strides = [1, 1]} : vector<8x128xf32> to vector<8x32xf32>
    %519 = arith.negf %518 : vector<8x32xf32>
    %520 = math.exp %519 : vector<8x32xf32>
    %cst_162 = arith.constant 1.000000e+00 : f32
    %521 = vector.broadcast %cst_162 : f32 to vector<8x32xf32>
    %522 = arith.addf %521, %520 : vector<8x32xf32>
    %523 = arith.divf %521, %522 : vector<8x32xf32>
    %524 = arith.mulf %515, %441 : vector<8x32xf32>
    %525 = arith.mulf %509, %517 : vector<8x32xf32>
    %526 = arith.addf %524, %525 : vector<8x32xf32>
    %527 = math.tanh %526 : vector<8x32xf32>
    %528 = arith.mulf %523, %527 : vector<8x32xf32>
    %529 = vector.broadcast %495 : i32 to vector<8x1xi32>
    %530 = arith.cmpi sgt, %0, %529 : vector<8x1xi32>
    %cst_163 = arith.constant 0.000000e+00 : f32
    %531 = vector.broadcast %cst_163 : f32 to vector<8x32xf32>
    %532 = arith.maximumf %528, %531 : vector<8x32xf32>
    %533 = arith.extui %530 : vector<8x1xi1> to vector<8x1xi32>
    %534 = arith.sitofp %533 : vector<8x1xi32> to vector<8x1xf32>
    %535 = vector.broadcast %534 : vector<8x1xf32> to vector<8x32xf32>
    %536 = arith.mulf %532, %535 : vector<8x32xf32>
    %c0_164 = arith.constant 0 : index
    %c0_165 = arith.constant 0 : index
    %537 = vector.load %arg14[%c0_164, %c0_165] : memref<8x32xf32, #tpu.memory_space<vmem>>, vector<8x32xf32>
    %538 = arith.maximumf %537, %536 : vector<8x32xf32>
    %c0_166 = arith.constant 0 : index
    %c0_167 = arith.constant 0 : index
    %539 = vector.load %arg14[%c0_166, %c0_167] : memref<8x32xf32, #tpu.memory_space<vmem>>, vector<8x32xf32>
    tpu.vector_store %arg14[%c0_166, %c0_167], %538 {strides = array<i32>} : memref<8x32xf32, #tpu.memory_space<vmem>>, vector<8x32xf32>,
    %c0_168 = arith.constant 0 : index
    %c0_169 = arith.constant 0 : index
    %540 = vector.load %arg16[%c0_168, %c0_169] : memref<8x32xf32, #tpu.memory_space<vmem>>, vector<8x32xf32>
    %541 = arith.addf %540, %536 : vector<8x32xf32>
    %c0_170 = arith.constant 0 : index
    %c0_171 = arith.constant 0 : index
    %542 = vector.load %arg16[%c0_170, %c0_171] : memref<8x32xf32, #tpu.memory_space<vmem>>, vector<8x32xf32>
    tpu.vector_store %arg16[%c0_170, %c0_171], %541 {strides = array<i32>} : memref<8x32xf32, #tpu.memory_space<vmem>>, vector<8x32xf32>,
    %543 = vector.shape_cast %530 : vector<8x1xi1> to vector<8x1xi1>
    %544 = vector.broadcast %543 : vector<8x1xi1> to vector<8x32xi1>
    %545 = arith.select %544, %528, %438 : vector<8x32xi1>, vector<8x32xf32>
    %546 = vector.shape_cast %530 : vector<8x1xi1> to vector<8x1xi1>
    %547 = vector.broadcast %546 : vector<8x1xi1> to vector<8x32xi1>
    %548 = arith.select %547, %526, %441 : vector<8x32xi1>, vector<8x32xf32>
    %c5_i32 = arith.constant 5 : i32
    %549 = arith.truncf %491 : vector<8x32xf32> to vector<8x32xbf16>
    %cst_172 = arith.constant dense<0.000000e+00> : vector<8x128xf32>
    %550 = tpu.matmul %549, %10, %cst_172 {dimension_numbers = #tpu.dot_dimension_numbers<[1], [0], [0], [1], [0, 0, 1, 1], [], []>} : vector<8x32xbf16>, vector<32x128xbf16>, vector<8x128xf32> -> vector<8x128xf32>
    %551 = arith.index_cast %c5_i32 : i32 to index
    %c0_173 = arith.constant 0 : index
    %c0_174 = arith.constant 0 : index
    %552 = vector.load %arg1[%551, %c0_173, %c0_174] : memref<8x8x256xbf16, #tpu.memory_space<vmem>>, vector<1x8x256xbf16>
    %553 = vector.shape_cast %552 : vector<1x8x256xbf16> to vector<8x256xbf16>
    %554 = vector.extract_strided_slice %553 {offsets = [0, 0], sizes = [8, 128], strides = [1, 1]} : vector<8x256xbf16> to vector<8x128xbf16>
    %555 = arith.extf %554 : vector<8x128xbf16> to vector<8x128xf32>
    %556 = arith.addf %555, %550 : vector<8x128xf32>
    %557 = vector.extract_strided_slice %556 {offsets = [0, 0], sizes = [8, 32], strides = [1, 1]} : vector<8x128xf32> to vector<8x32xf32>
    %558 = arith.negf %557 : vector<8x32xf32>
    %559 = math.exp %558 : vector<8x32xf32>
    %cst_175 = arith.constant 1.000000e+00 : f32
    %560 = vector.broadcast %cst_175 : f32 to vector<8x32xf32>
    %561 = arith.addf %560, %559 : vector<8x32xf32>
    %562 = arith.divf %560, %561 : vector<8x32xf32>
    %563 = vector.extract_strided_slice %556 {offsets = [0, 32], sizes = [8, 32], strides = [1, 1]} : vector<8x128xf32> to vector<8x32xf32>
    %564 = arith.negf %563 : vector<8x32xf32>
    %565 = math.exp %564 : vector<8x32xf32>
    %cst_176 = arith.constant 1.000000e+00 : f32
    %566 = vector.broadcast %cst_176 : f32 to vector<8x32xf32>
    %567 = arith.addf %566, %565 : vector<8x32xf32>
    %568 = arith.divf %566, %567 : vector<8x32xf32>
    %569 = vector.extract_strided_slice %556 {offsets = [0, 64], sizes = [8, 32], strides = [1, 1]} : vector<8x128xf32> to vector<8x32xf32>
    %570 = math.tanh %569 : vector<8x32xf32>
    %571 = vector.extract_strided_slice %556 {offsets = [0, 96], sizes = [8, 32], strides = [1, 1]} : vector<8x128xf32> to vector<8x32xf32>
    %572 = arith.negf %571 : vector<8x32xf32>
    %573 = math.exp %572 : vector<8x32xf32>
    %cst_177 = arith.constant 1.000000e+00 : f32
    %574 = vector.broadcast %cst_177 : f32 to vector<8x32xf32>
    %575 = arith.addf %574, %573 : vector<8x32xf32>
    %576 = arith.divf %574, %575 : vector<8x32xf32>
    %577 = arith.mulf %568, %494 : vector<8x32xf32>
    %578 = arith.mulf %562, %570 : vector<8x32xf32>
    %579 = arith.addf %577, %578 : vector<8x32xf32>
    %580 = math.tanh %579 : vector<8x32xf32>
    %581 = arith.mulf %576, %580 : vector<8x32xf32>
    %582 = vector.broadcast %c5_i32 : i32 to vector<8x1xi32>
    %583 = arith.cmpi sgt, %0, %582 : vector<8x1xi32>
    %cst_178 = arith.constant 0.000000e+00 : f32
    %584 = vector.broadcast %cst_178 : f32 to vector<8x32xf32>
    %585 = arith.maximumf %581, %584 : vector<8x32xf32>
    %586 = arith.extui %583 : vector<8x1xi1> to vector<8x1xi32>
    %587 = arith.sitofp %586 : vector<8x1xi32> to vector<8x1xf32>
    %588 = vector.broadcast %587 : vector<8x1xf32> to vector<8x32xf32>
    %589 = arith.mulf %585, %588 : vector<8x32xf32>
    %c0_179 = arith.constant 0 : index
    %c0_180 = arith.constant 0 : index
    %590 = vector.load %arg13[%c0_179, %c0_180] : memref<8x32xf32, #tpu.memory_space<vmem>>, vector<8x32xf32>
    %591 = arith.maximumf %590, %589 : vector<8x32xf32>
    %c0_181 = arith.constant 0 : index
    %c0_182 = arith.constant 0 : index
    %592 = vector.load %arg13[%c0_181, %c0_182] : memref<8x32xf32, #tpu.memory_space<vmem>>, vector<8x32xf32>
    tpu.vector_store %arg13[%c0_181, %c0_182], %591 {strides = array<i32>} : memref<8x32xf32, #tpu.memory_space<vmem>>, vector<8x32xf32>,
    %c0_183 = arith.constant 0 : index
    %c0_184 = arith.constant 0 : index
    %593 = vector.load %arg15[%c0_183, %c0_184] : memref<8x32xf32, #tpu.memory_space<vmem>>, vector<8x32xf32>
    %594 = arith.addf %593, %589 : vector<8x32xf32>
    %c0_185 = arith.constant 0 : index
    %c0_186 = arith.constant 0 : index
    %595 = vector.load %arg15[%c0_185, %c0_186] : memref<8x32xf32, #tpu.memory_space<vmem>>, vector<8x32xf32>
    tpu.vector_store %arg15[%c0_185, %c0_186], %594 {strides = array<i32>} : memref<8x32xf32, #tpu.memory_space<vmem>>, vector<8x32xf32>,
    %596 = vector.shape_cast %583 : vector<8x1xi1> to vector<8x1xi1>
    %597 = vector.broadcast %596 : vector<8x1xi1> to vector<8x32xi1>
    %598 = arith.select %597, %581, %491 : vector<8x32xi1>, vector<8x32xf32>
    %599 = vector.shape_cast %583 : vector<8x1xi1> to vector<8x1xi1>
    %600 = vector.broadcast %599 : vector<8x1xi1> to vector<8x32xi1>
    %601 = arith.select %600, %579, %494 : vector<8x32xi1>, vector<8x32xf32>
    %c7_i32_187 = arith.constant 7 : i32
    %602 = arith.subi %c7_i32_187, %c5_i32 : i32
    %603 = arith.truncf %545 : vector<8x32xf32> to vector<8x32xbf16>
    %cst_188 = arith.constant dense<0.000000e+00> : vector<8x128xf32>
    %604 = tpu.matmul %603, %12, %cst_188 {dimension_numbers = #tpu.dot_dimension_numbers<[1], [0], [0], [1], [0, 0, 1, 1], [], []>} : vector<8x32xbf16>, vector<32x128xbf16>, vector<8x128xf32> -> vector<8x128xf32>
    %605 = arith.index_cast %602 : i32 to index
    %c0_189 = arith.constant 0 : index
    %c0_190 = arith.constant 0 : index
    %606 = vector.load %arg1[%605, %c0_189, %c0_190] : memref<8x8x256xbf16, #tpu.memory_space<vmem>>, vector<1x8x256xbf16>
    %607 = vector.shape_cast %606 : vector<1x8x256xbf16> to vector<8x256xbf16>
    %608 = vector.extract_strided_slice %607 {offsets = [0, 128], sizes = [8, 128], strides = [1, 1]} : vector<8x256xbf16> to vector<8x128xbf16>
    %609 = arith.extf %608 : vector<8x128xbf16> to vector<8x128xf32>
    %610 = arith.addf %609, %604 : vector<8x128xf32>
    %611 = vector.extract_strided_slice %610 {offsets = [0, 0], sizes = [8, 32], strides = [1, 1]} : vector<8x128xf32> to vector<8x32xf32>
    %612 = arith.negf %611 : vector<8x32xf32>
    %613 = math.exp %612 : vector<8x32xf32>
    %cst_191 = arith.constant 1.000000e+00 : f32
    %614 = vector.broadcast %cst_191 : f32 to vector<8x32xf32>
    %615 = arith.addf %614, %613 : vector<8x32xf32>
    %616 = arith.divf %614, %615 : vector<8x32xf32>
    %617 = vector.extract_strided_slice %610 {offsets = [0, 32], sizes = [8, 32], strides = [1, 1]} : vector<8x128xf32> to vector<8x32xf32>
    %618 = arith.negf %617 : vector<8x32xf32>
    %619 = math.exp %618 : vector<8x32xf32>
    %cst_192 = arith.constant 1.000000e+00 : f32
    %620 = vector.broadcast %cst_192 : f32 to vector<8x32xf32>
    %621 = arith.addf %620, %619 : vector<8x32xf32>
    %622 = arith.divf %620, %621 : vector<8x32xf32>
    %623 = vector.extract_strided_slice %610 {offsets = [0, 64], sizes = [8, 32], strides = [1, 1]} : vector<8x128xf32> to vector<8x32xf32>
    %624 = math.tanh %623 : vector<8x32xf32>
    %625 = vector.extract_strided_slice %610 {offsets = [0, 96], sizes = [8, 32], strides = [1, 1]} : vector<8x128xf32> to vector<8x32xf32>
    %626 = arith.negf %625 : vector<8x32xf32>
    %627 = math.exp %626 : vector<8x32xf32>
    %cst_193 = arith.constant 1.000000e+00 : f32
    %628 = vector.broadcast %cst_193 : f32 to vector<8x32xf32>
    %629 = arith.addf %628, %627 : vector<8x32xf32>
    %630 = arith.divf %628, %629 : vector<8x32xf32>
    %631 = arith.mulf %622, %548 : vector<8x32xf32>
    %632 = arith.mulf %616, %624 : vector<8x32xf32>
    %633 = arith.addf %631, %632 : vector<8x32xf32>
    %634 = math.tanh %633 : vector<8x32xf32>
    %635 = arith.mulf %630, %634 : vector<8x32xf32>
    %636 = vector.broadcast %602 : i32 to vector<8x1xi32>
    %637 = arith.cmpi sgt, %0, %636 : vector<8x1xi32>
    %cst_194 = arith.constant 0.000000e+00 : f32
    %638 = vector.broadcast %cst_194 : f32 to vector<8x32xf32>
    %639 = arith.maximumf %635, %638 : vector<8x32xf32>
    %640 = arith.extui %637 : vector<8x1xi1> to vector<8x1xi32>
    %641 = arith.sitofp %640 : vector<8x1xi32> to vector<8x1xf32>
    %642 = vector.broadcast %641 : vector<8x1xf32> to vector<8x32xf32>
    %643 = arith.mulf %639, %642 : vector<8x32xf32>
    %c0_195 = arith.constant 0 : index
    %c0_196 = arith.constant 0 : index
    %644 = vector.load %arg14[%c0_195, %c0_196] : memref<8x32xf32, #tpu.memory_space<vmem>>, vector<8x32xf32>
    %645 = arith.maximumf %644, %643 : vector<8x32xf32>
    %c0_197 = arith.constant 0 : index
    %c0_198 = arith.constant 0 : index
    %646 = vector.load %arg14[%c0_197, %c0_198] : memref<8x32xf32, #tpu.memory_space<vmem>>, vector<8x32xf32>
    tpu.vector_store %arg14[%c0_197, %c0_198], %645 {strides = array<i32>} : memref<8x32xf32, #tpu.memory_space<vmem>>, vector<8x32xf32>,
    %c0_199 = arith.constant 0 : index
    %c0_200 = arith.constant 0 : index
    %647 = vector.load %arg16[%c0_199, %c0_200] : memref<8x32xf32, #tpu.memory_space<vmem>>, vector<8x32xf32>
    %648 = arith.addf %647, %643 : vector<8x32xf32>
    %c0_201 = arith.constant 0 : index
    %c0_202 = arith.constant 0 : index
    %649 = vector.load %arg16[%c0_201, %c0_202] : memref<8x32xf32, #tpu.memory_space<vmem>>, vector<8x32xf32>
    tpu.vector_store %arg16[%c0_201, %c0_202], %648 {strides = array<i32>} : memref<8x32xf32, #tpu.memory_space<vmem>>, vector<8x32xf32>,
    %650 = vector.shape_cast %637 : vector<8x1xi1> to vector<8x1xi1>
    %651 = vector.broadcast %650 : vector<8x1xi1> to vector<8x32xi1>
    %652 = arith.select %651, %635, %545 : vector<8x32xi1>, vector<8x32xf32>
    %653 = vector.shape_cast %637 : vector<8x1xi1> to vector<8x1xi1>
    %654 = vector.broadcast %653 : vector<8x1xi1> to vector<8x32xi1>
    %655 = arith.select %654, %633, %548 : vector<8x32xi1>, vector<8x32xf32>
    %c6_i32 = arith.constant 6 : i32
    %656 = arith.truncf %598 : vector<8x32xf32> to vector<8x32xbf16>
    %cst_203 = arith.constant dense<0.000000e+00> : vector<8x128xf32>
    %657 = tpu.matmul %656, %10, %cst_203 {dimension_numbers = #tpu.dot_dimension_numbers<[1], [0], [0], [1], [0, 0, 1, 1], [], []>} : vector<8x32xbf16>, vector<32x128xbf16>, vector<8x128xf32> -> vector<8x128xf32>
    %658 = arith.index_cast %c6_i32 : i32 to index
    %c0_204 = arith.constant 0 : index
    %c0_205 = arith.constant 0 : index
    %659 = vector.load %arg1[%658, %c0_204, %c0_205] : memref<8x8x256xbf16, #tpu.memory_space<vmem>>, vector<1x8x256xbf16>
    %660 = vector.shape_cast %659 : vector<1x8x256xbf16> to vector<8x256xbf16>
    %661 = vector.extract_strided_slice %660 {offsets = [0, 0], sizes = [8, 128], strides = [1, 1]} : vector<8x256xbf16> to vector<8x128xbf16>
    %662 = arith.extf %661 : vector<8x128xbf16> to vector<8x128xf32>
    %663 = arith.addf %662, %657 : vector<8x128xf32>
    %664 = vector.extract_strided_slice %663 {offsets = [0, 0], sizes = [8, 32], strides = [1, 1]} : vector<8x128xf32> to vector<8x32xf32>
    %665 = arith.negf %664 : vector<8x32xf32>
    %666 = math.exp %665 : vector<8x32xf32>
    %cst_206 = arith.constant 1.000000e+00 : f32
    %667 = vector.broadcast %cst_206 : f32 to vector<8x32xf32>
    %668 = arith.addf %667, %666 : vector<8x32xf32>
    %669 = arith.divf %667, %668 : vector<8x32xf32>
    %670 = vector.extract_strided_slice %663 {offsets = [0, 32], sizes = [8, 32], strides = [1, 1]} : vector<8x128xf32> to vector<8x32xf32>
    %671 = arith.negf %670 : vector<8x32xf32>
    %672 = math.exp %671 : vector<8x32xf32>
    %cst_207 = arith.constant 1.000000e+00 : f32
    %673 = vector.broadcast %cst_207 : f32 to vector<8x32xf32>
    %674 = arith.addf %673, %672 : vector<8x32xf32>
    %675 = arith.divf %673, %674 : vector<8x32xf32>
    %676 = vector.extract_strided_slice %663 {offsets = [0, 64], sizes = [8, 32], strides = [1, 1]} : vector<8x128xf32> to vector<8x32xf32>
    %677 = math.tanh %676 : vector<8x32xf32>
    %678 = vector.extract_strided_slice %663 {offsets = [0, 96], sizes = [8, 32], strides = [1, 1]} : vector<8x128xf32> to vector<8x32xf32>
    %679 = arith.negf %678 : vector<8x32xf32>
    %680 = math.exp %679 : vector<8x32xf32>
    %cst_208 = arith.constant 1.000000e+00 : f32
    %681 = vector.broadcast %cst_208 : f32 to vector<8x32xf32>
    %682 = arith.addf %681, %680 : vector<8x32xf32>
    %683 = arith.divf %681, %682 : vector<8x32xf32>
    %684 = arith.mulf %675, %601 : vector<8x32xf32>
    %685 = arith.mulf %669, %677 : vector<8x32xf32>
    %686 = arith.addf %684, %685 : vector<8x32xf32>
    %687 = math.tanh %686 : vector<8x32xf32>
    %688 = arith.mulf %683, %687 : vector<8x32xf32>
    %689 = vector.broadcast %c6_i32 : i32 to vector<8x1xi32>
    %690 = arith.cmpi sgt, %0, %689 : vector<8x1xi32>
    %cst_209 = arith.constant 0.000000e+00 : f32
    %691 = vector.broadcast %cst_209 : f32 to vector<8x32xf32>
    %692 = arith.maximumf %688, %691 : vector<8x32xf32>
    %693 = arith.extui %690 : vector<8x1xi1> to vector<8x1xi32>
    %694 = arith.sitofp %693 : vector<8x1xi32> to vector<8x1xf32>
    %695 = vector.broadcast %694 : vector<8x1xf32> to vector<8x32xf32>
    %696 = arith.mulf %692, %695 : vector<8x32xf32>
    %c0_210 = arith.constant 0 : index
    %c0_211 = arith.constant 0 : index
    %697 = vector.load %arg13[%c0_210, %c0_211] : memref<8x32xf32, #tpu.memory_space<vmem>>, vector<8x32xf32>
    %698 = arith.maximumf %697, %696 : vector<8x32xf32>
    %c0_212 = arith.constant 0 : index
    %c0_213 = arith.constant 0 : index
    %699 = vector.load %arg13[%c0_212, %c0_213] : memref<8x32xf32, #tpu.memory_space<vmem>>, vector<8x32xf32>
    tpu.vector_store %arg13[%c0_212, %c0_213], %698 {strides = array<i32>} : memref<8x32xf32, #tpu.memory_space<vmem>>, vector<8x32xf32>,
    %c0_214 = arith.constant 0 : index
    %c0_215 = arith.constant 0 : index
    %700 = vector.load %arg15[%c0_214, %c0_215] : memref<8x32xf32, #tpu.memory_space<vmem>>, vector<8x32xf32>
    %701 = arith.addf %700, %696 : vector<8x32xf32>
    %c0_216 = arith.constant 0 : index
    %c0_217 = arith.constant 0 : index
    %702 = vector.load %arg15[%c0_216, %c0_217] : memref<8x32xf32, #tpu.memory_space<vmem>>, vector<8x32xf32>
    tpu.vector_store %arg15[%c0_216, %c0_217], %701 {strides = array<i32>} : memref<8x32xf32, #tpu.memory_space<vmem>>, vector<8x32xf32>,
    %703 = vector.shape_cast %690 : vector<8x1xi1> to vector<8x1xi1>
    %704 = vector.broadcast %703 : vector<8x1xi1> to vector<8x32xi1>
    %705 = arith.select %704, %688, %598 : vector<8x32xi1>, vector<8x32xf32>
    %706 = vector.shape_cast %690 : vector<8x1xi1> to vector<8x1xi1>
    %707 = vector.broadcast %706 : vector<8x1xi1> to vector<8x32xi1>
    %708 = arith.select %707, %686, %601 : vector<8x32xi1>, vector<8x32xf32>
    %c7_i32_218 = arith.constant 7 : i32
    %709 = arith.subi %c7_i32_218, %c6_i32 : i32
    %710 = arith.truncf %652 : vector<8x32xf32> to vector<8x32xbf16>
    %cst_219 = arith.constant dense<0.000000e+00> : vector<8x128xf32>
    %711 = tpu.matmul %710, %12, %cst_219 {dimension_numbers = #tpu.dot_dimension_numbers<[1], [0], [0], [1], [0, 0, 1, 1], [], []>} : vector<8x32xbf16>, vector<32x128xbf16>, vector<8x128xf32> -> vector<8x128xf32>
    %712 = arith.index_cast %709 : i32 to index
    %c0_220 = arith.constant 0 : index
    %c0_221 = arith.constant 0 : index
    %713 = vector.load %arg1[%712, %c0_220, %c0_221] : memref<8x8x256xbf16, #tpu.memory_space<vmem>>, vector<1x8x256xbf16>
    %714 = vector.shape_cast %713 : vector<1x8x256xbf16> to vector<8x256xbf16>
    %715 = vector.extract_strided_slice %714 {offsets = [0, 128], sizes = [8, 128], strides = [1, 1]} : vector<8x256xbf16> to vector<8x128xbf16>
    %716 = arith.extf %715 : vector<8x128xbf16> to vector<8x128xf32>
    %717 = arith.addf %716, %711 : vector<8x128xf32>
    %718 = vector.extract_strided_slice %717 {offsets = [0, 0], sizes = [8, 32], strides = [1, 1]} : vector<8x128xf32> to vector<8x32xf32>
    %719 = arith.negf %718 : vector<8x32xf32>
    %720 = math.exp %719 : vector<8x32xf32>
    %cst_222 = arith.constant 1.000000e+00 : f32
    %721 = vector.broadcast %cst_222 : f32 to vector<8x32xf32>
    %722 = arith.addf %721, %720 : vector<8x32xf32>
    %723 = arith.divf %721, %722 : vector<8x32xf32>
    %724 = vector.extract_strided_slice %717 {offsets = [0, 32], sizes = [8, 32], strides = [1, 1]} : vector<8x128xf32> to vector<8x32xf32>
    %725 = arith.negf %724 : vector<8x32xf32>
    %726 = math.exp %725 : vector<8x32xf32>
    %cst_223 = arith.constant 1.000000e+00 : f32
    %727 = vector.broadcast %cst_223 : f32 to vector<8x32xf32>
    %728 = arith.addf %727, %726 : vector<8x32xf32>
    %729 = arith.divf %727, %728 : vector<8x32xf32>
    %730 = vector.extract_strided_slice %717 {offsets = [0, 64], sizes = [8, 32], strides = [1, 1]} : vector<8x128xf32> to vector<8x32xf32>
    %731 = math.tanh %730 : vector<8x32xf32>
    %732 = vector.extract_strided_slice %717 {offsets = [0, 96], sizes = [8, 32], strides = [1, 1]} : vector<8x128xf32> to vector<8x32xf32>
    %733 = arith.negf %732 : vector<8x32xf32>
    %734 = math.exp %733 : vector<8x32xf32>
    %cst_224 = arith.constant 1.000000e+00 : f32
    %735 = vector.broadcast %cst_224 : f32 to vector<8x32xf32>
    %736 = arith.addf %735, %734 : vector<8x32xf32>
    %737 = arith.divf %735, %736 : vector<8x32xf32>
    %738 = arith.mulf %729, %655 : vector<8x32xf32>
    %739 = arith.mulf %723, %731 : vector<8x32xf32>
    %740 = arith.addf %738, %739 : vector<8x32xf32>
    %741 = math.tanh %740 : vector<8x32xf32>
    %742 = arith.mulf %737, %741 : vector<8x32xf32>
    %743 = vector.broadcast %709 : i32 to vector<8x1xi32>
    %744 = arith.cmpi sgt, %0, %743 : vector<8x1xi32>
    %cst_225 = arith.constant 0.000000e+00 : f32
    %745 = vector.broadcast %cst_225 : f32 to vector<8x32xf32>
    %746 = arith.maximumf %742, %745 : vector<8x32xf32>
    %747 = arith.extui %744 : vector<8x1xi1> to vector<8x1xi32>
    %748 = arith.sitofp %747 : vector<8x1xi32> to vector<8x1xf32>
    %749 = vector.broadcast %748 : vector<8x1xf32> to vector<8x32xf32>
    %750 = arith.mulf %746, %749 : vector<8x32xf32>
    %c0_226 = arith.constant 0 : index
    %c0_227 = arith.constant 0 : index
    %751 = vector.load %arg14[%c0_226, %c0_227] : memref<8x32xf32, #tpu.memory_space<vmem>>, vector<8x32xf32>
    %752 = arith.maximumf %751, %750 : vector<8x32xf32>
    %c0_228 = arith.constant 0 : index
    %c0_229 = arith.constant 0 : index
    %753 = vector.load %arg14[%c0_228, %c0_229] : memref<8x32xf32, #tpu.memory_space<vmem>>, vector<8x32xf32>
    tpu.vector_store %arg14[%c0_228, %c0_229], %752 {strides = array<i32>} : memref<8x32xf32, #tpu.memory_space<vmem>>, vector<8x32xf32>,
    %c0_230 = arith.constant 0 : index
    %c0_231 = arith.constant 0 : index
    %754 = vector.load %arg16[%c0_230, %c0_231] : memref<8x32xf32, #tpu.memory_space<vmem>>, vector<8x32xf32>
    %755 = arith.addf %754, %750 : vector<8x32xf32>
    %c0_232 = arith.constant 0 : index
    %c0_233 = arith.constant 0 : index
    %756 = vector.load %arg16[%c0_232, %c0_233] : memref<8x32xf32, #tpu.memory_space<vmem>>, vector<8x32xf32>
    tpu.vector_store %arg16[%c0_232, %c0_233], %755 {strides = array<i32>} : memref<8x32xf32, #tpu.memory_space<vmem>>, vector<8x32xf32>,
    %757 = vector.shape_cast %744 : vector<8x1xi1> to vector<8x1xi1>
    %758 = vector.broadcast %757 : vector<8x1xi1> to vector<8x32xi1>
    %759 = arith.select %758, %742, %652 : vector<8x32xi1>, vector<8x32xf32>
    %760 = vector.shape_cast %744 : vector<8x1xi1> to vector<8x1xi1>
    %761 = vector.broadcast %760 : vector<8x1xi1> to vector<8x32xi1>
    %762 = arith.select %761, %740, %655 : vector<8x32xi1>, vector<8x32xf32>
    %c7_i32_234 = arith.constant 7 : i32
    %763 = arith.truncf %705 : vector<8x32xf32> to vector<8x32xbf16>
    %cst_235 = arith.constant dense<0.000000e+00> : vector<8x128xf32>
    %764 = tpu.matmul %763, %10, %cst_235 {dimension_numbers = #tpu.dot_dimension_numbers<[1], [0], [0], [1], [0, 0, 1, 1], [], []>} : vector<8x32xbf16>, vector<32x128xbf16>, vector<8x128xf32> -> vector<8x128xf32>
    %765 = arith.index_cast %c7_i32_234 : i32 to index
    %c0_236 = arith.constant 0 : index
    %c0_237 = arith.constant 0 : index
    %766 = vector.load %arg1[%765, %c0_236, %c0_237] : memref<8x8x256xbf16, #tpu.memory_space<vmem>>, vector<1x8x256xbf16>
    %767 = vector.shape_cast %766 : vector<1x8x256xbf16> to vector<8x256xbf16>
    %768 = vector.extract_strided_slice %767 {offsets = [0, 0], sizes = [8, 128], strides = [1, 1]} : vector<8x256xbf16> to vector<8x128xbf16>
    %769 = arith.extf %768 : vector<8x128xbf16> to vector<8x128xf32>
    %770 = arith.addf %769, %764 : vector<8x128xf32>
    %771 = vector.extract_strided_slice %770 {offsets = [0, 0], sizes = [8, 32], strides = [1, 1]} : vector<8x128xf32> to vector<8x32xf32>
    %772 = arith.negf %771 : vector<8x32xf32>
    %773 = math.exp %772 : vector<8x32xf32>
    %cst_238 = arith.constant 1.000000e+00 : f32
    %774 = vector.broadcast %cst_238 : f32 to vector<8x32xf32>
    %775 = arith.addf %774, %773 : vector<8x32xf32>
    %776 = arith.divf %774, %775 : vector<8x32xf32>
    %777 = vector.extract_strided_slice %770 {offsets = [0, 32], sizes = [8, 32], strides = [1, 1]} : vector<8x128xf32> to vector<8x32xf32>
    %778 = arith.negf %777 : vector<8x32xf32>
    %779 = math.exp %778 : vector<8x32xf32>
    %cst_239 = arith.constant 1.000000e+00 : f32
    %780 = vector.broadcast %cst_239 : f32 to vector<8x32xf32>
    %781 = arith.addf %780, %779 : vector<8x32xf32>
    %782 = arith.divf %780, %781 : vector<8x32xf32>
    %783 = vector.extract_strided_slice %770 {offsets = [0, 64], sizes = [8, 32], strides = [1, 1]} : vector<8x128xf32> to vector<8x32xf32>
    %784 = math.tanh %783 : vector<8x32xf32>
    %785 = vector.extract_strided_slice %770 {offsets = [0, 96], sizes = [8, 32], strides = [1, 1]} : vector<8x128xf32> to vector<8x32xf32>
    %786 = arith.negf %785 : vector<8x32xf32>
    %787 = math.exp %786 : vector<8x32xf32>
    %cst_240 = arith.constant 1.000000e+00 : f32
    %788 = vector.broadcast %cst_240 : f32 to vector<8x32xf32>
    %789 = arith.addf %788, %787 : vector<8x32xf32>
    %790 = arith.divf %788, %789 : vector<8x32xf32>
    %791 = arith.mulf %782, %708 : vector<8x32xf32>
    %792 = arith.mulf %776, %784 : vector<8x32xf32>
    %793 = arith.addf %791, %792 : vector<8x32xf32>
    %794 = math.tanh %793 : vector<8x32xf32>
    %795 = arith.mulf %790, %794 : vector<8x32xf32>
    %796 = vector.broadcast %c7_i32_234 : i32 to vector<8x1xi32>
    %797 = arith.cmpi sgt, %0, %796 : vector<8x1xi32>
    %cst_241 = arith.constant 0.000000e+00 : f32
    %798 = vector.broadcast %cst_241 : f32 to vector<8x32xf32>
    %799 = arith.maximumf %795, %798 : vector<8x32xf32>
    %800 = arith.extui %797 : vector<8x1xi1> to vector<8x1xi32>
    %801 = arith.sitofp %800 : vector<8x1xi32> to vector<8x1xf32>
    %802 = vector.broadcast %801 : vector<8x1xf32> to vector<8x32xf32>
    %803 = arith.mulf %799, %802 : vector<8x32xf32>
    %c0_242 = arith.constant 0 : index
    %c0_243 = arith.constant 0 : index
    %804 = vector.load %arg13[%c0_242, %c0_243] : memref<8x32xf32, #tpu.memory_space<vmem>>, vector<8x32xf32>
    %805 = arith.maximumf %804, %803 : vector<8x32xf32>
    %c0_244 = arith.constant 0 : index
    %c0_245 = arith.constant 0 : index
    %806 = vector.load %arg13[%c0_244, %c0_245] : memref<8x32xf32, #tpu.memory_space<vmem>>, vector<8x32xf32>
    tpu.vector_store %arg13[%c0_244, %c0_245], %805 {strides = array<i32>} : memref<8x32xf32, #tpu.memory_space<vmem>>, vector<8x32xf32>,
    %c0_246 = arith.constant 0 : index
    %c0_247 = arith.constant 0 : index
    %807 = vector.load %arg15[%c0_246, %c0_247] : memref<8x32xf32, #tpu.memory_space<vmem>>, vector<8x32xf32>
    %808 = arith.addf %807, %803 : vector<8x32xf32>
    %c0_248 = arith.constant 0 : index
    %c0_249 = arith.constant 0 : index
    %809 = vector.load %arg15[%c0_248, %c0_249] : memref<8x32xf32, #tpu.memory_space<vmem>>, vector<8x32xf32>
    tpu.vector_store %arg15[%c0_248, %c0_249], %808 {strides = array<i32>} : memref<8x32xf32, #tpu.memory_space<vmem>>, vector<8x32xf32>,
    %810 = vector.shape_cast %797 : vector<8x1xi1> to vector<8x1xi1>
    %811 = vector.broadcast %810 : vector<8x1xi1> to vector<8x32xi1>
    %812 = arith.select %811, %795, %705 : vector<8x32xi1>, vector<8x32xf32>
    %813 = vector.shape_cast %797 : vector<8x1xi1> to vector<8x1xi1>
    %814 = vector.broadcast %813 : vector<8x1xi1> to vector<8x32xi1>
    %815 = arith.select %814, %793, %708 : vector<8x32xi1>, vector<8x32xf32>
    %c7_i32_250 = arith.constant 7 : i32
    %816 = arith.subi %c7_i32_250, %c7_i32_234 : i32
    %817 = arith.truncf %759 : vector<8x32xf32> to vector<8x32xbf16>
    %cst_251 = arith.constant dense<0.000000e+00> : vector<8x128xf32>
    %818 = tpu.matmul %817, %12, %cst_251 {dimension_numbers = #tpu.dot_dimension_numbers<[1], [0], [0], [1], [0, 0, 1, 1], [], []>} : vector<8x32xbf16>, vector<32x128xbf16>, vector<8x128xf32> -> vector<8x128xf32>
    %819 = arith.index_cast %816 : i32 to index
    %c0_252 = arith.constant 0 : index
    %c0_253 = arith.constant 0 : index
    %820 = vector.load %arg1[%819, %c0_252, %c0_253] : memref<8x8x256xbf16, #tpu.memory_space<vmem>>, vector<1x8x256xbf16>
    %821 = vector.shape_cast %820 : vector<1x8x256xbf16> to vector<8x256xbf16>
    %822 = vector.extract_strided_slice %821 {offsets = [0, 128], sizes = [8, 128], strides = [1, 1]} : vector<8x256xbf16> to vector<8x128xbf16>
    %823 = arith.extf %822 : vector<8x128xbf16> to vector<8x128xf32>
    %824 = arith.addf %823, %818 : vector<8x128xf32>
    %825 = vector.extract_strided_slice %824 {offsets = [0, 0], sizes = [8, 32], strides = [1, 1]} : vector<8x128xf32> to vector<8x32xf32>
    %826 = arith.negf %825 : vector<8x32xf32>
    %827 = math.exp %826 : vector<8x32xf32>
    %cst_254 = arith.constant 1.000000e+00 : f32
    %828 = vector.broadcast %cst_254 : f32 to vector<8x32xf32>
    %829 = arith.addf %828, %827 : vector<8x32xf32>
    %830 = arith.divf %828, %829 : vector<8x32xf32>
    %831 = vector.extract_strided_slice %824 {offsets = [0, 32], sizes = [8, 32], strides = [1, 1]} : vector<8x128xf32> to vector<8x32xf32>
    %832 = arith.negf %831 : vector<8x32xf32>
    %833 = math.exp %832 : vector<8x32xf32>
    %cst_255 = arith.constant 1.000000e+00 : f32
    %834 = vector.broadcast %cst_255 : f32 to vector<8x32xf32>
    %835 = arith.addf %834, %833 : vector<8x32xf32>
    %836 = arith.divf %834, %835 : vector<8x32xf32>
    %837 = vector.extract_strided_slice %824 {offsets = [0, 64], sizes = [8, 32], strides = [1, 1]} : vector<8x128xf32> to vector<8x32xf32>
    %838 = math.tanh %837 : vector<8x32xf32>
    %839 = vector.extract_strided_slice %824 {offsets = [0, 96], sizes = [8, 32], strides = [1, 1]} : vector<8x128xf32> to vector<8x32xf32>
    %840 = arith.negf %839 : vector<8x32xf32>
    %841 = math.exp %840 : vector<8x32xf32>
    %cst_256 = arith.constant 1.000000e+00 : f32
    %842 = vector.broadcast %cst_256 : f32 to vector<8x32xf32>
    %843 = arith.addf %842, %841 : vector<8x32xf32>
    %844 = arith.divf %842, %843 : vector<8x32xf32>
    %845 = arith.mulf %836, %762 : vector<8x32xf32>
    %846 = arith.mulf %830, %838 : vector<8x32xf32>
    %847 = arith.addf %845, %846 : vector<8x32xf32>
    %848 = math.tanh %847 : vector<8x32xf32>
    %849 = arith.mulf %844, %848 : vector<8x32xf32>
    %850 = vector.broadcast %816 : i32 to vector<8x1xi32>
    %851 = arith.cmpi sgt, %0, %850 : vector<8x1xi32>
    %cst_257 = arith.constant 0.000000e+00 : f32
    %852 = vector.broadcast %cst_257 : f32 to vector<8x32xf32>
    %853 = arith.maximumf %849, %852 : vector<8x32xf32>
    %854 = arith.extui %851 : vector<8x1xi1> to vector<8x1xi32>
    %855 = arith.sitofp %854 : vector<8x1xi32> to vector<8x1xf32>
    %856 = vector.broadcast %855 : vector<8x1xf32> to vector<8x32xf32>
    %857 = arith.mulf %853, %856 : vector<8x32xf32>
    %c0_258 = arith.constant 0 : index
    %c0_259 = arith.constant 0 : index
    %858 = vector.load %arg14[%c0_258, %c0_259] : memref<8x32xf32, #tpu.memory_space<vmem>>, vector<8x32xf32>
    %859 = arith.maximumf %858, %857 : vector<8x32xf32>
    %c0_260 = arith.constant 0 : index
    %c0_261 = arith.constant 0 : index
    %860 = vector.load %arg14[%c0_260, %c0_261] : memref<8x32xf32, #tpu.memory_space<vmem>>, vector<8x32xf32>
    tpu.vector_store %arg14[%c0_260, %c0_261], %859 {strides = array<i32>} : memref<8x32xf32, #tpu.memory_space<vmem>>, vector<8x32xf32>,
    %c0_262 = arith.constant 0 : index
    %c0_263 = arith.constant 0 : index
    %861 = vector.load %arg16[%c0_262, %c0_263] : memref<8x32xf32, #tpu.memory_space<vmem>>, vector<8x32xf32>
    %862 = arith.addf %861, %857 : vector<8x32xf32>
    %c0_264 = arith.constant 0 : index
    %c0_265 = arith.constant 0 : index
    %863 = vector.load %arg16[%c0_264, %c0_265] : memref<8x32xf32, #tpu.memory_space<vmem>>, vector<8x32xf32>
    tpu.vector_store %arg16[%c0_264, %c0_265], %862 {strides = array<i32>} : memref<8x32xf32, #tpu.memory_space<vmem>>, vector<8x32xf32>,
    %864 = vector.shape_cast %851 : vector<8x1xi1> to vector<8x1xi1>
    %865 = vector.broadcast %864 : vector<8x1xi1> to vector<8x32xi1>
    %866 = arith.select %865, %849, %759 : vector<8x32xi1>, vector<8x32xf32>
    %867 = vector.shape_cast %851 : vector<8x1xi1> to vector<8x1xi1>
    %868 = vector.broadcast %867 : vector<8x1xi1> to vector<8x32xi1>
    %869 = arith.select %868, %847, %762 : vector<8x32xi1>, vector<8x32xf32>
    %c8_i32 = arith.constant 8 : i32
    %c0_266 = arith.constant 0 : index
    %c0_267 = arith.constant 0 : index
    %c0_268 = arith.constant 0 : index
    %870 = vector.load %arg2[%c0_266, %c0_267, %c0_268] : memref<8x8x32xf32, #tpu.memory_space<vmem>>, vector<8x8x32xf32>
    %cst_269 = arith.constant 0.000000e+00 : f32
    %871 = vector.broadcast %cst_269 : f32 to vector<8x8x32xf32>
    %872 = arith.maximumf %870, %871 : vector<8x8x32xf32>
    %873 = tpu.iota {dimensions = array<i32: 0>} : vector<8x8x1xi32>
    %874 = vector.shape_cast %0 : vector<8x1xi32> to vector<1x8x1xi32>
    %875 = vector.broadcast %874 : vector<1x8x1xi32> to vector<8x8x1xi32>
    %876 = arith.cmpi slt, %873, %875 : vector<8x8x1xi32>
    %877 = arith.extui %876 : vector<8x8x1xi1> to vector<8x8x1xi32>
    %878 = arith.sitofp %877 : vector<8x8x1xi32> to vector<8x8x1xf32>
    %879 = arith.sitofp %0 : vector<8x1xi32> to vector<8x1xf32>
    %cst_270 = arith.constant 1.000000e+00 : f32
    %880 = vector.broadcast %cst_270 : f32 to vector<8x1xf32>
    %881 = arith.maximumf %879, %880 : vector<8x1xf32>
    %cst_271 = arith.constant 1.000000e+00 : f32
    %882 = vector.broadcast %cst_271 : f32 to vector<8x1xf32>
    %883 = arith.divf %882, %881 : vector<8x1xf32>
    %884 = vector.broadcast %878 : vector<8x8x1xf32> to vector<8x8x32xf32>
    %885 = arith.mulf %872, %884 : vector<8x8x32xf32>
    %cst_272 = arith.constant dense<0.000000e+00> : vector<8x32xf32>
    %886 = vector.multi_reduction <add>, %885, %cst_272 [0] : vector<8x8x32xf32> to vector<8x32xf32>
    %887 = vector.broadcast %883 : vector<8x1xf32> to vector<8x32xf32>
    %888 = arith.mulf %886, %887 : vector<8x32xf32>
    %cst_273 = arith.constant dense<0xFF800000> : vector<8x32xf32>
    %889 = vector.multi_reduction <maximumf>, %872, %cst_273 [0] : vector<8x8x32xf32> to vector<8x32xf32>
    %cst_274 = arith.constant 0.000000e+00 : f32
    %890 = vector.broadcast %cst_274 : f32 to vector<8x32xf32>
    %c0_275 = arith.constant 0 : index
    %c0_276 = arith.constant 0 : index
    %891 = vector.load %arg15[%c0_275, %c0_276] : memref<8x32xf32, #tpu.memory_space<vmem>>, vector<8x32xf32>
    %892 = vector.broadcast %883 : vector<8x1xf32> to vector<8x32xf32>
    %893 = arith.mulf %891, %892 : vector<8x32xf32>
    %c0_277 = arith.constant 0 : index
    %c0_278 = arith.constant 0 : index
    %894 = vector.load %arg16[%c0_277, %c0_278] : memref<8x32xf32, #tpu.memory_space<vmem>>, vector<8x32xf32>
    %895 = vector.broadcast %883 : vector<8x1xf32> to vector<8x32xf32>
    %896 = arith.mulf %894, %895 : vector<8x32xf32>
    %897 = tpu.concatenate %888, %893, %896, %890 in 1 : vector<8x32xf32>, vector<8x32xf32>, vector<8x32xf32>, vector<8x32xf32> -> vector<8x128xf32>
    %c0_279 = arith.constant 0 : index
    %c0_280 = arith.constant 0 : index
    %898 = vector.load %arg13[%c0_279, %c0_280] : memref<8x32xf32, #tpu.memory_space<vmem>>, vector<8x32xf32>
    %c0_281 = arith.constant 0 : index
    %c0_282 = arith.constant 0 : index
    %899 = vector.load %arg14[%c0_281, %c0_282] : memref<8x32xf32, #tpu.memory_space<vmem>>, vector<8x32xf32>
    %900 = tpu.concatenate %889, %898, %899, %890 in 1 : vector<8x32xf32>, vector<8x32xf32>, vector<8x32xf32>, vector<8x32xf32> -> vector<8x128xf32>
    %c0_283 = arith.constant 0 : index
    %c0_284 = arith.constant 0 : index
    %901 = vector.load %arg5[%c0_283, %c0_284] : memref<128x128xf32, #tpu.memory_space<vmem>>, vector<128x128xf32>
    %cst_285 = arith.constant dense<0.000000e+00> : vector<8x128xf32>
    %902 = tpu.matmul %897, %901, %cst_285 {dimension_numbers = #tpu.dot_dimension_numbers<[1], [0], [0], [1], [0, 0, 1, 1], [], []>} : vector<8x128xf32>, vector<128x128xf32>, vector<8x128xf32> -> vector<8x128xf32>
    %903 = arith.negf %902 : vector<8x128xf32>
    %904 = math.exp %903 : vector<8x128xf32>
    %cst_286 = arith.constant 1.000000e+00 : f32
    %905 = vector.broadcast %cst_286 : f32 to vector<8x128xf32>
    %906 = arith.addf %905, %904 : vector<8x128xf32>
    %907 = arith.divf %905, %906 : vector<8x128xf32>
    %cst_287 = arith.constant 1.000000e+00 : f32
    %908 = vector.broadcast %cst_287 : f32 to vector<8x128xf32>
    %909 = arith.addf %908, %907 : vector<8x128xf32>
    %910 = arith.mulf %900, %909 : vector<8x128xf32>
    %cst_288 = arith.constant 0.000000e+00 : f32
    %911 = vector.broadcast %cst_288 : f32 to vector<8x128xf32>
    %912 = arith.maximumf %910, %911 : vector<8x128xf32>
    %913 = arith.truncf %912 : vector<8x128xf32> to vector<8x128xbf16>
    %c0_289 = arith.constant 0 : index
    %c0_290 = arith.constant 0 : index
    %914 = vector.load %arg6[%c0_289, %c0_290] : memref<128x128xbf16, #tpu.memory_space<vmem>>, vector<128x128xbf16>
    %cst_291 = arith.constant dense<0.000000e+00> : vector<8x128xf32>
    %915 = tpu.matmul %913, %914, %cst_291 {dimension_numbers = #tpu.dot_dimension_numbers<[1], [0], [0], [1], [0, 0, 1, 1], [], []>} : vector<8x128xbf16>, vector<128x128xbf16>, vector<8x128xf32> -> vector<8x128xf32>
    %c0_292 = arith.constant 0 : index
    %c0_293 = arith.constant 0 : index
    %916 = vector.load %arg7[%c0_292, %c0_293] : memref<1x128xf32, #tpu.memory_space<vmem>>, vector<1x128xf32>
    %917 = vector.broadcast %916 : vector<1x128xf32> to vector<8x128xf32>
    %918 = arith.addf %915, %917 : vector<8x128xf32>
    %cst_294 = arith.constant 0.000000e+00 : f32
    %919 = vector.broadcast %cst_294 : f32 to vector<8x128xf32>
    %920 = arith.maximumf %918, %919 : vector<8x128xf32>
    %921 = arith.truncf %920 : vector<8x128xf32> to vector<8x128xbf16>
    %c0_295 = arith.constant 0 : index
    %c0_296 = arith.constant 0 : index
    %922 = vector.load %arg8[%c0_295, %c0_296] : memref<128x32xbf16, #tpu.memory_space<vmem>>, vector<128x32xbf16>
    %cst_297 = arith.constant dense<0.000000e+00> : vector<8x32xf32>
    %923 = tpu.matmul %921, %922, %cst_297 {dimension_numbers = #tpu.dot_dimension_numbers<[1], [0], [0], [1], [0, 0, 1, 1], [], []>} : vector<8x128xbf16>, vector<128x32xbf16>, vector<8x32xf32> -> vector<8x32xf32>
    %c0_298 = arith.constant 0 : index
    %c0_299 = arith.constant 0 : index
    %924 = vector.load %arg9[%c0_298, %c0_299] : memref<1x32xf32, #tpu.memory_space<vmem>>, vector<1x32xf32>
    %925 = vector.broadcast %924 : vector<1x32xf32> to vector<8x32xf32>
    %926 = arith.addf %923, %925 : vector<8x32xf32>
    %cst_300 = arith.constant 0.000000e+00 : f32
    %927 = vector.broadcast %cst_300 : f32 to vector<8x32xf32>
    %928 = arith.maximumf %926, %927 : vector<8x32xf32>
    %929 = arith.truncf %928 : vector<8x32xf32> to vector<8x32xbf16>
    %c0_301 = arith.constant 0 : index
    %c0_302 = arith.constant 0 : index
    %930 = vector.load %arg10[%c0_301, %c0_302] : memref<32x2xbf16, #tpu.memory_space<vmem>>, vector<32x2xbf16>
    %cst_303 = arith.constant dense<0.000000e+00> : vector<8x2xf32>
    %931 = tpu.matmul %929, %930, %cst_303 {dimension_numbers = #tpu.dot_dimension_numbers<[1], [0], [0], [1], [0, 0, 1, 1], [], []>} : vector<8x32xbf16>, vector<32x2xbf16>, vector<8x2xf32> -> vector<8x2xf32>
    %c0_304 = arith.constant 0 : index
    %c0_305 = arith.constant 0 : index
    %932 = vector.load %arg11[%c0_304, %c0_305] : memref<1x2xf32, #tpu.memory_space<vmem>>, vector<1x2xf32>
    %933 = vector.broadcast %932 : vector<1x2xf32> to vector<8x2xf32>
    %934 = arith.addf %931, %933 : vector<8x2xf32>
    %c0_306 = arith.constant 0 : index
    %c0_307 = arith.constant 0 : index
    %935 = vector.load %arg12[%c0_306, %c0_307] : memref<8x2xf32, #tpu.memory_space<vmem>>, vector<8x2xf32>
    tpu.vector_store %arg12[%c0_306, %c0_307], %934 {strides = array<i32>} : memref<8x2xf32, #tpu.memory_space<vmem>>, vector<8x2xf32>,
    return
  }
  func.func @transform_0(%arg0: i32) -> (i32, i32, i32) {
    %c0_i32 = arith.constant 0 : i32
    %c0_i32_0 = arith.constant 0 : i32
    %c0_i32_1 = arith.constant 0 : i32
    return %c0_i32, %arg0, %c0_i32_0 : i32, i32, i32
  }
  func.func @transform_1(%arg0: i32) -> (i32, i32, i32) {
    %c0_i32 = arith.constant 0 : i32
    %c0_i32_0 = arith.constant 0 : i32
    %c0_i32_1 = arith.constant 0 : i32
    return %c0_i32, %arg0, %c0_i32_0 : i32, i32, i32
  }
  func.func @transform_2(%arg0: i32) -> (i32, i32) {
    %c0_i32 = arith.constant 0 : i32
    %c0_i32_0 = arith.constant 0 : i32
    return %arg0, %c0_i32 : i32, i32
  }
  func.func @transform_3(%arg0: i32) -> (i32, i32, i32) {
    %c0_i32 = arith.constant 0 : i32
    %c0_i32_0 = arith.constant 0 : i32
    %c0_i32_1 = arith.constant 0 : i32
    %c0_i32_2 = arith.constant 0 : i32
    return %c0_i32, %c0_i32_0, %c0_i32_1 : i32, i32, i32
  }
  func.func @transform_4(%arg0: i32) -> (i32, i32) {
    %c0_i32 = arith.constant 0 : i32
    %c0_i32_0 = arith.constant 0 : i32
    %c0_i32_1 = arith.constant 0 : i32
    return %c0_i32, %c0_i32_0 : i32, i32
  }
  func.func @transform_5(%arg0: i32) -> (i32, i32) {
    %c0_i32 = arith.constant 0 : i32
    %c0_i32_0 = arith.constant 0 : i32
    %c0_i32_1 = arith.constant 0 : i32
    return %c0_i32, %c0_i32_0 : i32, i32
  }
  func.func @transform_6(%arg0: i32) -> (i32, i32) {
    %c0_i32 = arith.constant 0 : i32
    %c0_i32_0 = arith.constant 0 : i32
    %c0_i32_1 = arith.constant 0 : i32
    return %c0_i32, %c0_i32_0 : i32, i32
  }
  func.func @transform_7(%arg0: i32) -> (i32, i32) {
    %c0_i32 = arith.constant 0 : i32
    %c0_i32_0 = arith.constant 0 : i32
    %c0_i32_1 = arith.constant 0 : i32
    return %c0_i32, %c0_i32_0 : i32, i32
  }
  func.func @transform_8(%arg0: i32) -> (i32, i32) {
    %c0_i32 = arith.constant 0 : i32
    %c0_i32_0 = arith.constant 0 : i32
    %c0_i32_1 = arith.constant 0 : i32
    return %c0_i32, %c0_i32_0 : i32, i32
  }
  func.func @transform_9(%arg0: i32) -> (i32, i32) {
    %c0_i32 = arith.constant 0 : i32
    %c0_i32_0 = arith.constant 0 : i32
    %c0_i32_1 = arith.constant 0 : i32
    return %c0_i32, %c0_i32_0 : i32, i32
  }
  func.func @transform_10(%arg0: i32) -> (i32, i32) {
    %c0_i32 = arith.constant 0 : i32
    %c0_i32_0 = arith.constant 0 : i32
    %c0_i32_1 = arith.constant 0 : i32
    return %c0_i32, %c0_i32_0 : i32, i32
  }
  func.func @transform_11(%arg0: i32) -> (i32, i32) {
    %c0_i32 = arith.constant 0 : i32
    %c0_i32_0 = arith.constant 0 : i32
    return %arg0, %c0_i32 : i32, i32
  }
}

</mosaic_0001>

<bundles_post_ra>
// kernel: tpu_custom_call.1
= control target key start
LH: loop header
LB: loop body
LE: loop exit
PB: predicated region body
PF: predicated region fallthrough
CT: control target
= control target key end

     0   :  { %16 = vsyncpa [#allocation7], 0  ;;  %s3717_s0 = inlined_call_operand.vmem [shape: bf16[8,8,256], index: 0, kind: input, shape index: {}]   ;;  %s3718_s1 = inlined_call_operand.hbm [shape: f32[8,8,32], index: 1, kind: input, shape index: {}]   ;;  %s3719_s2 = inlined_call_operand.vmem [shape: s32[8,1], index: 2, kind: input, shape index: {}]   ;;  %s3720_s3 = inlined_call_operand.vmem [shape: bf16[2,32,128], index: 3, kind: input, shape index: {}]   ;;  %s3721_s4 = inlined_call_operand.hbm [shape: f32[128,128], index: 4, kind: input, shape index: {}]   ;;  %s3722_s5 = inlined_call_operand.hbm [shape: bf16[128,128], index: 5, kind: input, shape index: {}]   ;;  %s3723_s6 = inlined_call_operand.vmem [shape: f32[1,128], index: 6, kind: input, shape index: {}]   ;;  %s3724_s7 = inlined_call_operand.vmem [shape: bf16[128,32], index: 7, kind: input, shape index: {}]   ;;  %s3725_s8 = inlined_call_operand.vmem [shape: f32[1,32], index: 8, kind: input, shape index: {}]   ;;  %s3726_s9 = inlined_call_operand.vmem [shape: bf16[32,2], index: 9, kind: input, shape index: {}]   ;;  %s3727_s10 = inlined_call_operand.vmem [shape: f32[1,2], index: 10, kind: input, shape index: {}]   ;;  %s3728_s11 = inlined_call_operand.vmem [shape: f32[8,2], index: 11, kind: output, shape index: {}]  }
   0x1   :  { %17 = vsyncpa [#allocation9], 0  ;;  %s2768_s17 = smov [#allocation8]   ;;  %s2769_s19 = smov [#allocation6]  }
   0x2   :  { %s41_s18 = sshll.u32 %s2768_s17, 4  ;;  %s25_s20 = sshll.u32 %s2769_s19, 4  ;;  %s42_s18 = int_to_ptr.vmem [resolvable:$true] %s41_s18  ;;  %s26_s20 = int_to_ptr.vmem [resolvable:$true] %s25_s20 }
   0x3   :  { %s2712_s21 = scalar_lea.vmem %s42_s18, 2048  ;;  %p2717_p1 = scmp.lt.s32.totalorder %s42_s18, %s42_s18 }
   0x4   :  { %p2713_p0 = scmp.ne.s32.totalorder %s42_s18, %s2712_s21  ;;  %p2718_p2 = scmp.lt.s32.totalorder %s2712_s21, %s2712_s21 }
   0x6   :  { %p2719_p3 = por %p2718_p2, %p2717_p1 }
   0x8   :  { %p2720_p4 = pnand %p2719_p3, %p2713_p0 }
   0xa   :  { %2723 = shalt.err (!%p2720_p4)
}
   0xb   :  { %s2770_s22 = smov 128   ;;  %s2771_s23 = smov 8  }
   0xc   :  { %47 = dma.hbm_to_vmem [thread:$0]  %s3721_s4, 2048, %s42_s18, [#allocation9], %s2770_s22, %s2770_s22, %s2771_s23  }
   0xd   :  { %s2732_s26 = scalar_lea.vmem %s26_s20, 1024  ;;  %p2737_p6 = scmp.lt.s32.totalorder %s26_s20, %s26_s20 }
   0xe   :  { %p2733_p5 = scmp.ne.s32.totalorder %s26_s20, %s2732_s26  ;;  %p2738_p7 = scmp.lt.s32.totalorder %s2732_s26, %s2732_s26 }
  0x10   :  { %p2739_p8 = por %p2738_p7, %p2737_p6 }
  0x12   :  { %p2740_p9 = pnand %p2739_p8, %p2733_p5 }
  0x14   :  { %2743 = shalt.err (!%p2740_p9)
}
  0x15   :  { %31 = dma.hbm_to_vmem [thread:$0]  %s3718_s1, 1024, %s26_s20, [#allocation7], %s2770_s22, %s2770_s22, %s2771_s23  }
  0x16   :  { %s2772_s29 = smov [#allocation10]  }
  0x17   :  { %s53_s30 = sshll.u32 %s2772_s29, 4  ;;  %s54_s30 = int_to_ptr.vmem [resolvable:$true] %s53_s30 }
  0x18   :  { %s2752_s12 = scalar_lea.vmem %s54_s30, 1024  ;;  %p2757_p11 = scmp.lt.s32.totalorder %s54_s30, %s54_s30 }
  0x19   :  { %p2753_p10 = scmp.ne.s32.totalorder %s54_s30, %s2752_s12  ;;  %p2758_p12 = scmp.lt.s32.totalorder %s2752_s12, %s2752_s12 }
  0x1b   :  { %p2759_p13 = por %p2758_p12, %p2757_p11 }
  0x1d   :  { %p2760_p0 = pnand %p2759_p13, %p2753_p10 }
  0x1f   :  { %2763 = shalt.err (!%p2760_p0)
}
  0x20   :  { %s2773_s4 = smov 64   ;;  %s2774_s13 = smov 4  }
  0x21   :  { %59 = dma.hbm_to_vmem [thread:$0]  %s3722_s5, 1024, %s54_s30, [#allocation9], %s2773_s4, %s2773_s4, %s2774_s13  }
  0x22   :  { %2764 = dma.done.wait [#allocation7], 1024  }
  0x23   :  { %2765 = vsyncadd [#allocation7], 4294966272 }
  0x24   :  { %2766 = dma.done.wait [#allocation9], 3072  }
  0x25   :  { %2767 = vsyncadd [#allocation9], 4294964224  ;;  %v2775_v0 = vmov 0.0   ;;  %vm2776_vm0 = vmmov 0   ;;  %v2777_v1 = vmov 0   ;;  %v2861_v2 = vld [vmem:[%s3720_s3 + $0x8] sm:$0xff]  }
  0x26   :  { %2299 = vmatprep.subr.bf16.mxu1 %v2775_v0  ;;  %2303 = vmatprep.mubr.msk.bf16.mxu1 %vm2776_vm0, %v2775_v0  ;;  %v2867_v3 = vld [vmem:[%s3720_s3] sm:$0xff]   ;;  %v2875_v4 = vld [vmem:[%s3720_s3 + $0x18] sm:$0xff]   ;;  %v2884_v5 = vld [vmem:[%s3720_s3 + $0x10] sm:$0xff]   ;;  %s2778_s28 = smov 32   ;;  %vm81_vm3 = vcmask 261120  }
  0x27   :  { %2521 = vset.pattern.permute.xlu0 %v2777_v1  ;;  %2522 = vset.pattern.permute.xlu1 %v2777_v1  ;;  %v150_v6 = vld [vmem:[%s3717_s0] sm:$0xf]  ;;  %v2139_v8 = vld [vmem:[%s3717_s0 + $0x38] sm:$0xff]  ;;  %82 = vst.msk [vmem:[#allocation2] sm:$0xff] %vm81_vm3, %v2775_v0  ;;  %83 = vst.msk [vmem:[#allocation3] sm:$0xff] %vm81_vm3, %v2775_v0 }
  0x28   :  { %2315 = vmatprep.subr.bf16.mxu0 %v2775_v0  ;;  %2319 = vmatprep.mubr.msk.bf16.mxu0 %vm2776_vm0, %v2775_v0  ;;  %v151_v7 = vunpack.c.l.bf16 %v150_v6  ;;  %v258_v11 = vrot.slane %v2139_v8, 4  ;;  %v2910_v22 = vld [vmem:[%s3719_s2] sm:$0xff]  ;;  %84 = vst.msk [vmem:[#allocation4] sm:$0xff] %vm81_vm3, %v2775_v0  ;;  %85 = vst.msk [vmem:[#allocation5] sm:$0xff] %vm81_vm3, %v2775_v0  ;;  %v2982_v58 = vld [vmem:[%s3717_s0 + $0x8] sm:$0xff] }
  0x29   :  { %2300 = vmatpush3.bf16.msra.mxu1 %v2861_v2  ;;  %2316 = vmatpush3.bf16.msra.mxu0 %v2861_v2  ;;  %vm177_vm1 = vcmp.gt.s32.totalorder %v2910_v22, 0  ;;  %vm286_vm2 = vcmp.gt.s32.totalorder %v2910_v22, 7  ;;  %v361_v59 = vunpack.c.l.bf16 %v2982_v58  ;;  %v2988_v60 = vld [vmem:[%s3717_s0 + $0x30] sm:$0xff]  ;;  %vm387_vm6 = vcmp.gt.s32.totalorder %v2910_v22, 1 }
  0x2a   :  { %2301 = vmatprep.subr.bf16.mxu1 %v2775_v0  ;;  %2317 = vmatprep.subr.bf16.mxu0 %v2775_v0  ;;  %v260_v14 = vunpack.c.l.bf16 %v258_v11  ;;  %v179_v24 = vsel %vm177_vm1, 1, %v2777_v1  ;;  %v288_v37 = vsel %vm286_vm2, 1, %v2777_v1  ;;  %v463_v63 = vrot.slane %v2988_v60, 4 }
  0x2b   :  { %vm491_vm7 = vcmp.gt.s32.totalorder %v2910_v22, 6  ;;  %vm592_vm10 = vcmp.gt.s32.totalorder %v2910_v22, 2  ;;  %vm696_vm11 = vcmp.gt.s32.totalorder %v2910_v22, 5  ;;  %vm797_vm14 = vcmp.gt.s32.totalorder %v2910_v22, 3 }
  0x2c   :  { %v465_v8 = vunpack.c.l.bf16 %v463_v63  ;;  %vm901_vm15 = vcmp.gt.s32.totalorder %v2910_v22, 4 }
  0x2d   :  { %2302 = vmatpush3.bf16.msra.mxu1 %v2867_v3  ;;  %2318 = vmatpush3.bf16.msra.mxu0 %v2867_v3 }
  0x2e   :  { %2307 = vmatprep.subr.bf16.mxu1 %v2775_v0  ;;  %2331 = vmatprep.subr.bf16.mxu0 %v2775_v0 }
  0x30   :  { %2304 = vmatmul.mubr.bf16.vlgmr.msra.gmra.mxu1 %v2777_v1 }
  0x31   :  { %2308 = vmatpush3.bf16.msra.mxu1 %v2875_v4  ;;  %2311 = vmatprep.mubr.msk.bf16.mxu1 %vm2776_vm0, %v2775_v0 }
  0x32   :  { %2309 = vmatprep.subr.bf16.mxu1 %v2775_v0 }
  0x35   :  { %2310 = vmatpush3.bf16.msra.mxu1 %v2884_v5 }
  0x36   :  { %2323 = vmatprep.subr.bf16.mxu1 %v2775_v0 }
  0x38   :  { %2312 = vmatmul.mubr.bf16.vlgmr.msra.gmra.mxu1 %v2777_v1 }
  0x39   :  { %2324 = vmatpush3.bf16.msra.mxu1 %v2875_v4  ;;  %2327 = vmatprep.mubr.msk.bf16.mxu1 %vm2776_vm0, %v2775_v0 }
  0x3a   :  { %2325 = vmatprep.subr.bf16.mxu1 %v2775_v0 }
  0x3d   :  { %2326 = vmatpush3.bf16.msra.mxu1 %v2884_v5 }
  0x3e   :  { %2339 = vmatprep.subr.bf16.mxu1 %v2775_v0 }
  0xf0   :  { %v144_v9 = vpop.f32.mrf.mxu1 }
  0xf1   :  { %v152_v10 = vadd.f32 %v151_v7, %v144_v9 }
  0xf2   :  { %v2305_v12 = vpop.f32.mrf.mxu1 }
  0xf3   :  { %2565 = vtanh.f32 %v152_v10  ;;  %v2135_v25 = vmul.f32 -1.442695, %v152_v10 }
  0xf4   :  { %v147_v13 = vpop.f32.mrf.mxu1 }
  0xf6   :  { %v2306_v15 = vpop.f32.mrf.mxu1 }
  0xf8   :  { %v249_v16 = vpop.f32.mrf.mxu1 }
  0xf9   :  { %v261_v17 = vadd.f32 %v260_v14, %v249_v16 }
  0xfa   :  { %v2313_v18 = vpop.f32.mrf.mxu1 }
  0xfb   :  { %2567 = vtanh.f32 %v261_v17  ;;  %v2140_v26 = vmul.f32 -1.442695, %v261_v17 }
  0xfc   :  { %v252_v19 = vpop.f32.mrf.mxu1  ;;  %2569 = vpow2.f32 %v2135_v25 }
  0xfd   :  { %2571 = vpow2.f32 %v2140_v26 }
  0xfe   :  { %v2314_v20 = vpop.f32.mrf.mxu1 }
 0x100   :  { %v2566_v21 = vpop.eup %2565 }
 0x101   :  { %162 = vrot.lane.b32.xlu0 %v2566_v21, %s2773_s4 }
 0x108   :  { %v2568_v23 = vpop.eup %2567 }
 0x109   :  { %271 = vrot.lane.b32.xlu0 %v2568_v23, %s2773_s4  ;;  %v2570_v27 = vpop.eup %2569 }
 0x10a   :  { %v156_v28 = vadd.f32 1.0, %v2570_v27  ;;  %v2572_v29 = vpop.eup %2571  ;;  %v389_v27 = vsel %vm387_vm6, 1, %v2777_v1 }
 0x10b   :  { %v265_v30 = vadd.f32 1.0, %v2572_v29 }
 0x10c   :  { %2573 = vrcp.f32 %v156_v28 }
 0x10d   :  { %198 = vperm.xlu0 %2521, %v179_v24   ;;  %2575 = vrcp.f32 %v265_v30 }
 0x119   :  { %v2574_v31 = vpop.eup %2573 }
 0x11a   :  { %v2576_v34 = vpop.eup %2575  ;;  %v160_v38 = vmul.f32 0.0, %v2574_v31 }
 0x11b   :  { %v269_v41 = vmul.f32 0.0, %v2576_v34 }
 0x173   :  { %v163_v32 = vpop.permute.xlu0 %162 }
 0x174   :  { %v165_v33 = vmul.f32 %v2574_v31, %v163_v32 }
 0x176   :  { %167 = vrot.lane.b32.xlu1 %v165_v33, %s2778_s28 }
 0x17b   :  { %v272_v35 = vpop.permute.xlu0 %271 }
 0x17c   :  { %v274_v36 = vmul.f32 %v2576_v34, %v272_v35 }
 0x17e   :  { %276 = vrot.lane.b32.xlu1 %v274_v36, %s2778_s28 }
 0x182   :  { %307 = vperm.xlu1 %2522, %v288_v37  }
 0x188   :  { %v2941_v47 = vpop.permute.xlu0 %198 }
 0x189   :  { %vm200_vm4 = vcmp.eq.s32.totalorder %v2941_v47, 1 }
 0x1e8   :  { %v168_v39 = vpop.permute.xlu1 %167 }
 0x1e9   :  { %v2923_v40 = vadd.f32 %v168_v39, %v160_v38 }
 0x1eb   :  { %2577 = vtanh.f32 %v2923_v40  ;;  %v3006_v32 = vsel %vm200_vm4, %v2923_v40, 0.0 }
 0x1f0   :  { %v277_v42 = vpop.permute.xlu1 %276 }
 0x1f1   :  { %v2926_v43 = vadd.f32 %v277_v42, %v269_v41 }
 0x1f3   :  { %2579 = vtanh.f32 %v2926_v43 }
 0x1f8   :  { %v2578_v44 = vpop.eup %2577 }
 0x1f9   :  { %173 = vrot.lane.b32.xlu1 %v2578_v44, %s2773_s4 }
 0x1fd   :  { %v2939_v46 = vpop.permute.xlu1 %307 }
 0x1fe   :  { %vm309_vm5 = vcmp.eq.s32.totalorder %v2939_v46, 1 }
 0x1ff   :  { %v3015_v36 = vsel %vm309_vm5, %v2926_v43, 0.0 }
 0x200   :  { %v2580_v45 = vpop.eup %2579 }
 0x201   :  { %282 = vrot.lane.b32.xlu0 %v2580_v45, %s2773_s4 }
 0x26b   :  { %v174_v48 = vpop.permute.xlu1 %173 }
 0x26c   :  { %v2943_v49 = vmul.f32 %v2574_v31, %v174_v48  ;;  %v493_v31 = vsel %vm491_vm7, 1, %v2777_v1 }
 0x26e   :  { %v2949_v50 = vsel %vm200_vm4, %v2943_v49, 0.0 }
 0x26f   :  { %v312_v51 = vpack.c.bf16 %v2949_v50, %v2949_v50 }
 0x271   :  { %314 = vrot.lane.b32.xlu1 %v312_v51, %s2778_s28 }
 0x273   :  { %v283_v52 = vpop.permute.xlu0 %282 }
 0x274   :  { %v2954_v53 = vmul.f32 %v2576_v34, %v283_v52 }
 0x276   :  { %v2960_v54 = vsel %vm309_vm5, %v2954_v53, 0.0 }
 0x277   :  { %v413_v55 = vpack.c.bf16 %v2960_v54, %v2960_v54 }
 0x279   :  { %415 = vrot.lane.b32.xlu0 %v413_v55, %s2778_s28 }
 0x2e3   :  { %v315_v56 = vpop.permute.xlu1 %314 }
 0x2e4   :  { %2320 = vmatmul.mubr.msk.bf16.vlgmr.msra.gmra.mxu0 %vm81_vm3, %v315_v56  ;;  %v3068_v56 = vld [vmem:[%s3717_s0 + $0x10] sm:$0xff] }
 0x2e5   :  { %2332 = vmatpush3.bf16.msra.mxu0 %v2861_v2  ;;  %2335 = vmatprep.mubr.msk.bf16.mxu0 %vm2776_vm0, %v2775_v0 }
 0x2e6   :  { %2333 = vmatprep.subr.bf16.mxu0 %v2775_v0 }
 0x2e9   :  { %2334 = vmatpush3.bf16.msra.mxu0 %v2867_v3 }
 0x2ea   :  { %2347 = vmatprep.subr.bf16.mxu0 %v2775_v0 }
 0x2eb   :  { %v416_v57 = vpop.permute.xlu0 %415 }
 0x2ec   :  { %2328 = vmatmul.mubr.msk.bf16.vlgmr.msra.gmra.mxu1 %vm81_vm3, %v416_v57  ;;  %v566_v57 = vunpack.c.l.bf16 %v3068_v56 }
 0x2ed   :  { %2340 = vmatpush3.bf16.msra.mxu1 %v2875_v4  ;;  %2343 = vmatprep.mubr.msk.bf16.mxu1 %vm2776_vm0, %v2775_v0 }
 0x2ee   :  { %2341 = vmatprep.subr.bf16.mxu1 %v2775_v0 }
 0x2f1   :  { %2342 = vmatpush3.bf16.msra.mxu1 %v2884_v5 }
 0x2f2   :  { %2355 = vmatprep.subr.bf16.mxu1 %v2775_v0 }
 0x3a4   :  { %v353_v61 = vpop.f32.mrf.mxu0 }
 0x3a5   :  { %v362_v62 = vadd.f32 %v361_v59, %v353_v61  ;;  %v3074_v59 = vld [vmem:[%s3717_s0 + $0x28] sm:$0xff] }
 0x3a6   :  { %v2321_v6 = vpop.f32.mrf.mxu0  ;;  %v668_v63 = vrot.slane %v3074_v59, 4 }
 0x3a7   :  { %2581 = vtanh.f32 %v362_v62  ;;  %v2144_v17 = vmul.f32 -1.442695, %v362_v62 }
 0x3a8   :  { %v356_v7 = vpop.f32.mrf.mxu0 }
 0x3aa   :  { %v2322_v9 = vpop.f32.mrf.mxu0 }
 0x3ac   :  { %v454_v10 = vpop.f32.mrf.mxu1 }
 0x3ad   :  { %v466_v11 = vadd.f32 %v465_v8, %v454_v10  ;;  %v670_v8 = vunpack.c.l.bf16 %v668_v63 }
 0x3ae   :  { %v2329_v12 = vpop.f32.mrf.mxu1 }
 0x3af   :  { %2583 = vtanh.f32 %v466_v11  ;;  %v2148_v18 = vmul.f32 -1.442695, %v466_v11 }
 0x3b0   :  { %v457_v13 = vpop.f32.mrf.mxu1  ;;  %2585 = vpow2.f32 %v2144_v17 }
 0x3b1   :  { %2587 = vpow2.f32 %v2148_v18 }
 0x3b2   :  { %v2330_v14 = vpop.f32.mrf.mxu1 }
 0x3b4   :  { %v2582_v15 = vpop.eup %2581 }
 0x3b5   :  { %372 = vrot.lane.b32.xlu1 %v2582_v15, %s2773_s4 }
 0x3bc   :  { %v2584_v16 = vpop.eup %2583 }
 0x3bd   :  { %476 = vrot.lane.b32.xlu0 %v2584_v16, %s2773_s4  ;;  %v2586_v19 = vpop.eup %2585 }
 0x3be   :  { %v366_v20 = vadd.f32 1.0, %v2586_v19  ;;  %v2588_v21 = vpop.eup %2587 }
 0x3bf   :  { %v470_v23 = vadd.f32 1.0, %v2588_v21 }
 0x3c0   :  { %2589 = vrcp.f32 %v366_v20 }
 0x3c1   :  { %2591 = vrcp.f32 %v470_v23 }
 0x3cd   :  { %v2590_v24 = vpop.eup %2589 }
 0x3ce   :  { %v2592_v28 = vpop.eup %2591  ;;  %v370_v33 = vmul.f32 %v2590_v24, %v3006_v32 }
 0x3cf   :  { %v474_v37 = vmul.f32 %v2592_v28, %v3015_v36 }
 0x427   :  { %v373_v25 = vpop.permute.xlu1 %372 }
 0x428   :  { %v375_v26 = vmul.f32 %v2590_v24, %v373_v25 }
 0x42a   :  { %377 = vrot.lane.b32.xlu1 %v375_v26, %s2778_s28 }
 0x42e   :  { %408 = vperm.xlu1 %2522, %v389_v27   ;;  %v594_v27 = vsel %vm592_vm10, 1, %v2777_v1 }
 0x42f   :  { %v477_v29 = vpop.permute.xlu0 %476 }
 0x430   :  { %v479_v30 = vmul.f32 %v2592_v28, %v477_v29 }
 0x432   :  { %481 = vrot.lane.b32.xlu0 %v479_v30, %s2778_s28 }
 0x436   :  { %512 = vperm.xlu0 %2521, %v493_v31   ;;  %v698_v31 = vsel %vm696_vm11, 1, %v2777_v1 }
 0x49c   :  { %v378_v34 = vpop.permute.xlu1 %377 }
 0x49d   :  { %v3009_v35 = vadd.f32 %v378_v34, %v370_v33 }
 0x49f   :  { %2593 = vtanh.f32 %v3009_v35 }
 0x4a4   :  { %v482_v38 = vpop.permute.xlu0 %481 }
 0x4a5   :  { %v3018_v39 = vadd.f32 %v482_v38, %v474_v37 }
 0x4a7   :  { %2595 = vtanh.f32 %v3018_v39 }
 0x4a9   :  { %v3023_v42 = vpop.permute.xlu1 %408 }
 0x4aa   :  { %vm410_vm8 = vcmp.eq.s32.totalorder %v3023_v42, 1 }
 0x4ab   :  { %v3093_v33 = vsel %vm410_vm8, %v3009_v35, %v3006_v32 }
 0x4ac   :  { %v2594_v40 = vpop.eup %2593 }
 0x4ad   :  { %383 = vrot.lane.b32.xlu1 %v2594_v40, %s2773_s4 }
 0x4b1   :  { %v3034_v46 = vpop.permute.xlu0 %512 }
 0x4b2   :  { %vm514_vm9 = vcmp.eq.s32.totalorder %v3034_v46, 1  ;;  %v287_v46 = vmax.f32 %v2954_v53, 0.0 }
 0x4b3   :  { %v3103_v40 = vsel %vm514_vm9, %v3018_v39, %v3015_v36 }
 0x4b4   :  { %v2596_v41 = vpop.eup %2595 }
 0x4b5   :  { %487 = vrot.lane.b32.xlu0 %v2596_v41, %s2773_s4 }
 0x51f   :  { %v384_v44 = vpop.permute.xlu1 %383 }
 0x520   :  { %v3025_v45 = vmul.f32 %v2590_v24, %v384_v44 }
 0x522   :  { %v3032_v43 = vsel %vm410_vm8, %v3025_v45, %v2949_v50 }
 0x523   :  { %v517_v47 = vpack.c.bf16 %v3032_v43, %v3032_v43 }
 0x525   :  { %519 = vrot.lane.b32.xlu1 %v517_v47, %s2778_s28 }
 0x527   :  { %v488_v48 = vpop.permute.xlu0 %487 }
 0x528   :  { %v3039_v51 = vmul.f32 %v2592_v28, %v488_v48 }
 0x52a   :  { %v3046_v52 = vsel %vm514_vm9, %v3039_v51, %v2960_v54 }
 0x52b   :  { %v618_v50 = vpack.c.bf16 %v3046_v52, %v3046_v52 }
 0x52d   :  { %620 = vrot.lane.b32.xlu0 %v618_v50, %s2778_s28 }
 0x597   :  { %v520_v55 = vpop.permute.xlu1 %519 }
 0x598   :  { %2336 = vmatmul.mubr.msk.bf16.vlgmr.msra.gmra.mxu0 %vm81_vm3, %v520_v55 }
 0x599   :  { %2348 = vmatpush3.bf16.msra.mxu0 %v2861_v2  ;;  %2351 = vmatprep.mubr.msk.bf16.mxu0 %vm2776_vm0, %v2775_v0 }
 0x59a   :  { %2349 = vmatprep.subr.bf16.mxu0 %v2775_v0 }
 0x59d   :  { %2350 = vmatpush3.bf16.msra.mxu0 %v2867_v3 }
 0x59e   :  { %2363 = vmatprep.subr.bf16.mxu0 %v2775_v0 }
 0x59f   :  { %v621_v54 = vpop.permute.xlu0 %620 }
 0x5a0   :  { %2344 = vmatmul.mubr.msk.bf16.vlgmr.msra.gmra.mxu1 %vm81_vm3, %v621_v54 }
 0x5a1   :  { %2356 = vmatpush3.bf16.msra.mxu1 %v2875_v4  ;;  %2359 = vmatprep.mubr.msk.bf16.mxu1 %vm2776_vm0, %v2775_v0 }
 0x5a2   :  { %2357 = vmatprep.subr.bf16.mxu1 %v2775_v0 }
 0x5a5   :  { %2358 = vmatpush3.bf16.msra.mxu1 %v2884_v5 }
 0x5a6   :  { %2371 = vmatprep.subr.bf16.mxu1 %v2775_v0 }
 0x658   :  { %v558_v61 = vpop.f32.mrf.mxu0 }
 0x659   :  { %v567_v62 = vadd.f32 %v566_v57, %v558_v61 }
 0x65a   :  { %v2337_v6 = vpop.f32.mrf.mxu0 }
 0x65b   :  { %2597 = vtanh.f32 %v567_v62  ;;  %v2152_v17 = vmul.f32 -1.442695, %v567_v62  ;;  %v3156_v6 = vld [vmem:[%s3717_s0 + $0x18] sm:$0xff] }
 0x65c   :  { %v561_v7 = vpop.f32.mrf.mxu0 }
 0x65d   :  { %v771_v7 = vunpack.c.l.bf16 %v3156_v6 }
 0x65e   :  { %v2338_v9 = vpop.f32.mrf.mxu0 }
 0x660   :  { %v659_v10 = vpop.f32.mrf.mxu1 }
 0x661   :  { %v671_v11 = vadd.f32 %v670_v8, %v659_v10  ;;  %v3162_v8 = vld [vmem:[%s3717_s0 + $0x20] sm:$0xff] }
 0x662   :  { %v2345_v12 = vpop.f32.mrf.mxu1 }
 0x663   :  { %2599 = vtanh.f32 %v671_v11  ;;  %v2156_v18 = vmul.f32 -1.442695, %v671_v11  ;;  %v873_v11 = vrot.slane %v3162_v8, 4 }
 0x664   :  { %v662_v13 = vpop.f32.mrf.mxu1  ;;  %2601 = vpow2.f32 %v2152_v17 }
 0x665   :  { %2603 = vpow2.f32 %v2156_v18 }
 0x666   :  { %v2346_v14 = vpop.f32.mrf.mxu1 }
 0x667   :  { %v875_v14 = vunpack.c.l.bf16 %v873_v11 }
 0x668   :  { %v2598_v15 = vpop.eup %2597 }
 0x669   :  { %577 = vrot.lane.b32.xlu1 %v2598_v15, %s2773_s4 }
 0x670   :  { %v2600_v16 = vpop.eup %2599 }
 0x671   :  { %681 = vrot.lane.b32.xlu0 %v2600_v16, %s2773_s4  ;;  %v2602_v19 = vpop.eup %2601 }
 0x672   :  { %v571_v20 = vadd.f32 1.0, %v2602_v19  ;;  %v2604_v21 = vpop.eup %2603 }
 0x673   :  { %v675_v23 = vadd.f32 1.0, %v2604_v21 }
 0x674   :  { %2605 = vrcp.f32 %v571_v20 }
 0x675   :  { %2607 = vrcp.f32 %v675_v23 }
 0x681   :  { %v2606_v24 = vpop.eup %2605 }
 0x682   :  { %v2608_v28 = vpop.eup %2607  ;;  %v575_v34 = vmul.f32 %v2606_v24, %v3093_v33 }
 0x683   :  { %v679_v41 = vmul.f32 %v2608_v28, %v3103_v40 }
 0x6db   :  { %v578_v25 = vpop.permute.xlu1 %577 }
 0x6dc   :  { %v580_v26 = vmul.f32 %v2606_v24, %v578_v25 }
 0x6de   :  { %582 = vrot.lane.b32.xlu1 %v580_v26, %s2778_s28 }
 0x6e2   :  { %613 = vperm.xlu1 %2522, %v594_v27  }
 0x6e3   :  { %v682_v29 = vpop.permute.xlu0 %681 }
 0x6e4   :  { %v684_v30 = vmul.f32 %v2608_v28, %v682_v29 }
 0x6e6   :  { %686 = vrot.lane.b32.xlu0 %v684_v30, %s2778_s28 }
 0x6ea   :  { %717 = vperm.xlu0 %2521, %v698_v31  }
 0x750   :  { %v583_v37 = vpop.permute.xlu1 %582 }
 0x751   :  { %v3096_v38 = vadd.f32 %v583_v37, %v575_v34  ;;  %v799_v37 = vsel %vm797_vm14, 1, %v2777_v1 }
 0x753   :  { %2609 = vtanh.f32 %v3096_v38 }
 0x758   :  { %v687_v44 = vpop.permute.xlu0 %686 }
 0x759   :  { %v3106_v47 = vadd.f32 %v687_v44, %v679_v41 }
 0x75b   :  { %2611 = vtanh.f32 %v3106_v47 }
 0x75d   :  { %v3111_v48 = vpop.permute.xlu1 %613 }
 0x75e   :  { %vm615_vm12 = vcmp.eq.s32.totalorder %v3111_v48, 1 }
 0x760   :  { %v2610_v32 = vpop.eup %2609 }
 0x761   :  { %588 = vrot.lane.b32.xlu1 %v2610_v32, %s2773_s4 }
 0x765   :  { %v3122_v39 = vpop.permute.xlu0 %717 }
 0x766   :  { %vm719_vm13 = vcmp.eq.s32.totalorder %v3122_v39, 1 }
 0x768   :  { %v2612_v35 = vpop.eup %2611 }
 0x769   :  { %692 = vrot.lane.b32.xlu0 %v2612_v35, %s2773_s4  ;;  %v903_v35 = vsel %vm901_vm15, 1, %v2777_v1 }
 0x7d3   :  { %v589_v50 = vpop.permute.xlu1 %588 }
 0x7d4   :  { %v3113_v55 = vmul.f32 %v2606_v24, %v589_v50  ;;  %v3181_v50 = vsel %vm615_vm12, %v3096_v38, %v3093_v33 }
 0x7d6   :  { %v3120_v36 = vsel %vm615_vm12, %v3113_v55, %v3032_v43 }
 0x7d7   :  { %v722_v54 = vpack.c.bf16 %v3120_v36, %v3120_v36 }
 0x7d9   :  { %724 = vrot.lane.b32.xlu1 %v722_v54, %s2778_s28 }
 0x7db   :  { %v693_v57 = vpop.permute.xlu0 %692 }
 0x7dc   :  { %v3127_v61 = vmul.f32 %v2608_v28, %v693_v57 }
 0x7de   :  { %v3134_v62 = vsel %vm719_vm13, %v3127_v61, %v3046_v52 }
 0x7df   :  { %v823_v43 = vpack.c.bf16 %v3134_v62, %v3134_v62 }
 0x7e1   :  { %825 = vrot.lane.b32.xlu0 %v823_v43, %s2778_s28 }
 0x84b   :  { %v725_v63 = vpop.permute.xlu1 %724 }
 0x84c   :  { %2352 = vmatmul.mubr.msk.bf16.vlgmr.msra.gmra.mxu0 %vm81_vm3, %v725_v63  ;;  %v3191_v63 = vsel %vm719_vm13, %v3106_v47, %v3103_v40 }
 0x84d   :  { %2364 = vmatpush3.bf16.msra.mxu0 %v2861_v2  ;;  %2367 = vmatprep.mubr.msk.bf16.mxu0 %vm2776_vm0, %v2775_v0 }
 0x84e   :  { %2365 = vmatprep.subr.bf16.mxu0 %v2775_v0 }
 0x851   :  { %2366 = vmatpush3.bf16.msra.mxu0 %v2867_v3 }
 0x852   :  { %2379 = vmatprep.subr.bf16.mxu0 %v2775_v0 }
 0x853   :  { %v826_v52 = vpop.permute.xlu0 %825 }
 0x854   :  { %2360 = vmatmul.mubr.msk.bf16.vlgmr.msra.gmra.mxu1 %vm81_vm3, %v826_v52 }
 0x855   :  { %2372 = vmatpush3.bf16.msra.mxu1 %v2875_v4  ;;  %2375 = vmatprep.mubr.msk.bf16.mxu1 %vm2776_vm0, %v2775_v0 }
 0x856   :  { %2373 = vmatprep.subr.bf16.mxu1 %v2775_v0 }
 0x859   :  { %2374 = vmatpush3.bf16.msra.mxu1 %v2884_v5 }
 0x85a   :  { %2387 = vmatprep.subr.bf16.mxu1 %v2775_v0 }
 0x90c   :  { %v763_v9 = vpop.f32.mrf.mxu0 }
 0x90d   :  { %v772_v10 = vadd.f32 %v771_v7, %v763_v9 }
 0x90e   :  { %v2353_v12 = vpop.f32.mrf.mxu0 }
 0x90f   :  { %2613 = vtanh.f32 %v772_v10  ;;  %v2160_v24 = vmul.f32 -1.442695, %v772_v10 }
 0x910   :  { %v766_v13 = vpop.f32.mrf.mxu0 }
 0x912   :  { %v2354_v15 = vpop.f32.mrf.mxu0 }
 0x914   :  { %v864_v16 = vpop.f32.mrf.mxu1 }
 0x915   :  { %v876_v17 = vadd.f32 %v875_v14, %v864_v16 }
 0x916   :  { %v2361_v18 = vpop.f32.mrf.mxu1 }
 0x917   :  { %2615 = vtanh.f32 %v876_v17  ;;  %v2164_v25 = vmul.f32 -1.442695, %v876_v17  ;;  %v975_v17 = vunpack.c.l.bf16 %v3162_v8 }
 0x918   :  { %v867_v19 = vpop.f32.mrf.mxu1  ;;  %2617 = vpow2.f32 %v2160_v24 }
 0x919   :  { %2619 = vpow2.f32 %v2164_v25 }
 0x91a   :  { %v2362_v20 = vpop.f32.mrf.mxu1 }
 0x91b   :  { %v1064_v20 = vrot.slane %v3156_v6, 4 }
 0x91c   :  { %v2614_v21 = vpop.eup %2613 }
 0x91d   :  { %782 = vrot.lane.b32.xlu1 %v2614_v21, %s2773_s4  ;;  %v1066_v24 = vunpack.c.l.bf16 %v1064_v20 }
 0x924   :  { %v2616_v23 = vpop.eup %2615 }
 0x925   :  { %886 = vrot.lane.b32.xlu0 %v2616_v23, %s2773_s4  ;;  %v2618_v26 = vpop.eup %2617 }
 0x926   :  { %v776_v27 = vadd.f32 1.0, %v2618_v26  ;;  %v2620_v28 = vpop.eup %2619 }
 0x927   :  { %v880_v29 = vadd.f32 1.0, %v2620_v28 }
 0x928   :  { %2621 = vrcp.f32 %v776_v27 }
 0x929   :  { %2623 = vrcp.f32 %v880_v29 }
 0x935   :  { %v2622_v30 = vpop.eup %2621 }
 0x936   :  { %v2624_v41 = vpop.eup %2623  ;;  %v780_v54 = vmul.f32 %v2622_v30, %v3181_v50 }
 0x937   :  { %v884_v1 = vmul.f32 %v2624_v41, %v3191_v63 }
 0x98f   :  { %v783_v31 = vpop.permute.xlu1 %782 }
 0x990   :  { %v785_v34 = vmul.f32 %v2622_v30, %v783_v31 }
 0x992   :  { %787 = vrot.lane.b32.xlu1 %v785_v34, %s2778_s28 }
 0x996   :  { %818 = vperm.xlu1 %2522, %v799_v37  }
 0x997   :  { %v887_v44 = vpop.permute.xlu0 %886 }
 0x998   :  { %v889_v32 = vmul.f32 %v2624_v41, %v887_v44 }
 0x99a   :  { %891 = vrot.lane.b32.xlu0 %v889_v32, %s2778_s28 }
 0x99e   :  { %922 = vperm.xlu0 %2521, %v903_v35  }
 0xa04   :  { %v788_v57 = vpop.permute.xlu1 %787 }
 0xa05   :  { %v3184_v43 = vadd.f32 %v788_v57, %v780_v54 }
 0xa07   :  { %2625 = vtanh.f32 %v3184_v43 }
 0xa0c   :  { %v892_v52 = vpop.permute.xlu0 %891 }
 0xa0d   :  { %v3194_v7 = vadd.f32 %v892_v52, %v884_v1 }
 0xa0f   :  { %2627 = vtanh.f32 %v3194_v7 }
 0xa11   :  { %v3199_v9 = vpop.permute.xlu1 %818 }
 0xa12   :  { %vm820_vm4 = vcmp.eq.s32.totalorder %v3199_v9, 1 }
 0xa14   :  { %v2626_v33 = vpop.eup %2625 }
 0xa15   :  { %793 = vrot.lane.b32.xlu1 %v2626_v33, %s2773_s4 }
 0xa19   :  { %v3210_v47 = vpop.permute.xlu0 %922 }
 0xa1a   :  { %vm924_vm5 = vcmp.eq.s32.totalorder %v3210_v47, 1 }
 0xa1c   :  { %v2628_v38 = vpop.eup %2627 }
 0xa1d   :  { %897 = vrot.lane.b32.xlu0 %v2628_v38, %s2773_s4  ;;  %v3251_v38 = vsel %vm820_vm4, %v3184_v43, %v3181_v50 }
 0xa87   :  { %v794_v10 = vpop.permute.xlu1 %793 }
 0xa88   :  { %v3201_v11 = vmul.f32 %v2622_v30, %v794_v10 }
 0xa8a   :  { %v3208_v40 = vsel %vm820_vm4, %v3201_v11, %v3120_v36 }
 0xa8b   :  { %v927_v12 = vpack.c.bf16 %v3208_v40, %v3208_v40 }
 0xa8d   :  { %929 = vrot.lane.b32.xlu1 %v927_v12, %s2778_s28 }
 0xa8f   :  { %v898_v13 = vpop.permute.xlu0 %897 }
 0xa90   :  { %v3215_v14 = vmul.f32 %v2624_v41, %v898_v13 }
 0xa92   :  { %v3222_v15 = vsel %vm924_vm5, %v3215_v14, %v3134_v62 }
 0xa93   :  { %v1015_v36 = vpack.c.bf16 %v3222_v15, %v3222_v15 }
 0xa95   :  { %1017 = vrot.lane.b32.xlu0 %v1015_v36, %s2778_s28  ;;  %v3261_v36 = vsel %vm924_vm5, %v3194_v7, %v3191_v63 }
 0xaff   :  { %v930_v16 = vpop.permute.xlu1 %929 }
 0xb00   :  { %2368 = vmatmul.mubr.msk.bf16.vlgmr.msra.gmra.mxu0 %vm81_vm3, %v930_v16 }
 0xb01   :  { %2380 = vmatpush3.bf16.msra.mxu0 %v2861_v2  ;;  %2383 = vmatprep.mubr.msk.bf16.mxu0 %vm2776_vm0, %v2775_v0 }
 0xb02   :  { %2381 = vmatprep.subr.bf16.mxu0 %v2775_v0 }
 0xb05   :  { %2382 = vmatpush3.bf16.msra.mxu0 %v2867_v3 }
 0xb06   :  { %2395 = vmatprep.subr.bf16.mxu0 %v2775_v0 }
 0xb07   :  { %v1018_v62 = vpop.permute.xlu0 %1017 }
 0xb08   :  { %2376 = vmatmul.mubr.msk.bf16.vlgmr.msra.gmra.mxu1 %vm81_vm3, %v1018_v62 }
 0xb09   :  { %2388 = vmatpush3.bf16.msra.mxu1 %v2875_v4  ;;  %2391 = vmatprep.mubr.msk.bf16.mxu1 %vm2776_vm0, %v2775_v0 }
 0xb0a   :  { %2389 = vmatprep.subr.bf16.mxu1 %v2775_v0 }
 0xb0d   :  { %2390 = vmatpush3.bf16.msra.mxu1 %v2884_v5 }
 0xb0e   :  { %2403 = vmatprep.subr.bf16.mxu1 %v2775_v0 }
 0xbc0   :  { %v968_v18 = vpop.f32.mrf.mxu0 }
 0xbc1   :  { %v976_v19 = vadd.f32 %v975_v17, %v968_v18 }
 0xbc2   :  { %v2369_v21 = vpop.f32.mrf.mxu0 }
 0xbc3   :  { %2629 = vtanh.f32 %v976_v19  ;;  %v2168_v8 = vmul.f32 -1.442695, %v976_v19 }
 0xbc4   :  { %v971_v23 = vpop.f32.mrf.mxu0 }
 0xbc6   :  { %v2370_v25 = vpop.f32.mrf.mxu0 }
 0xbc8   :  { %v1056_v26 = vpop.f32.mrf.mxu1 }
 0xbc9   :  { %v1067_v27 = vadd.f32 %v1066_v24, %v1056_v26  ;;  %v1243_v26 = vrot.slane %v3068_v56, 4 }
 0xbca   :  { %v2377_v28 = vpop.f32.mrf.mxu1 }
 0xbcb   :  { %2631 = vtanh.f32 %v1067_v27  ;;  %v2171_v6 = vmul.f32 -1.442695, %v1067_v27 }
 0xbcc   :  { %v1059_v29 = vpop.f32.mrf.mxu1  ;;  %2633 = vpow2.f32 %v2168_v8 }
 0xbcd   :  { %2635 = vpow2.f32 %v2171_v6  ;;  %v1245_v29 = vunpack.c.l.bf16 %v1243_v26  ;;  %v2701_v26 = vld [vmem:[%s3720_s3 + $0x18] sm:$0xff]  }
 0xbce   :  { %v2378_v30 = vpop.f32.mrf.mxu1 }
 0xbd0   :  { %v2630_v31 = vpop.eup %2629 }
 0xbd1   :  { %986 = vrot.lane.b32.xlu1 %v2630_v31, %s2773_s4 }
 0xbd8   :  { %v2632_v34 = vpop.eup %2631 }
 0xbd9   :  { %1077 = vrot.lane.b32.xlu0 %v2632_v34, %s2773_s4  ;;  %v2634_v37 = vpop.eup %2633 }
 0xbda   :  { %v980_v41 = vadd.f32 1.0, %v2634_v37  ;;  %v2636_v44 = vpop.eup %2635 }
 0xbdb   :  { %v1071_v32 = vadd.f32 1.0, %v2636_v44 }
 0xbdc   :  { %2637 = vrcp.f32 %v980_v41 }
 0xbdd   :  { %2639 = vrcp.f32 %v1071_v32 }
 0xbe9   :  { %v2638_v35 = vpop.eup %2637 }
 0xbea   :  { %v2640_v1 = vpop.eup %2639  ;;  %v984_v10 = vmul.f32 %v2638_v35, %v3251_v38 }
 0xbeb   :  { %v1075_v16 = vmul.f32 %v2640_v1, %v3261_v36 }
 0xc43   :  { %v987_v54 = vpop.permute.xlu1 %986 }
 0xc44   :  { %v989_v57 = vmul.f32 %v2638_v35, %v987_v54 }
 0xc46   :  { %991 = vrot.lane.b32.xlu1 %v989_v57, %s2778_s28 }
 0xc4b   :  { %v1078_v52 = vpop.permute.xlu0 %1077 }
 0xc4c   :  { %v1080_v33 = vmul.f32 %v2640_v1, %v1078_v52 }
 0xc4e   :  { %1082 = vrot.lane.b32.xlu0 %v1080_v33, %s2778_s28 }
 0xcb8   :  { %v992_v12 = vpop.permute.xlu1 %991 }
 0xcb9   :  { %v3254_v13 = vadd.f32 %v992_v12, %v984_v10 }
 0xcbb   :  { %2641 = vtanh.f32 %v3254_v13  ;;  %v3315_v12 = vsel %vm924_vm5, %v3254_v13, %v3251_v38 }
 0xcc0   :  { %v1083_v62 = vpop.permute.xlu0 %1082 }
 0xcc1   :  { %v3264_v17 = vadd.f32 %v1083_v62, %v1075_v16 }
 0xcc3   :  { %2643 = vtanh.f32 %v3264_v17 }
 0xcc8   :  { %v2642_v50 = vpop.eup %2641 }
 0xcc9   :  { %997 = vrot.lane.b32.xlu1 %v2642_v50, %s2773_s4 }
 0xcd0   :  { %v2644_v43 = vpop.eup %2643 }
 0xcd1   :  { %1088 = vrot.lane.b32.xlu0 %v2644_v43, %s2773_s4  ;;  %v3325_v43 = vsel %vm820_vm4, %v3264_v17, %v3261_v36 }
 0xd3b   :  { %v998_v18 = vpop.permute.xlu1 %997 }
 0xd3c   :  { %v3269_v19 = vmul.f32 %v2638_v35, %v998_v18 }
 0xd3e   :  { %v3275_v63 = vsel %vm924_vm5, %v3269_v19, %v3208_v40 }
 0xd3f   :  { %v1106_v7 = vpack.c.bf16 %v3275_v63, %v3275_v63 }
 0xd41   :  { %1108 = vrot.lane.b32.xlu1 %v1106_v7, %s2778_s28 }
 0xd43   :  { %v1089_v20 = vpop.permute.xlu0 %1088 }
 0xd44   :  { %v3280_v21 = vmul.f32 %v2640_v1, %v1089_v20 }
 0xd46   :  { %v3286_v23 = vsel %vm820_vm4, %v3280_v21, %v3222_v15 }
 0xd47   :  { %v1194_v24 = vpack.c.bf16 %v3286_v23, %v3286_v23 }
 0xd49   :  { %1196 = vrot.lane.b32.xlu0 %v1194_v24, %s2778_s28 }
 0xdb3   :  { %v1109_v40 = vpop.permute.xlu1 %1108 }
 0xdb4   :  { %2384 = vmatmul.mubr.msk.bf16.vlgmr.msra.gmra.mxu0 %vm81_vm3, %v1109_v40 }
 0xdb5   :  { %2396 = vmatpush3.bf16.msra.mxu0 %v2861_v2  ;;  %2399 = vmatprep.mubr.msk.bf16.mxu0 %vm2776_vm0, %v2775_v0  ;;  %v1154_v2 = vunpack.c.l.bf16 %v3074_v59 }
 0xdb6   :  { %2397 = vmatprep.subr.bf16.mxu0 %v2775_v0 }
 0xdb9   :  { %2398 = vmatpush3.bf16.msra.mxu0 %v2867_v3 }
 0xdba   :  { %2411 = vmatprep.subr.bf16.mxu0 %v2775_v0 }
 0xdbb   :  { %v1197_v15 = vpop.permute.xlu0 %1196 }
 0xdbc   :  { %2392 = vmatmul.mubr.msk.bf16.vlgmr.msra.gmra.mxu1 %vm81_vm3, %v1197_v15 }
 0xdbd   :  { %2404 = vmatpush3.bf16.msra.mxu1 %v2875_v4  ;;  %2407 = vmatprep.mubr.msk.bf16.mxu1 %vm2776_vm0, %v2775_v0 }
 0xdbe   :  { %2405 = vmatprep.subr.bf16.mxu1 %v2775_v0 }
 0xdc1   :  { %2406 = vmatpush3.bf16.msra.mxu1 %v2884_v5 }
 0xdc2   :  { %2419 = vmatprep.subr.bf16.mxu1 %v2775_v0 }
 0xe74   :  { %v1147_v25 = vpop.f32.mrf.mxu0 }
 0xe75   :  { %v1155_v3 = vadd.f32 %v1154_v2, %v1147_v25  ;;  %v2699_v25 = vld [vmem:[%s3720_s3 + $0x8] sm:$0xff]  }
 0xe76   :  { %v2385_v27 = vpop.f32.mrf.mxu0 }
 0xe77   :  { %2645 = vtanh.f32 %v1155_v3  ;;  %v2174_v59 = vmul.f32 -1.442695, %v1155_v3  ;;  %v2702_v27 = vld [vmem:[%s3720_s3 + $0x10] sm:$0xff]  }
 0xe78   :  { %v1150_v28 = vpop.f32.mrf.mxu0 }
 0xe79   :  { %v1333_v28 = vunpack.c.l.bf16 %v2988_v60 }
 0xe7a   :  { %v2386_v4 = vpop.f32.mrf.mxu0 }
 0xe7c   :  { %v1235_v30 = vpop.f32.mrf.mxu1 }
 0xe7d   :  { %v1246_v31 = vadd.f32 %v1245_v29, %v1235_v30  ;;  %v1422_v30 = vrot.slane %v2982_v58, 4 }
 0xe7e   :  { %v2393_v34 = vpop.f32.mrf.mxu1 }
 0xe7f   :  { %2647 = vtanh.f32 %v1246_v31  ;;  %v2177_v56 = vmul.f32 -1.442695, %v1246_v31 }
 0xe80   :  { %v1238_v8 = vpop.f32.mrf.mxu1  ;;  %2649 = vpow2.f32 %v2174_v59 }
 0xe81   :  { %2651 = vpow2.f32 %v2177_v56  ;;  %v1424_v8 = vunpack.c.l.bf16 %v1422_v30 }
 0xe82   :  { %v2394_v6 = vpop.f32.mrf.mxu1 }
 0xe84   :  { %v2646_v5 = vpop.eup %2645 }
 0xe85   :  { %1165 = vrot.lane.b32.xlu1 %v2646_v5, %s2773_s4 }
 0xe8c   :  { %v2648_v37 = vpop.eup %2647 }
 0xe8d   :  { %1256 = vrot.lane.b32.xlu0 %v2648_v37, %s2773_s4  ;;  %v2650_v41 = vpop.eup %2649 }
 0xe8e   :  { %v1159_v44 = vadd.f32 1.0, %v2650_v41  ;;  %v2652_v32 = vpop.eup %2651 }
 0xe8f   :  { %v1250_v35 = vadd.f32 1.0, %v2652_v32 }
 0xe90   :  { %2653 = vrcp.f32 %v1159_v44 }
 0xe91   :  { %2655 = vrcp.f32 %v1250_v35 }
 0xe9d   :  { %v2654_v54 = vpop.eup %2653 }
 0xe9e   :  { %v2656_v52 = vpop.eup %2655  ;;  %v1163_v16 = vmul.f32 %v2654_v54, %v3315_v12 }
 0xe9f   :  { %v1254_v18 = vmul.f32 %v2656_v52, %v3325_v43 }
 0xef7   :  { %v1166_v57 = vpop.permute.xlu1 %1165 }
 0xef8   :  { %v1168_v1 = vmul.f32 %v2654_v54, %v1166_v57 }
 0xefa   :  { %1170 = vrot.lane.b32.xlu1 %v1168_v1, %s2778_s28 }
 0xeff   :  { %v1257_v33 = vpop.permute.xlu0 %1256 }
 0xf00   :  { %v1259_v10 = vmul.f32 %v2656_v52, %v1257_v33 }
 0xf02   :  { %1261 = vrot.lane.b32.xlu0 %v1259_v10, %s2778_s28 }
 0xf6c   :  { %v1171_v62 = vpop.permute.xlu1 %1170 }
 0xf6d   :  { %v3318_v50 = vadd.f32 %v1171_v62, %v1163_v16 }
 0xf6f   :  { %2657 = vtanh.f32 %v3318_v50 }
 0xf74   :  { %v1262_v7 = vpop.permute.xlu0 %1261 }
 0xf75   :  { %v3328_v20 = vadd.f32 %v1262_v7, %v1254_v18  ;;  %v3387_v7 = vsel %vm719_vm13, %v3318_v50, %v3315_v12 }
 0xf77   :  { %2659 = vtanh.f32 %v3328_v20 }
 0xf7c   :  { %v2658_v47 = vpop.eup %2657 }
 0xf7d   :  { %1176 = vrot.lane.b32.xlu1 %v2658_v47, %s2773_s4 }
 0xf84   :  { %v2660_v38 = vpop.eup %2659 }
 0xf85   :  { %1267 = vrot.lane.b32.xlu0 %v2660_v38, %s2773_s4 }
 0xfef   :  { %v1177_v13 = vpop.permute.xlu1 %1176 }
 0xff0   :  { %v3333_v24 = vmul.f32 %v2654_v54, %v1177_v13 }
 0xff2   :  { %v3339_v9 = vsel %vm719_vm13, %v3333_v24, %v3275_v63 }
 0xff3   :  { %v1285_v36 = vpack.c.bf16 %v3339_v9, %v3339_v9 }
 0xff5   :  { %1287 = vrot.lane.b32.xlu1 %v1285_v36, %s2778_s28  ;;  %v3397_v36 = vsel %vm615_vm12, %v3328_v20, %v3325_v43 }
 0xff7   :  { %v1268_v17 = vpop.permute.xlu0 %1267 }
 0xff8   :  { %v3344_v40 = vmul.f32 %v2656_v52, %v1268_v17 }
 0xffa   :  { %v3350_v15 = vsel %vm615_vm12, %v3344_v40, %v3286_v23  ;;  %v2700_v23 = vld [vmem:[%s3720_s3] sm:$0xff]  }
 0xffb   :  { %v1373_v2 = vpack.c.bf16 %v3350_v15, %v3350_v15 }
 0xffd   :  { %1375 = vrot.lane.b32.xlu0 %v1373_v2, %s2778_s28 }
0x1067   :  { %v1288_v63 = vpop.permute.xlu1 %1287 }
0x1068   :  { %2400 = vmatmul.mubr.msk.bf16.vlgmr.msra.gmra.mxu0 %vm81_vm3, %v1288_v63 }
0x1069   :  { %2412 = vmatpush3.bf16.msra.mxu0 %v2699_v25  ;;  %2415 = vmatprep.mubr.msk.bf16.mxu0 %vm2776_vm0, %v2775_v0 }
0x106a   :  { %2413 = vmatprep.subr.bf16.mxu0 %v2775_v0 }
0x106d   :  { %2414 = vmatpush3.bf16.msra.mxu0 %v2700_v23 }
0x106e   :  { %2427 = vmatprep.subr.mxu0 %v2775_v0 }
0x106f   :  { %v1376_v3 = vpop.permute.xlu0 %1375 }
0x1070   :  { %2408 = vmatmul.mubr.msk.bf16.vlgmr.msra.gmra.mxu1 %vm81_vm3, %v1376_v3 }
0x1071   :  { %2420 = vmatpush3.bf16.msra.mxu1 %v2701_v26  ;;  %2423 = vmatprep.mubr.msk.bf16.mxu1 %vm2776_vm0, %v2775_v0 }
0x1072   :  { %2421 = vmatprep.subr.bf16.mxu1 %v2775_v0 }
0x1075   :  { %2422 = vmatpush3.bf16.msra.mxu1 %v2702_v27 }
0x1076   :  { %2462 = vmatprep.subr.bf16.mxu1 %v2775_v0 }
0x1128   :  { %v1326_v29 = vpop.f32.mrf.mxu0 }
0x1129   :  { %v1334_v4 = vadd.f32 %v1333_v28, %v1326_v29  ;;  %v2185_v28 = vld [vmem:[%s3717_s0 + $0x38] sm:$0xf]  ;;  %v1597_v29 = vld [vmem:[%s3717_s0] sm:$0xff] }
0x112a   :  { %v2401_v31 = vpop.f32.mrf.mxu0 }
0x112b   :  { %2661 = vtanh.f32 %v1334_v4  ;;  %v2180_v60 = vmul.f32 -1.442695, %v1334_v4  ;;  %v1599_v31 = vrot.slane %v1597_v29, 4 }
0x112c   :  { %v1329_v34 = vpop.f32.mrf.mxu0 }
0x112e   :  { %v2402_v6 = vpop.f32.mrf.mxu0 }
0x112f   :  { %v2141_v6 = vsel %vm286_vm2, 1.0, %v2775_v0  ;;  %vm1718_vm2 = vcmask 785408  }
0x1130   :  { %v1414_v5 = vpop.f32.mrf.mxu1 }
0x1131   :  { %v1425_v37 = vadd.f32 %v1424_v8, %v1414_v5  ;;  %v2136_v8 = vsel %vm177_vm1, 1.0, %v2775_v0  ;;  %vm1716_vm1 = vcmask 523264  }
0x1132   :  { %v2409_v59 = vpop.f32.mrf.mxu1 }
0x1133   :  { %2663 = vtanh.f32 %v1425_v37  ;;  %v2183_v58 = vmul.f32 -1.442695, %v1425_v37  ;;  %v1601_v37 = vunpack.c.l.bf16 %v1599_v31 }
0x1134   :  { %v1417_v56 = vpop.f32.mrf.mxu1  ;;  %2665 = vpow2.f32 %v2180_v60 }
0x1135   :  { %2667 = vpow2.f32 %v2183_v58  ;;  %v2523_v56 = vpack.i.bf16 %v2141_v6, %v2136_v8  ;;  %v178_v8 = vmax.f32 %v2943_v49, 0.0 }
0x1136   :  { %v2410_v41 = vpop.f32.mrf.mxu1 }
0x1138   :  { %v2662_v44 = vpop.eup %2661 }
0x1139   :  { %1344 = vrot.lane.b32.xlu1 %v2662_v44, %s2773_s4  ;;  %v2153_v44 = vsel %vm592_vm10, 1.0, %v2775_v0 }
0x1140   :  { %v2664_v32 = vpop.eup %2663 }
0x1141   :  { %1435 = vrot.lane.b32.xlu0 %v2664_v32, %s2773_s4  ;;  %v2666_v35 = vpop.eup %2665  ;;  %v2157_v32 = vsel %vm696_vm11, 1.0, %v2775_v0 }
0x1142   :  { %v1338_v54 = vadd.f32 1.0, %v2666_v35  ;;  %v2668_v57 = vpop.eup %2667  ;;  %v2145_v35 = vsel %vm387_vm6, 1.0, %v2775_v0 }
0x1143   :  { %v1429_v1 = vadd.f32 1.0, %v2668_v57 }
0x1144   :  { %2669 = vrcp.f32 %v1338_v54  ;;  %v2149_v54 = vsel %vm491_vm7, 1.0, %v2775_v0 }
0x1145   :  { %2671 = vrcp.f32 %v1429_v1  ;;  %v2533_v1 = vpack.i.bf16 %v2157_v32, %v2153_v44 }
0x1151   :  { %v2670_v52 = vpop.eup %2669 }
0x1152   :  { %v2672_v16 = vpop.eup %2671  ;;  %v1342_v47 = vmul.f32 %v2670_v52, %v3387_v7 }
0x1153   :  { %v1433_v17 = vmul.f32 %v2672_v16, %v3397_v36 }
0x11ab   :  { %v1345_v33 = vpop.permute.xlu1 %1344 }
0x11ac   :  { %v1347_v10 = vmul.f32 %v2670_v52, %v1345_v33  ;;  %v2528_v33 = vpack.i.bf16 %v2149_v54, %v2145_v35  ;;  %v388_v35 = vmax.f32 %v3025_v45, 0.0  ;;  %v3504_v54 = vld [vmem:[#allocation6 + $0x28] sm:$0xff] }
0x11ae   :  { %1349 = vrot.lane.b32.xlu1 %v1347_v10, %s2778_s28  ;;  %v2161_v10 = vsel %vm797_vm14, 1.0, %v2775_v0 }
0x11b3   :  { %v1436_v62 = vpop.permute.xlu0 %1435 }
0x11b4   :  { %v1438_v18 = vmul.f32 %v2672_v16, %v1436_v62 }
0x11b6   :  { %1440 = vrot.lane.b32.xlu0 %v1438_v18, %s2778_s28 }
0x1220   :  { %v1350_v38 = vpop.permute.xlu1 %1349 }
0x1221   :  { %v3390_v13 = vadd.f32 %v1350_v38, %v1342_v47 }
0x1223   :  { %2673 = vtanh.f32 %v3390_v13 }
0x1228   :  { %v1441_v2 = vpop.permute.xlu0 %1440 }
0x1229   :  { %v3400_v63 = vadd.f32 %v1441_v2, %v1433_v17 }
0x122b   :  { %2675 = vtanh.f32 %v3400_v63  ;;  %v1463_v29 = vsel %vm410_vm8, %v3400_v63, %v3397_v36 }
0x1230   :  { %v2674_v39 = vpop.eup %2673 }
0x1231   :  { %1355 = vrot.lane.b32.xlu1 %v2674_v39, %s2773_s4 }
0x1238   :  { %v2676_v12 = vpop.eup %2675 }
0x1239   :  { %1446 = vrot.lane.b32.xlu0 %v2676_v12, %s2773_s4 }
0x12a3   :  { %v1356_v50 = vpop.permute.xlu1 %1355 }
0x12a4   :  { %v3405_v25 = vmul.f32 %v2670_v52, %v1356_v50 }
0x12a6   :  { %v1371_v48 = vsel %vm514_vm9, %v3405_v25, %v3339_v9 }
0x12a7   :  { %v1464_v43 = vpack.c.bf16 %v1371_v48, %v1371_v48 }
0x12a9   :  { %1466 = vrot.lane.b32.xlu1 %v1464_v43, %s2778_s28 }
0x12ab   :  { %v1447_v20 = vpop.permute.xlu0 %1446 }
0x12ac   :  { %v3412_v23 = vmul.f32 %v2672_v16, %v1447_v20  ;;  %v2165_v16 = vsel %vm901_vm15, 1.0, %v2775_v0 }
0x12ad   :  { %v2538_v18 = vpack.i.bf16 %v2165_v16, %v2161_v10  ;;  %v3513_v16 = vld [vmem:[#allocation6 + $0x30] sm:$0xff] }
0x12ae   :  { %v1462_v3 = vsel %vm410_vm8, %v3412_v23, %v3350_v15  ;;  %v1512_v15 = vunpack.c.l.bf16 %v2185_v28 }
0x12af   :  { %v1550_v26 = vpack.c.bf16 %v1462_v3, %v1462_v3 }
0x12b1   :  { %1552 = vrot.lane.b32.xlu0 %v1550_v26, %s2778_s28 }
0x131b   :  { %v1467_v27 = vpop.permute.xlu1 %1466 }
0x131c   :  { %2416 = vmatmul.mubr.msk.bf16.vlgmr.msra.gmra.mxu0 %vm81_vm3, %v1467_v27  ;;  %v1372_v27 = vsel %vm514_vm9, %v3390_v13, %v3387_v7  ;;  %v3477_v7 = vld [vmem:[#allocation6] sm:$0xff] }
0x131d   :  { %2459 = vmatprep.mubr.msk.f32.mxu0 %vm2776_vm0, %v2775_v0  ;;  %v1647_v63 = vmax.f32 %v3477_v7, 0.0 }
0x1323   :  { %v1553_v9 = vpop.permute.xlu0 %1552 }
0x1324   :  { %2424 = vmatmul.mubr.msk.bf16.vlgmr.msra.gmra.mxu1 %vm81_vm3, %v1553_v9 }
0x1325   :  { %2478 = vmatprep.mubr.msk.bf16.mxu1 %vm2776_vm0, %v2775_v0 }
0x13dc   :  { %v1505_v4 = vpop.f32.mrf.mxu0 }
0x13dd   :  { %v1513_v30 = vadd.f32 %v1512_v15, %v1505_v4 }
0x13de   :  { %v2417_v34 = vpop.f32.mrf.mxu0 }
0x13df   :  { %2677 = vtanh.f32 %v1513_v30  ;;  %v2186_v38 = vmul.f32 -1.442695, %v1513_v30 }
0x13e0   :  { %v1508_v5 = vpop.f32.mrf.mxu0 }
0x13e1   :  { %v3486_v5 = vld [vmem:[#allocation6 + $0x10] sm:$0xff] }
0x13e2   :  { %v2418_v59 = vpop.f32.mrf.mxu0  ;;  %v1649_v49 = vmax.f32 %v3486_v5, 0.0 }
0x13e3   :  { %v3488_v59 = vld [vmem:[#allocation6 + $0x8] sm:$0xff] }
0x13e4   :  { %v1591_v41 = vpop.f32.mrf.mxu1 }
0x13e5   :  { %v1602_v60 = vadd.f32 %v1601_v37, %v1591_v41  ;;  %v3496_v41 = vld [vmem:[#allocation6 + $0x18] sm:$0xff] }
0x13e6   :  { %v2425_v58 = vpop.f32.mrf.mxu1 }
0x13e7   :  { %2679 = vtanh.f32 %v1602_v60  ;;  %v2188_v17 = vmul.f32 -1.442695, %v1602_v60  ;;  %v3501_v58 = vld [vmem:[#allocation6 + $0x20] sm:$0xff] }
0x13e8   :  { %v1594_v57 = vpop.f32.mrf.mxu1  ;;  %2681 = vpow2.f32 %v2186_v38  ;;  %v593_v38 = vmax.f32 %v3113_v55, 0.0 }
0x13e9   :  { %2683 = vpow2.f32 %v2188_v17 }
0x13ea   :  { %v2426_v52 = vpop.f32.mrf.mxu1 }
0x13eb   :  { %v1650_v52 = vmax.f32 %v3496_v41, 0.0 }
0x13ec   :  { %v2678_v62 = vpop.eup %2677 }
0x13ed   :  { %1523 = vrot.lane.b32.xlu1 %v2678_v62, %s2773_s4  ;;  %v1651_v62 = vmax.f32 %v3501_v58, 0.0 }
0x13ef   :  { %v1692_v5 = vsel %vm81_vm3, %v1651_v62, -inf }
0x13f4   :  { %v2680_v47 = vpop.eup %2679 }
0x13f5   :  { %1612 = vrot.lane.b32.xlu0 %v2680_v47, %s2773_s4  ;;  %v2682_v2 = vpop.eup %2681  ;;  %v492_v47 = vmax.f32 %v3039_v51, 0.0 }
0x13f6   :  { %v1517_v39 = vadd.f32 1.0, %v2682_v2  ;;  %v2684_v12 = vpop.eup %2683  ;;  %v1652_v2 = vmax.f32 %v3504_v54, 0.0 }
0x13f7   :  { %v1606_v50 = vadd.f32 1.0, %v2684_v12 }
0x13f8   :  { %2685 = vrcp.f32 %v1517_v39 }
0x13f9   :  { %2687 = vrcp.f32 %v1606_v50 }
0x1405   :  { %v3457_v48 = vpop.eup %2685 }
0x1406   :  { %v3461_v20 = vpop.eup %2687  ;;  %v1521_v28 = vmul.f32 %v3457_v48, %v1372_v27 }
0x1407   :  { %v1610_v4 = vmul.f32 %v3461_v20, %v1463_v29 }
0x145f   :  { %v1524_v22 = vpop.permute.xlu1 %1523 }
0x1460   :  { %v1526_v43 = vmul.f32 %v3457_v48, %v1524_v22 }
0x1462   :  { %1528 = vrot.lane.b32.xlu1 %v1526_v43, %s2778_s28 }
0x1466   :  { %2524 = vperm.xlu1 %2522, %v2523_v56   ;;  %v1648_v56 = vmax.f32 %v3488_v59, 0.0 }
0x1467   :  { %v1613_v3 = vpop.permute.xlu0 %1612 }
0x1468   :  { %v1615_v26 = vmul.f32 %v3461_v20, %v1613_v3  ;;  %v1653_v3 = vmax.f32 %v3513_v16, 0.0 }
0x146a   :  { %2534 = vperm.xlu1 %2522, %v2533_v1   ;;  %1617 = vrot.lane.b32.xlu0 %v1615_v26, %s2778_s28  ;;  %v1696_v7 = vsel %vm81_vm3, %v1653_v3, -inf }
0x146e   :  { %2529 = vperm.xlu0 %2521, %v2528_v33  }
0x1472   :  { %2539 = vperm.xlu0 %2521, %v2538_v18  }
0x14d4   :  { %v1529_v9 = vpop.permute.xlu1 %1528 }
0x14d5   :  { %v1531_v15 = vadd.f32 %v1529_v9, %v1521_v28 }
0x14d7   :  { %2689 = vtanh.f32 %v1531_v15  ;;  %v697_v15 = vmax.f32 %v3127_v61, 0.0 }
0x14dc   :  { %v1618_v30 = vpop.permute.xlu0 %1617 }
0x14dd   :  { %v1620_v31 = vadd.f32 %v1618_v30, %v1610_v4  ;;  %v798_v4 = vmax.f32 %v3201_v11, 0.0  ;;  %v1001_v11 = vmax.f32 %v3269_v19, 0.0 }
0x14df   :  { %2691 = vtanh.f32 %v1620_v31 }
0x14e1   :  { %v2525_v34 = vpop.permute.xlu1 %2524 }
0x14e2   :  { %v3479_v13 = vunpack.i.h.bf16 %v2525_v34  ;;  %v3481_v6 = vunpack.i.l.bf16 %v2525_v34 }
0x14e4   :  { %v186_v42 = vmul.f32 %v3481_v6, %v178_v8  ;;  %v295_v36 = vmul.f32 %v3479_v13, %v287_v46  ;;  %v2690_v44 = vpop.eup %2689  ;;  %v1659_v32 = vmul.f32 %v3481_v6, %v1647_v63 }
0x14e5   :  { %v2535_v37 = vpop.permute.xlu1 %2534 }
0x14e6   :  { %189 = vrot.lane.b32.xlu1 %v186_v42, %s2778_s28  ;;  %298 = vrot.lane.b32.xlu0 %v295_v36, %s2778_s28  ;;  %v3493_v53 = vunpack.i.l.bf16 %v2535_v37  ;;  %v1667_v17 = vsel %vm81_vm3, %v1659_v32, 0.0  ;;  %v2537_v12 = vunpack.i.h.bf16 %v2535_v37  ;;  %v902_v36 = vmax.f32 %v3215_v14, 0.0 }
0x14e7   :  { %v1180_v14 = vmax.f32 %v3333_v24, 0.0 }
0x14e8   :  { %v1661_v10 = vmul.f32 %v3493_v53, %v1649_v49  ;;  %v601_v28 = vmul.f32 %v3493_v53, %v593_v38  ;;  %v1664_v30 = vmul.f32 %v2537_v12, %v1652_v2  ;;  %v705_v8 = vmul.f32 %v2537_v12, %v697_v15 }
0x14e9   :  { %v2530_v60 = vpop.permute.xlu0 %2529  ;;  %v1359_v38 = vmax.f32 %v3405_v25, 0.0 }
0x14ea   :  { %v3506_v57 = vunpack.i.l.bf16 %v2530_v60  ;;  %1534 = vrot.lane.b32.xlu1 %v2690_v44, %s2773_s4  ;;  %v2532_v1 = vunpack.i.h.bf16 %v2530_v60  ;;  %v1670_v55 = vsel %vm81_vm3, %v1661_v10, 0.0  ;;  %v1676_v44 = vsel %vm81_vm3, %v1664_v30, 0.0 }
0x14eb   :  { %v1092_v10 = vmax.f32 %v3280_v21, 0.0 }
0x14ec   :  { %v2692_v33 = vpop.eup %2691  ;;  %v1660_v45 = vmul.f32 %v3506_v57, %v1648_v56  ;;  %v396_v18 = vmul.f32 %v3506_v57, %v388_v35  ;;  %v500_v51 = vmul.f32 %v2532_v1, %v492_v47  ;;  %v1665_v46 = vmul.f32 %v2532_v1, %v1653_v3 }
0x14ed   :  { %v2540_v39 = vpop.permute.xlu0 %2539  ;;  %1623 = vrot.lane.b32.xlu0 %v2692_v33, %s2773_s4  ;;  %v1271_v47 = vmax.f32 %v3344_v40, 0.0  ;;  %v2703_v40 = vld [vmem:[%s3719_s2] sm:$0xff] }
0x14ee   :  { %v1668_v50 = vsel %vm81_vm3, %v1660_v45, 0.0  ;;  %v2542_v22 = vunpack.i.h.bf16 %v2540_v39  ;;  %v2541_v43 = vunpack.i.l.bf16 %v2540_v39  ;;  %399 = vrot.lane.b32.xlu1 %v396_v18, %s2778_s28  ;;  %v1678_v35 = vsel %vm81_vm3, %v1665_v46, 0.0 }
0x14ef   :  { %v1669_v26 = vadd.f32 %v1668_v50, %v1667_v17  ;;  %v1181_v18 = vmul.f32 %v2537_v12, %v1180_v14  ;;  %v1272_v21 = vmul.f32 %v3493_v53, %v1271_v47  ;;  %v1360_v17 = vmul.f32 %v2532_v1, %v1359_v38  ;;  %v187_v50 = vld [vmem:[#allocation2] sm:$0xff]  ;;  %v296_v53 = vld [vmem:[#allocation3] sm:$0xff]  ;;  %v303_v1 = vld [vmem:[#allocation5] sm:$0xff] }
0x14f0   :  { %v1663_v27 = vmul.f32 %v2542_v22, %v1651_v62  ;;  %v1662_v9 = vmul.f32 %v2541_v43, %v1650_v52  ;;  %v806_v61 = vmul.f32 %v2541_v43, %v798_v4  ;;  %v910_v32 = vmul.f32 %v2542_v22, %v902_v36 }
0x14f1   :  { %v1671_v29 = vadd.f32 %v1670_v55, %v1669_v26  ;;  %503 = vrot.lane.b32.xlu0 %v500_v51, %s2778_s28  ;;  %v1002_v33 = vmul.f32 %v2542_v22, %v1001_v11  ;;  %v1093_v19 = vmul.f32 %v2541_v43, %v1092_v10  ;;  %v1450_v39 = vmax.f32 %v3412_v23, 0.0  ;;  %v194_v22 = vld [vmem:[#allocation4] sm:$0xff] }
0x14f2   :  { %v1672_v31 = vsel %vm81_vm3, %v1662_v9, 0.0  ;;  %604 = vrot.lane.b32.xlu1 %v601_v28, %s2778_s28  ;;  %v1674_v42 = vsel %vm81_vm3, %v1663_v27, 0.0  ;;  %v1655_v25 = vcvt.s32.f32 %v2703_v40  ;;  %v1743_v40 = vld [vmem:[#allocation8 + $0x50] sm:$0xff] }
0x14f3   :  { %v1673_v34 = vadd.f32 %v1672_v31, %v1671_v29  ;;  %v1451_v24 = vmul.f32 %v3506_v57, %v1450_v39 }
0x14f4   :  { %v1656_v12 = vmax.f32 %v1655_v25, 1.0  ;;  %v1742_v25 = vld [vmem:[#allocation8 + $0x48] sm:$0xff] }
0x14f5   :  { %v1675_v37 = vadd.f32 %v1674_v42, %v1673_v34  ;;  %708 = vrot.lane.b32.xlu0 %v705_v8, %s2778_s28 }
0x14f6   :  { %809 = vrot.lane.b32.xlu1 %v806_v61, %s2778_s28  ;;  %2693 = vrcp.f32 %v1656_v12  ;;  %v1741_v12 = vld [vmem:[#allocation8 + $0x40] sm:$0xff] }
0x14f7   :  { %v1677_v60 = vadd.f32 %v1676_v44, %v1675_v37 }
0x14f9   :  { %913 = vrot.lane.b32.xlu0 %v910_v32, %s2778_s28  ;;  %v3552_v45 = vadd.f32 %v1678_v35, %v1677_v60  ;;  %v1747_v60 = vld [vmem:[#allocation8 + $0x70] sm:$0xff]  ;;  %v1746_v35 = vld [vmem:[#allocation8 + $0x68] sm:$0xff] }
0x14fa   :  { %1005 = vrot.lane.b32.xlu1 %v1002_v33, %s2778_s28 }
0x14fd   :  { %1096 = vrot.lane.b32.xlu0 %v1093_v19, %s2778_s28 }
0x14fe   :  { %1184 = vrot.lane.b32.xlu1 %v1181_v18, %s2778_s28 }
0x1501   :  { %1275 = vrot.lane.b32.xlu0 %v1272_v21, %s2778_s28  ;;  %v1745_v21 = vld [vmem:[#allocation8 + $0x60] sm:$0xff] }
0x1502   :  { %1363 = vrot.lane.b32.xlu1 %v1360_v17, %s2778_s28 }
0x1503   :  { %v2694_v11 = vpop.eup %2693 }
0x1505   :  { %1454 = vrot.lane.b32.xlu0 %v1451_v24, %s2778_s28  ;;  %v1744_v24 = vld [vmem:[#allocation8 + $0x58] sm:$0xff] }
0x1558   :  { %v190_v23 = vpop.permute.xlu1 %189  ;;  %v299_v43 = vpop.permute.xlu0 %298 }
0x1559   :  { %v192_v26 = vmax.f32 %v187_v50, %v190_v23  ;;  %v195_v51 = vadd.f32 %v194_v22, %v190_v23  ;;  %v301_v55 = vmax.f32 %v296_v53, %v299_v43  ;;  %v304_v27 = vadd.f32 %v303_v1, %v299_v43 }
0x155b   :  { %193 = vst.msk [vmem:[#allocation2] sm:$0xff] %vm81_vm3, %v192_v26  ;;  %196 = vst.msk [vmem:[#allocation4] sm:$0xff] %vm81_vm3, %v195_v51 }
0x155c   :  { %302 = vst.msk [vmem:[#allocation3] sm:$0xff] %vm81_vm3, %v301_v55  ;;  %305 = vst.msk [vmem:[#allocation5] sm:$0xff] %vm81_vm3, %v304_v27  ;;  %v1535_v57 = vpop.permute.xlu1 %1534  ;;  %v1740_v55 = vld [vmem:[#allocation8 + $0x38] sm:$0xff] }
0x155d   :  { %v1537_v9 = vmul.f32 %v3457_v48, %v1535_v57 }
0x155f   :  { %v1538_v28 = vmax.f32 %v1537_v9, 0.0  ;;  %v1624_v15 = vpop.permute.xlu0 %1623  ;;  %v1739_v9 = vld [vmem:[#allocation8 + $0x30] sm:$0xff] }
0x1560   :  { %v1626_v29 = vmul.f32 %v3461_v20, %v1624_v15  ;;  %v400_v8 = vpop.permute.xlu1 %399  ;;  %v1748_v20 = vld [vmem:[#allocation8 + $0x78] sm:$0xff]  ;;  %v1737_v15 = vld [vmem:[#allocation8 + $0x20] sm:$0xff] }
0x1561   :  { %v1539_v4 = vmul.f32 %v3479_v13, %v1538_v28  ;;  %2428 = vmatpush3.msra.mxu0 %v1748_v20  ;;  %v1738_v28 = vld [vmem:[#allocation8 + $0x28] sm:$0xff] }
0x1562   :  { %v1627_v30 = vmax.f32 %v1626_v29, 0.0  ;;  %v397_v31 = vld [vmem:[#allocation2] sm:$0xff]  ;;  %v404_v34 = vld [vmem:[#allocation4] sm:$0xff]  ;;  %2429 = vmatprep.subr.mxu0 %v2775_v0  ;;  %v1736_v29 = vld [vmem:[#allocation8 + $0x18] sm:$0xff] }
0x1563   :  { %v501_v46 = vld [vmem:[#allocation3] sm:$0xff]  ;;  %v402_v42 = vmax.f32 %v397_v31, %v400_v8  ;;  %v405_v61 = vadd.f32 %v404_v34, %v400_v8  ;;  %1542 = vrot.lane.b32.xlu1 %v1539_v4, %s2778_s28  ;;  %v508_v36 = vld [vmem:[#allocation5] sm:$0xff]  ;;  %v504_v37 = vpop.permute.xlu0 %503  ;;  %2430 = vmatpush3.msra.mxu0 %v1747_v60 }
0x1564   :  { %v1628_v48 = vmul.f32 %v3481_v6, %v1627_v30  ;;  %v506_v44 = vmax.f32 %v501_v46, %v504_v37  ;;  %v509_v32 = vadd.f32 %v508_v36, %v504_v37  ;;  %v605_v10 = vpop.permute.xlu1 %604  ;;  %2431 = vmatprep.subr.mxu0 %v2775_v0  ;;  %v1735_v36 = vld [vmem:[#allocation8 + $0x10] sm:$0xff] }
0x1565   :  { %403 = vst.msk [vmem:[#allocation2] sm:$0xff] %vm81_vm3, %v402_v42  ;;  %406 = vst.msk [vmem:[#allocation4] sm:$0xff] %vm81_vm3, %v405_v61  ;;  %2432 = vmatpush3.msra.mxu0 %v1746_v35 }
0x1566   :  { %507 = vst.msk [vmem:[#allocation3] sm:$0xff] %vm81_vm3, %v506_v44  ;;  %510 = vst.msk [vmem:[#allocation5] sm:$0xff] %vm81_vm3, %v509_v32  ;;  %1631 = vrot.lane.b32.xlu0 %v1628_v48, %s2778_s28  ;;  %2433 = vmatprep.subr.mxu0 %v2775_v0  ;;  %v1734_v48 = vld [vmem:[#allocation8 + $0x8] sm:$0xff] }
0x1567   :  { %1684 = vperm.xlu1 %2522, %v2694_v11   ;;  %v709_v38 = vpop.permute.xlu0 %708  ;;  %2434 = vmatpush3.msra.mxu0 %v1745_v21 }
0x1568   :  { %2435 = vmatprep.subr.mxu0 %v2775_v0  ;;  %v810_v53 = vpop.permute.xlu1 %809 }
0x1569   :  { %2436 = vmatpush3.msra.mxu0 %v1744_v24 }
0x156a   :  { %2437 = vmatprep.subr.mxu0 %v2775_v0 }
0x156b   :  { %2438 = vmatpush3.msra.mxu0 %v1743_v40  ;;  %v914_v51 = vpop.permute.xlu0 %913 }
0x156c   :  { %v602_v6 = vld [vmem:[#allocation2] sm:$0xff]  ;;  %v609_v33 = vld [vmem:[#allocation4] sm:$0xff]  ;;  %2439 = vmatprep.subr.mxu0 %v2775_v0  ;;  %v1006_v31 = vpop.permute.xlu1 %1005 }
0x156d   :  { %v607_v14 = vmax.f32 %v602_v6, %v605_v10  ;;  %v610_v19 = vadd.f32 %v609_v33, %v605_v10  ;;  %v706_v18 = vld [vmem:[#allocation3] sm:$0xff]  ;;  %v713_v47 = vld [vmem:[#allocation5] sm:$0xff]  ;;  %2440 = vmatpush3.msra.mxu0 %v1742_v25 }
0x156e   :  { %v711_v17 = vmax.f32 %v706_v18, %v709_v38  ;;  %v714_v39 = vadd.f32 %v713_v47, %v709_v38  ;;  %2441 = vmatprep.subr.mxu0 %v2775_v0 }
0x156f   :  { %608 = vst.msk [vmem:[#allocation2] sm:$0xff] %vm81_vm3, %v607_v14  ;;  %611 = vst.msk [vmem:[#allocation4] sm:$0xff] %vm81_vm3, %v610_v19  ;;  %2442 = vmatpush3.msra.mxu0 %v1741_v12  ;;  %v1097_v61 = vpop.permute.xlu0 %1096 }
0x1570   :  { %712 = vst.msk [vmem:[#allocation3] sm:$0xff] %vm81_vm3, %v711_v17  ;;  %715 = vst.msk [vmem:[#allocation5] sm:$0xff] %vm81_vm3, %v714_v39  ;;  %2443 = vmatprep.subr.mxu0 %v2775_v0  ;;  %v1185_v20 = vpop.permute.xlu1 %1184 }
0x1571   :  { %2444 = vmatpush3.msra.mxu0 %v1740_v55 }
0x1572   :  { %2445 = vmatprep.subr.mxu0 %v2775_v0 }
0x1573   :  { %2446 = vmatpush3.msra.mxu0 %v1739_v9  ;;  %v1276_v10 = vpop.permute.xlu0 %1275 }
0x1574   :  { %2447 = vmatprep.subr.mxu0 %v2775_v0  ;;  %v1364_v38 = vpop.permute.xlu1 %1363 }
0x1575   :  { %2448 = vmatpush3.msra.mxu0 %v1738_v28 }
0x1576   :  { %v807_v50 = vld [vmem:[#allocation2] sm:$0xff]  ;;  %v814_v22 = vld [vmem:[#allocation4] sm:$0xff]  ;;  %2449 = vmatprep.subr.mxu0 %v2775_v0 }
0x1577   :  { %v812_v1 = vmax.f32 %v807_v50, %v810_v53  ;;  %v815_v23 = vadd.f32 %v814_v22, %v810_v53  ;;  %v911_v43 = vld [vmem:[#allocation3] sm:$0xff]  ;;  %v918_v26 = vld [vmem:[#allocation5] sm:$0xff]  ;;  %2450 = vmatpush3.msra.mxu0 %v1737_v15  ;;  %v1455_v40 = vpop.permute.xlu0 %1454 }
0x1578   :  { %v916_v27 = vmax.f32 %v911_v43, %v914_v51  ;;  %v919_v57 = vadd.f32 %v918_v26, %v914_v51  ;;  %2451 = vmatprep.subr.mxu0 %v2775_v0 }
0x1579   :  { %813 = vst.msk [vmem:[#allocation2] sm:$0xff] %vm81_vm3, %v812_v1  ;;  %816 = vst.msk [vmem:[#allocation4] sm:$0xff] %vm81_vm3, %v815_v23  ;;  %2452 = vmatpush3.msra.mxu0 %v1736_v29 }
0x157a   :  { %917 = vst.msk [vmem:[#allocation3] sm:$0xff] %vm81_vm3, %v916_v27  ;;  %920 = vst.msk [vmem:[#allocation5] sm:$0xff] %vm81_vm3, %v919_v57  ;;  %2453 = vmatprep.subr.mxu0 %v2775_v0  ;;  %v1733_v57 = vld [vmem:[#allocation8] sm:$0xff] }
0x157b   :  { %2454 = vmatpush3.msra.mxu0 %v1735_v36  ;;  %v1694_v36 = vsel %vm81_vm3, %v1652_v2, -inf }
0x157c   :  { %2455 = vmatprep.subr.mxu0 %v2775_v0 }
0x157d   :  { %2456 = vmatpush3.msra.mxu0 %v1734_v48 }
0x157e   :  { %2457 = vmatprep.subr.mxu0 %v2775_v0 }
0x157f   :  { %2458 = vmatpush3.msra.mxu0 %v1733_v57  ;;  %v2562_v57 = vld [vmem:[%s3724_s7] sm:$0xff]  }
0x1580   :  { %v1003_v4 = vld [vmem:[#allocation2] sm:$0xff]  ;;  %v1010_v30 = vld [vmem:[#allocation4] sm:$0xff]  ;;  %2482 = vmatprep.subr.bf16.mxu0 %v2775_v0 }
0x1581   :  { %v1008_v34 = vmax.f32 %v1003_v4, %v1006_v31  ;;  %v1011_v8 = vadd.f32 %v1010_v30, %v1006_v31  ;;  %v1094_v46 = vld [vmem:[#allocation3] sm:$0xff]  ;;  %v1101_v42 = vld [vmem:[#allocation5] sm:$0xff] }
0x1582   :  { %v1099_v37 = vmax.f32 %v1094_v46, %v1097_v61  ;;  %v1102_v11 = vadd.f32 %v1101_v42, %v1097_v61  ;;  %v1688_v46 = vsel %vm81_vm3, %v1647_v63, -inf  ;;  %v1690_v61 = vsel %vm81_vm3, %v1649_v49, -inf }
0x1583   :  { %1009 = vst.msk [vmem:[#allocation2] sm:$0xff] %vm81_vm3, %v1008_v34  ;;  %1012 = vst.msk [vmem:[#allocation4] sm:$0xff] %vm81_vm3, %v1011_v8  ;;  %v1646_v34 = vld [vmem:[#allocation6 + $0x38] sm:$0xff]  ;;  %v1691_v63 = vsel %vm81_vm3, %v1650_v52, -inf  ;;  %v1693_v54 = vmax.f32 %v1688_v46, %v1692_v5  ;;  %v2564_v46 = vld [vmem:[%s3726_s9] sm:$0xff]  }
0x1584   :  { %1100 = vst.msk [vmem:[#allocation3] sm:$0xff] %vm81_vm3, %v1099_v37  ;;  %1103 = vst.msk [vmem:[#allocation5] sm:$0xff] %vm81_vm3, %v1102_v11  ;;  %v1654_v8 = vmax.f32 %v1646_v34, 0.0  ;;  %v1689_v37 = vsel %vm81_vm3, %v1648_v56, -inf  ;;  %v1697_v11 = vmax.f32 %v1690_v61, %v1696_v7 }
0x1585   :  { %v1695_v2 = vmax.f32 %v1689_v37, %v1694_v36 }
0x1586   :  { %v1698_v42 = vsel %vm81_vm3, %v1654_v8, -inf  ;;  %v1666_v49 = vmul.f32 %v3479_v13, %v1654_v8 }
0x1587   :  { %v1699_v59 = vmax.f32 %v1691_v63, %v1698_v42  ;;  %v1700_v48 = vmax.f32 %v1693_v54, %v1695_v2 }
0x1588   :  { %v1680_v56 = vsel %vm81_vm3, %v1666_v49, 0.0  ;;  %v2209_v49 = vld [vmem:[%s3727_s10] ss:$0 sm:$0xff] }
0x1589   :  { %v1681_v16 = vadd.f32 %v1680_v56, %v3552_v45  ;;  %v1701_v3 = vmax.f32 %v1697_v11, %v1699_v59 }
0x158a   :  { %v1182_v44 = vld [vmem:[#allocation2] sm:$0xff]  ;;  %v1189_v32 = vld [vmem:[#allocation4] sm:$0xff] }
0x158b   :  { %v1187_v60 = vmax.f32 %v1182_v44, %v1185_v20  ;;  %v1190_v35 = vadd.f32 %v1189_v32, %v1185_v20  ;;  %v1273_v6 = vld [vmem:[#allocation3] sm:$0xff]  ;;  %v1280_v33 = vld [vmem:[#allocation5] sm:$0xff]  ;;  %v1702_v62 = vmax.f32 %v1700_v48, %v1701_v3 }
0x158c   :  { %v1278_v14 = vmax.f32 %v1273_v6, %v1276_v10  ;;  %v1281_v19 = vadd.f32 %v1280_v33, %v1276_v10  ;;  %v2547_v6 = vld [vmem:[#allocation10 + $0x38] sm:$0xff]   ;;  %v2548_v33 = vld [vmem:[#allocation10 + $0x30] sm:$0xff]   ;;  %v2549_v10 = vld [vmem:[#allocation10 + $0x28] sm:$0xff]  }
0x158d   :  { %1188 = vst.msk [vmem:[#allocation2] sm:$0xff] %vm81_vm3, %v1187_v60  ;;  %1191 = vst.msk [vmem:[#allocation4] sm:$0xff] %vm81_vm3, %v1190_v35  ;;  %2463 = vmatpush3.bf16.msra.mxu1 %v2547_v6 }
0x158e   :  { %1279 = vst.msk [vmem:[#allocation3] sm:$0xff] %vm81_vm3, %v1278_v14  ;;  %1282 = vst.msk [vmem:[#allocation5] sm:$0xff] %vm81_vm3, %v1281_v19  ;;  %2464 = vmatprep.subr.bf16.mxu1 %v2775_v0  ;;  %v2550_v14 = vld [vmem:[#allocation10 + $0x20] sm:$0xff]   ;;  %v2551_v19 = vld [vmem:[#allocation10 + $0x18] sm:$0xff]  }
0x1591   :  { %2465 = vmatpush3.bf16.msra.mxu1 %v2548_v33 }
0x1592   :  { %2466 = vmatprep.subr.bf16.mxu1 %v2775_v0 }
0x1594   :  { %v1361_v18 = vld [vmem:[#allocation2] sm:$0xff]  ;;  %v1368_v47 = vld [vmem:[#allocation4] sm:$0xff] }
0x1595   :  { %v1366_v21 = vmax.f32 %v1361_v18, %v1364_v38  ;;  %v1369_v17 = vadd.f32 %v1368_v47, %v1364_v38  ;;  %v1452_v39 = vld [vmem:[#allocation3] sm:$0xff]  ;;  %v1459_v24 = vld [vmem:[#allocation5] sm:$0xff]  ;;  %2467 = vmatpush3.bf16.msra.mxu1 %v2549_v10  ;;  %v2552_v18 = vld [vmem:[#allocation10 + $0x10] sm:$0xff]  }
0x1596   :  { %v1457_v25 = vmax.f32 %v1452_v39, %v1455_v40  ;;  %v1460_v12 = vadd.f32 %v1459_v24, %v1455_v40  ;;  %2468 = vmatprep.subr.bf16.mxu1 %v2775_v0  ;;  %v2553_v47 = vld [vmem:[#allocation10 + $0x8] sm:$0xff]   ;;  %v2554_v38 = vld [vmem:[#allocation10] sm:$0xff]   ;;  %v2559_v40 = vld [vmem:[%s3724_s7 + $0x18] sm:$0xff]  }
0x1597   :  { %1367 = vst.msk [vmem:[#allocation2] sm:$0xff] %vm81_vm3, %v1366_v21  ;;  %1370 = vst.msk [vmem:[#allocation4] sm:$0xff] %vm81_vm3, %v1369_v17  ;;  %v2555_v21 = vld [vmem:[%s3724_s7 + $0x38] sm:$0xff]   ;;  %v2556_v17 = vld [vmem:[%s3724_s7 + $0x30] sm:$0xff]  }
0x1598   :  { %1458 = vst.msk [vmem:[#allocation3] sm:$0xff] %vm81_vm3, %v1457_v25  ;;  %1461 = vst.msk [vmem:[#allocation5] sm:$0xff] %vm81_vm3, %v1460_v12  ;;  %v2557_v39 = vld [vmem:[%s3724_s7 + $0x28] sm:$0xff]   ;;  %v2558_v24 = vld [vmem:[%s3724_s7 + $0x20] sm:$0xff]  }
0x1599   :  { %2469 = vmatpush3.bf16.msra.mxu1 %v2550_v14  ;;  %v2560_v25 = vld [vmem:[%s3724_s7 + $0x10] sm:$0xff]  }
0x159a   :  { %2470 = vmatprep.subr.bf16.mxu1 %v2775_v0 }
0x159d   :  { %2471 = vmatpush3.bf16.msra.mxu1 %v2551_v19 }
0x159e   :  { %v1540_v50 = vld [vmem:[#allocation2] sm:$0xff]  ;;  %v1547_v22 = vld [vmem:[#allocation4] sm:$0xff]  ;;  %2472 = vmatprep.subr.bf16.mxu1 %v2775_v0 }
0x159f   :  { %v1629_v43 = vld [vmem:[#allocation3] sm:$0xff]  ;;  %v1636_v26 = vld [vmem:[#allocation5] sm:$0xff] }
0x15a1   :  { %2473 = vmatpush3.bf16.msra.mxu1 %v2552_v18 }
0x15a2   :  { %2474 = vmatprep.subr.bf16.mxu1 %v2775_v0 }
0x15a5   :  { %2475 = vmatpush3.bf16.msra.mxu1 %v2553_v47 }
0x15a6   :  { %2476 = vmatprep.subr.bf16.mxu1 %v2775_v0 }
0x15a9   :  { %2477 = vmatpush3.bf16.msra.mxu1 %v2554_v38 }
0x15aa   :  { %2502 = vmatprep.subr.bf16.mxu1 %v2775_v0 }
0x15d5   :  { %v1543_v53 = vpop.permute.xlu1 %1542 }
0x15d6   :  { %v1545_v1 = vmax.f32 %v1540_v50, %v1543_v53  ;;  %v1548_v23 = vadd.f32 %v1547_v22, %v1543_v53 }
0x15d8   :  { %1546 = vst.msk [vmem:[#allocation2] sm:$0xff] %vm81_vm3, %v1545_v1  ;;  %1549 = vst.msk [vmem:[#allocation4] sm:$0xff] %vm81_vm3, %v1548_v23  ;;  %v1632_v51 = vpop.permute.xlu0 %1631 }
0x15d9   :  { %v1634_v55 = vmax.f32 %v1629_v43, %v1632_v51  ;;  %v1637_v27 = vadd.f32 %v1636_v26, %v1632_v51 }
0x15db   :  { %1635 = vst.msk [vmem:[#allocation3] sm:$0xff] %vm81_vm3, %v1634_v55  ;;  %1638 = vst.msk [vmem:[#allocation5] sm:$0xff] %vm81_vm3, %v1637_v27  ;;  %v2561_v27 = vld [vmem:[%s3724_s7 + $0x8] sm:$0xff]  }
0x15df   :  { %v1703_v9 = vld [vmem:[#allocation4] sm:$0xff]  ;;  %v1720_v30 = vld [vmem:[#allocation2] sm:$0xff] }
0x15e2   :  { %v1685_v28 = vpop.permute.xlu1 %1684  ;;  %v1705_v15 = vld [vmem:[#allocation5] sm:$0xff]  ;;  %v1721_v31 = vld [vmem:[#allocation3] sm:$0xff] }
0x15e3   :  { %v1704_v29 = vmul.f32 %v1703_v9, %v1685_v28  ;;  %v1706_v4 = vmul.f32 %v1705_v15, %v1685_v28  ;;  %v1687_v44 = vmul.f32 %v1685_v28, %v1681_v16  ;;  %v2563_v9 = vld [vmem:[%s3726_s9 + $0x8] sm:$0xff]   ;;  %v2191_v28 = vld [vmem:[%s3723_s6] ss:$0 sm:$0xff] }
0x15e5   :  { %1708 = vrot.lane.b32.xlu0 %v1704_v29, %s2778_s28  ;;  %1712 = vrot.lane.b32.xlu1 %v1706_v4, %s2773_s4 }
0x15e9   :  { %1723 = vrot.lane.b32.xlu0 %v1720_v30, %s2778_s28  ;;  %1727 = vrot.lane.b32.xlu1 %v1721_v31, %s2773_s4 }
0x1657   :  { %v1713_v41 = vpop.permute.xlu1 %1712  ;;  %v1709_v52 = vpop.permute.xlu0 %1708 }
0x1658   :  { %v1715_v58 = vsel %vm81_vm3, %v1687_v44, %v1709_v52 }
0x1659   :  { %v1717_v32 = vsel %vm1716_vm1, %v1715_v58, %v1713_v41 }
0x165a   :  { %2460 = vmatmul.mubr.msk.f32.vlgmr.msra.gmra.mxu0 %vm1718_vm2, %v1717_v32 }
0x165b   :  { %v1728_v13 = vpop.permute.xlu1 %1727  ;;  %v1724_v20 = vpop.permute.xlu0 %1723  ;;  %2498 = vmatprep.mubr.msk.bf16.mxu0 %vm2776_vm0, %v2775_v0  ;;  %2483 = vmatpush3.bf16.msra.mxu0 %v2555_v21 }
0x165c   :  { %v1730_v60 = vsel %vm81_vm3, %v1702_v62, %v1724_v20  ;;  %2484 = vmatprep.subr.bf16.mxu0 %v2775_v0 }
0x165d   :  { %v1731_v45 = vsel %vm1716_vm1, %v1730_v60, %v1728_v13 }
0x165e   :  { %v1732_v35 = vsel %vm1718_vm2, %v1731_v45, 0.0 }
0x165f   :  { %2485 = vmatpush3.bf16.msra.mxu0 %v2556_v17 }
0x1660   :  { %2486 = vmatprep.subr.bf16.mxu0 %v2775_v0 }
0x1663   :  { %2487 = vmatpush3.bf16.msra.mxu0 %v2557_v39 }
0x1664   :  { %2488 = vmatprep.subr.bf16.mxu0 %v2775_v0 }
0x1667   :  { %2489 = vmatpush3.bf16.msra.mxu0 %v2558_v24 }
0x1668   :  { %2490 = vmatprep.subr.bf16.mxu0 %v2775_v0 }
0x166b   :  { %2491 = vmatpush3.bf16.msra.mxu0 %v2559_v40 }
0x166c   :  { %2492 = vmatprep.subr.bf16.mxu0 %v2775_v0 }
0x166f   :  { %2493 = vmatpush3.bf16.msra.mxu0 %v2560_v25 }
0x1670   :  { %2494 = vmatprep.subr.bf16.mxu0 %v2775_v0 }
0x1673   :  { %2495 = vmatpush3.bf16.msra.mxu0 %v2561_v27 }
0x1674   :  { %2496 = vmatprep.subr.bf16.mxu0 %v2775_v0 }
0x1677   :  { %2497 = vmatpush3.bf16.msra.mxu0 %v2562_v57 }
0x171a   :  { %v1815_v12 = vpop.f32.mrf.mxu0 }
0x171b   :  { %v2190_v50 = vmul.f32 -1.442695, %v1815_v12 }
0x171c   :  { %v2461_v22 = vpop.f32.mrf.mxu0 }
0x171d   :  { %2695 = vpow2.f32 %v2190_v50 }
0x172a   :  { %v2696_v53 = vpop.eup %2695 }
0x172b   :  { %v1822_v1 = vadd.f32 1.0, %v2696_v53 }
0x172d   :  { %2697 = vrcp.f32 %v1822_v1 }
0x173a   :  { %v2698_v23 = vpop.eup %2697 }
0x173b   :  { %v1825_v43 = vadd.f32 1.0, %v2698_v23 }
0x173d   :  { %v1826_v26 = vmul.f32 %v1825_v43, %v1732_v35 }
0x173f   :  { %v1827_v51 = vmax.f32 %v1826_v26, 0.0 }
0x1741   :  { %v1828_v55 = vpack.c.bf16 %v1827_v51, %v1827_v51 }
0x1743   :  { %2479 = vmatmul.mubr.bf16.vlgmr.msra.gmra.mxu1 %v1828_v55 }
0x1744   :  { %2506 = vmatprep.mubr.msk.bf16.mxu1 %vm2776_vm0, %v2775_v0  ;;  %2503 = vmatpush3.bf16.msra.mxu1 %v2563_v9  ;;  %vm2121_vm0 = vcmask 15360  }
0x1745   :  { %2504 = vmatprep.subr.bf16.mxu1 %v2775_v0  ;;  %v2200_v0 = vld [vmem:[%s3725_s8] ss:$0 sm:$0xff] }
0x1748   :  { %2505 = vmatpush3.bf16.msra.mxu1 %v2564_v46 }
0x1803   :  { %v1934_v15 = vpop.f32.mrf.mxu1 }
0x1804   :  { %v1935_v29 = vadd.f32 %v2191_v28, %v1934_v15 }
0x1805   :  { %v2480_v4 = vpop.f32.mrf.mxu1 }
0x1806   :  { %v1940_v30 = vmax.f32 %v1935_v29, 0.0 }
0x1807   :  { %v1937_v31 = vpop.f32.mrf.mxu1 }
0x1808   :  { %v1941_v34 = vpack.c.bf16 %v1940_v30, %v1940_v30 }
0x1809   :  { %v2481_v8 = vpop.f32.mrf.mxu1 }
0x180a   :  { %2499 = vmatmul.mubr.bf16.vlgmr.msra.gmra.mxu0 %v1941_v34 }
0x18ca   :  { %v2047_v42 = vpop.f32.mrf.mxu0 }
0x18cb   :  { %v2048_v61 = vadd.f32 %v2200_v0, %v2047_v42 }
0x18cc   :  { %v2500_v36 = vpop.f32.mrf.mxu0 }
0x18cd   :  { %v2053_v37 = vmax.f32 %v2048_v61, 0.0 }
0x18ce   :  { %v2050_v7 = vpop.f32.mrf.mxu0 }
0x18cf   :  { %v2054_v63 = vpack.c.bf16 %v2053_v37, %v2053_v37 }
0x18d0   :  { %v2501_v5 = vpop.f32.mrf.mxu0 }
0x18d1   :  { %2507 = vmatmul.mubr.msk.bf16.vlgmr.msra.gmra.mxu1 %vm81_vm3, %v2054_v63 }
0x1991   :  { %v2115_v54 = vpop.f32.mrf.mxu1 }
0x1992   :  { %v2116_v2 = vadd.f32 %v2209_v49, %v2115_v54 }
0x1993   :  { %v2508_v11 = vpop.f32.mrf.mxu1 }
0x1994   :  { %2122 = vst.msk [vmem:[%s3728_s11] sm:$0xff] %vm2121_vm0, %v2116_v2 }
0x1995   :  { %v2118_v59 = vpop.f32.mrf.mxu1 }
0x1997   :  { %v2509_v56 = vpop.f32.mrf.mxu1 }
0x1998   :  { %2127 = vsyncpa [#allocation7], 1 }
0x1999   :  { %2128 = vsyncpa [#allocation9], 1 }

</bundles_post_ra>
